<compile_context>
chip_gen: v6e
topology: v6e:2x2x1
jax: 0.10.0
libtpu: 0.0.40
codegen_flags: <defaults>
</compile_context>

<pallas_src>
import functools

import jax
import jax.numpy as jnp
from jax.experimental import pallas as pl
from jax.experimental.pallas import tpu as pltpu


def fused_linear_add_kernel(x_ref, w_ref, b_ref, o_ref):
    """One (M, tn) output column block of x @ W_sum + b_sum.

    x_ref: (M, K)    full input rows (resident across grid steps)
    w_ref: (K, tn)   fused weight column block, already [K, N] layout
    b_ref: (1, tn)   fused bias column block
    o_ref: (M, tn)   output column block
    """
    out = jnp.dot(x_ref[...], w_ref[...], preferred_element_type=jnp.float32)
    o_ref[...] = (out + b_ref[...]).astype(o_ref.dtype)


def fuse_linear_params(w1, b1, w2, b2):
    """One-time fold of the two nn.Linear layers (done at conversion time,
    NOT in the per-call path): x@W1.T + x@W2.T + b1 + b2 == x@(W1+W2).T + (b1+b2).
    The transpose to [K, N] is folded into this materialization for free."""
    w_sum_kn = jnp.transpose(w1 + w2)          # [K, N]
    b_sum = (b1 + b2).reshape(1, -1)           # [1, N]
    return w_sum_kn, b_sum


@functools.partial(jax.jit, static_argnames=("tn",))
def dual_linear_add(x, w_sum_kn, b_sum, *, tn=None):
    """Equivalent of test_mod_2.forward: l1(x) + l2(x), with pre-fused params.

    x:         [M, K] float32
    w_sum_kn:  [K, N] fused weight (already transposed to K-major)
    b_sum:     [1, N] fused bias
    returns:   [M, N] float32
    """
    M, K = x.shape
    N = w_sum_kn.shape[1]

    # Default: 2 column blocks so both v7x TensorCores each pull only half of
    # the weight; lane-dense as long as tn is a multiple of 128.
    if tn is None:
        tn = N // 2 if (N % 2 == 0 and (N // 2) % 128 == 0) else N
    if N % tn != 0:
        raise ValueError(f"N={N} must be divisible by tn={tn}")

    grid = (N // tn,)

    itemsize = jnp.dtype(x.dtype).itemsize
    cost = pl.CostEstimate(
        flops=2 * M * K * N,
        transcendentals=0,
        bytes_accessed=(M * K + K * N + N + M * N) * itemsize,
    )

    return pl.pallas_call(
        fused_linear_add_kernel,
        out_shape=jax.ShapeDtypeStruct((M, N), x.dtype),
        grid=grid,
        in_specs=[
            pl.BlockSpec((M, K), lambda j: (0, 0)),   # x: constant block index → resident
            pl.BlockSpec((K, tn), lambda j: (0, j)),  # fused weight column block
            pl.BlockSpec((1, tn), lambda j: (0, j)),  # fused bias column block
        ],
        out_specs=pl.BlockSpec((M, tn), lambda j: (0, j)),
        compiler_params=pltpu.CompilerParams(
            dimension_semantics=("parallel",),
        ),
        cost_estimate=cost,
    )(x, w_sum_kn, b_sum)


if __name__ == "__main__":
    # Module is Linear(768, 768); feature dims are fixed at 768 by the module,
    # use a lighter 256-row batch.
    M, K, N = 256, 768, 768

    key = jax.random.PRNGKey(0)
    kx, kw1, kb1, kw2, kb2 = jax.random.split(key, 5)

    x = jax.random.uniform(kx, (M, K), dtype=jnp.float32)
    # nn.Linear-style init: uniform in [-1/sqrt(K), 1/sqrt(K)], PyTorch [N, K] layout.
    bound = 1.0 / (K ** 0.5)
    w1 = jax.random.uniform(kw1, (N, K), dtype=jnp.float32, minval=-bound, maxval=bound)
    b1 = jax.random.uniform(kb1, (N,), dtype=jnp.float32, minval=-bound, maxval=bound)
    w2 = jax.random.uniform(kw2, (N, K), dtype=jnp.float32, minval=-bound, maxval=bound)
    b2 = jax.random.uniform(kb2, (N,), dtype=jnp.float32, minval=-bound, maxval=bound)

    # One-time parameter fold (conversion time), kept out of the per-call path.
    w_sum_kn, b_sum = jax.block_until_ready(fuse_linear_params(w1, b1, w2, b2))

    out = dual_linear_add(x, w_sum_kn, b_sum)
    out = jax.block_until_ready(out)

    # Pure-JAX reference of the original forward: l1(x) + l2(x).
    ref = (x @ w1.T + b1) + (x @ w2.T + b2)
    assert out.shape == (M, N)
    assert jnp.allclose(out, ref, atol=1e-3, rtol=1e-3)

    # TODO(synk): compute_tensor_bytes / print in forward are host-side
    # bookkeeping (and `res` is discarded), so they have no kernel equivalent.
    print("KERNEL_OK")
</pallas_src>

<mosaic_0001>
module attributes {stable_mosaic.version = 11 : i64} {
  func.func @fused_linear_add_kernel(%arg0: i32, %arg1: memref<256x768xf32, #tpu.memory_space<vmem>>, %arg2: memref<768x384xf32, #tpu.memory_space<vmem>>, %arg3: memref<1x384xf32, #tpu.memory_space<vmem>>, %arg4: memref<256x384xf32, #tpu.memory_space<vmem>>) attributes {dimension_semantics = [#tpu.dimension_semantics<parallel>], iteration_bounds = array<i64: 2>, scalar_prefetch = 0 : i64, scratch_operands = 0 : i64, tpu.core_type = #tpu.core_type<tc>, window_params = [{pipeline_mode = #tpu.pipeline_mode<synchronous>, transform_indices = @transform_0, window_bounds = array<i64: 256, 768>}, {transform_indices = @transform_1, window_bounds = array<i64: 768, 384>}, {transform_indices = @transform_2, window_bounds = array<i64: 1, 384>}, {transform_indices = @transform_3, window_bounds = array<i64: 256, 384>}]} {
    %c0 = arith.constant 0 : index
    %c0_0 = arith.constant 0 : index
    %0 = vector.load %arg1[%c0, %c0_0] : memref<256x768xf32, #tpu.memory_space<vmem>>, vector<256x768xf32>
    %c0_1 = arith.constant 0 : index
    %c0_2 = arith.constant 0 : index
    %1 = vector.load %arg2[%c0_1, %c0_2] : memref<768x384xf32, #tpu.memory_space<vmem>>, vector<768x384xf32>
    %cst = arith.constant dense<0.000000e+00> : vector<256x384xf32>
    %2 = tpu.matmul %0, %1, %cst {dimension_numbers = #tpu.dot_dimension_numbers<[1], [0], [0], [1], [0, 0, 1, 1], [], []>} : vector<256x768xf32>, vector<768x384xf32>, vector<256x384xf32> -> vector<256x384xf32>
    %c0_3 = arith.constant 0 : index
    %c0_4 = arith.constant 0 : index
    %3 = vector.load %arg3[%c0_3, %c0_4] : memref<1x384xf32, #tpu.memory_space<vmem>>, vector<1x384xf32>
    %4 = vector.broadcast %3 : vector<1x384xf32> to vector<256x384xf32>
    %5 = arith.addf %2, %4 : vector<256x384xf32>
    %c0_5 = arith.constant 0 : index
    %c0_6 = arith.constant 0 : index
    %6 = vector.load %arg4[%c0_5, %c0_6] : memref<256x384xf32, #tpu.memory_space<vmem>>, vector<256x384xf32>
    tpu.vector_store %arg4[%c0_5, %c0_6], %5 {strides = array<i32>} : memref<256x384xf32, #tpu.memory_space<vmem>>, vector<256x384xf32>,
    return
  }
  func.func @transform_0(%arg0: i32) -> (i32, i32) {
    %c0_i32 = arith.constant 0 : i32
    %c0_i32_0 = arith.constant 0 : i32
    %c0_i32_1 = arith.constant 0 : i32
    return %c0_i32, %c0_i32_0 : i32, i32
  }
  func.func @transform_1(%arg0: i32) -> (i32, i32) {
    %c0_i32 = arith.constant 0 : i32
    %c0_i32_0 = arith.constant 0 : i32
    return %c0_i32, %arg0 : i32, i32
  }
  func.func @transform_2(%arg0: i32) -> (i32, i32) {
    %c0_i32 = arith.constant 0 : i32
    %c0_i32_0 = arith.constant 0 : i32
    return %c0_i32, %arg0 : i32, i32
  }
  func.func @transform_3(%arg0: i32) -> (i32, i32) {
    %c0_i32 = arith.constant 0 : i32
    %c0_i32_0 = arith.constant 0 : i32
    return %c0_i32, %arg0 : i32, i32
  }
}

</mosaic_0001>

<bundles_post_ra>
// kernel: dual_linear_add.1
= control target key start
LH: loop header
LB: loop body
LE: loop exit
PB: predicated region body
PF: predicated region fallthrough
CT: control target
= control target key end

     0   :  { %8 = vsyncpa [#allocation3], 0  ;;  %s4221_s0 = inlined_call_operand.hbm [shape: f32[256,768], index: 0, kind: input, shape index: {}]   ;;  %s4222_s1 = inlined_call_operand.hbm [shape: f32[768,768], index: 1, kind: input, shape index: {}]   ;;  %s4223_s2 = inlined_call_operand.hbm [shape: f32[1,768], index: 2, kind: input, shape index: {}]   ;;  %s4224_s3 = inlined_call_operand.hbm [shape: f32[256,768], index: 3, kind: output, shape index: {}]  }
   0x1   :  { %9 = vsyncpa [#allocation6], 0 }
   0x2   :  { %11 = vsyncpa [#allocation6 + $0x1], 0 }
   0x3   :  { %12 = vsyncpa [#allocation4], 0 }
   0x4   :  { %14 = vsyncpa [#allocation4 + $0x1], 0  ;;  %s2785_s12 = smov 0   ;;  %s2787_s13 = smov 0  }
   0x5   :  { %s2789_s14 = smov 0   ;;  %s2791_s15 = smov 0  }
   0x6 LB: > { %s2806_s16 = sadd.s32 1, %s2751_s15   ;;  %s48_s17 = sadd.s32 1, %s2747_s14  ;;  %s2751_s15 = sphi %s2791_s15, %s4353_s15   ;;  %s2747_s14 = sphi %s2789_s14, %s4352_s14   ;;  %s2743_s13 = sphi %s2787_s13, %s4351_s13   ;;  %s2739_s12 = sphi %s2785_s12, %s4350_s12  }
   0x7   : > { %s45_s18 = ssub.s32 %s2751_s15, %s2806_s16  ;;  %p55_p0 = scmp.ne.s32.totalorder %s2747_s14, %s2743_s13 }
   0x8   : > { %p46_p1 = scmp.eq.s32.totalorder %s45_s18, 0  ;;  %p56_p2 = scmp.eq.s32.totalorder %s2751_s15, 0 }
   0x9   : > { %p2445_p5 = scmp.lt.s32.totalorder %s2751_s15, 2  ;;  %s150_s20 = sand.u32 1, %s2751_s15  }
   0xa   : > { %s2816_s19 = scalar_select %p46_p1, %s2747_s14, %s48_s17  }
   0xb   : > { %p57_p4 = por %p56_p2, %p55_p0  ;;  %s152_s21 = sand.u32 1, %s2747_s14  }
   0xc   : > { %s2414_s22 = smul.u32 2304, %s152_s21  ;;  %s2838_s30 = scalar_lea.sflag [#allocation6], %s150_s20 }
   0xd   : > { %s2411_s23 = smul.u32 384, %s2751_s15  ;;  %p2827_p6 = pnand %p2445_p5, %p57_p4 }
   0xe   : > { %s154_s28 = scalar_lea.vmem [#allocation5], %s2414_s22  ;;  %s2606_s7 = scalar_lea.hbm %s4222_s1, 73728 }
   0xf   : > { %s2834_s27 = scalar_lea.hbm %s4222_s1, %s2411_s23  ;;  %s161_s29 = sshll.u32 %s154_s28, 4  ;;  %s2836_s29 = int_to_ptr.vmem [resolvable:$true] %s161_s29 }
  0x10   : > { %s2601_s4 = scalar_lea.hbm %s2834_s27, 36864  ;;  %p4226_p8 = pneg %p2827_p6 }
  0x11   : > { %p2602_p7 = scmp.ne.s32.totalorder %s2834_s27, %s2601_s4  ;;  %p2607_p11 = scmp.lt.s32.totalorder %s2834_s27, %s4222_s1 }
  0x12   : > { %p2608_p12 = scmp.lt.s32.totalorder %s2606_s7, %s2601_s4 }
  0x13   : > { %p2604_p9 = pnand %p4226_p8, %p2602_p7 }
  0x14   : > { %p2609_p13 = por %p2608_p12, %p2607_p11 }
  0x15   : > { %p2605_p10 = pneg %p2604_p9 }
  0x17   : > { %p2610_p1 = pnand %p2609_p13, %p2605_p10 }
  0x19   : > { %2613 = shalt.err (!%p2610_p1)
}
  0x1a   : > { %s2614_s10 = scalar_lea.vmem %s2836_s29, 36864  ;;  %s2753_s11 = smov [#allocation5]  }
  0x1b   : > { %p2615_p2 = scmp.ne.s32.totalorder %s2836_s29, %s2614_s10  ;;  %s2619_s17 = sshll.u32 %s2753_s11, 4  ;;  %s2620_s17 = int_to_ptr.vmem [resolvable:$false] %s2619_s17 }
  0x1c   : > { %s2621_s18 = scalar_lea.vmem %s2620_s17, 73728  ;;  %p2622_p7 = scmp.lt.s32.totalorder %s2836_s29, %s2620_s17 }
  0x1d   : > { %p2617_p4 = pnand %p2615_p2, %p4226_p8  ;;  %p2623_p9 = scmp.lt.s32.totalorder %s2621_s18, %s2614_s10 }
  0x1f   : > { %p2618_p5 = pneg %p2617_p4  ;;  %p2624_p3 = por %p2623_p9, %p2622_p7 }
  0x21   : > { %p2625_p11 = pnand %p2624_p3, %p2618_p5 }
  0x23   : > { %2628 = shalt.err (!%p2625_p11)
}
  0x24   : > { %s2754_s20 = smov 768   ;;  %s2755_s22 = smov 384  }
  0x25   : > { %s2756_s23 = smov 24   ;;  %s2867_s25 = sadd.s32 4294967295, %s2751_s15  }
  0x26   : > { %2436 = dma.hbm_to_vmem [thread:$0]  (!%p2827_p6), %s2834_s27, 36864, %s2836_s29, %s2838_s30, %s2754_s20, %s2755_s22, %s2756_s23  }
  0x27   : > { %s2400_s26 = sadd.s32 4294967294, %s2751_s15   ;;  %p61_p3 = scmp.ne.s32.totalorder %s2743_s13, %s2739_s12 }
  0x28   : > { %p4225_p10 = scmp.eq.s32.totalorder %s2867_s25, 0  ;;  %p111_p12 = scmp.eq.s32.totalorder %s2867_s25, 1 }
  0x29   : > { %p117_p13 = scmp.eq.s32.totalorder %s2400_s26, 1  ;;  %p2401_p1 = scmp.ge.s32.totalorder %s2751_s15, 1 }
  0x2a   : > { %p2877_p2 = por %p4225_p10, %p61_p3  ;;  %p2884_p4 = por %p111_p12, %p55_p0 }
  0x2b   : > { %p2888_p5 = por %p117_p13, %p61_p3  ;;  %p124_p7 = scmp.lt.s32.totalorder %s2751_s15, 3 }
  0x2c   : > { %s4244_s28 = scalar_select %p2877_p2, 1, 0 }
  0x2d   : > { %s4245_s27 = scalar_select %p2884_p4, 1, 0 }
  0x2e   : > { %s4246_s29 = scalar_select %p2888_p5, 1, 0 }
  0x2f   : > { %p2893_p9 = pnand %p2401_p1, %p124_p7  ;;  %s2757_s5 = smov [#allocation2]  }
  0x30   : > { %s136_s6 = sshll.u32 %s2757_s5, 4  ;;  %s2415_s7 = smul.u32 3, %s152_s21  ;;  %s137_s6 = int_to_ptr.vmem [resolvable:$true] %s136_s6 }
  0x31   : > { %p2429_p11 = pneg %p2893_p9  ;;  %s2412_s8 = smul.u32 48, %s2751_s15 }
  0x32   : > { %s175_s18 = scalar_lea.vmem [#allocation7], %s2415_s7  ;;  %s2640_s23 = scalar_lea.vmem %s137_s6, 24576 }
  0x33   : > { %p2904_p0 = pnand %p2429_p11, %p4225_p10  ;;  %s2911_s17 = scalar_lea.hbm %s4223_s2, %s2412_s8 }
  0x34   : > { %s183_s22 = sshll.u32 %s175_s18, 4  ;;  %p2641_p12 = scmp.ne.s32.totalorder %s137_s6, %s2640_s23  ;;  %s2913_s22 = int_to_ptr.vmem [resolvable:$true] %s183_s22 }
  0x35   : > { %p2631_p3 = pneg %p2904_p0  ;;  %p2648_p7 = scmp.lt.s32.totalorder %s137_s6, %s137_s6 }
  0x36   : > { %p2649_p11 = scmp.lt.s32.totalorder %s2640_s23, %s2640_s23 }
  0x37   : > { %p2643_p13 = pnand %p2641_p12, %p2631_p3 }
  0x38   : > { %p2650_p10 = por %p2649_p11, %p2648_p7 }
  0x39   : > { %p2644_p1 = pneg %p2643_p13 }
  0x3b   : > { %p2651_p8 = pnand %p2650_p10, %p2644_p1 }
  0x3d   : > { %2654 = shalt.err (!%p2651_p8)
}
  0x3e   : > { %s2758_s21 = smov 48   ;;  %s2655_s7 = scalar_lea.hbm %s2911_s17, 48 }
  0x3f   : > { %2432 = dma.hbm_to_vmem [thread:$0]  (!%p2904_p0), %s4221_s0, 24576, %s137_s6, [#allocation3], %s2754_s20, %s2754_s20, %s2758_s21  }
  0x40   : > { %p2656_p3 = scmp.ne.s32.totalorder %s2911_s17, %s2655_s7  ;;  %p4249_p12 = pneg %p2827_p6 }
  0x41   : > { %s2660_s9 = scalar_lea.hbm %s4223_s2, 96  ;;  %p2661_p8 = scmp.lt.s32.totalorder %s2911_s17, %s4223_s2 }
  0x42   : > { %p2658_p13 = pnand %p2656_p3, %p4249_p12  ;;  %p2662_p1 = scmp.lt.s32.totalorder %s2660_s9, %s2655_s7 }
  0x44   : > { %p2659_p10 = pneg %p2658_p13  ;;  %p2663_p7 = por %p2662_p1, %p2661_p8 }
  0x46   : > { %p2664_p11 = pnand %p2663_p7, %p2659_p10 }
  0x48   : > { %2667 = shalt.err (!%p2664_p11)
}
  0x49   : > { %s2668_s20 = scalar_lea.vmem %s2913_s22, 48  ;;  %p4250_p3 = pmov %p4249_p12 }
  0x4a   : > { %p2669_p0 = scmp.ne.s32.totalorder %s2913_s22, %s2668_s20  ;;  %s2759_s6 = smov [#allocation7]  }
  0x4b   : > { %s2673_s23 = sshll.u32 %s2759_s6, 4  ;;  %s2674_s23 = int_to_ptr.vmem [resolvable:$false] %s2673_s23 }
  0x4c   : > { %p2671_p12 = pnand %p2669_p0, %p4250_p3  ;;  %s2675_s21 = scalar_lea.vmem %s2674_s23, 96 }
  0x4d   : > { %p2676_p5 = scmp.lt.s32.totalorder %s2913_s22, %s2674_s23  ;;  %p2677_p4 = scmp.lt.s32.totalorder %s2675_s21, %s2668_s20 }
  0x4e   : > { %p2672_p13 = pneg %p2671_p12 }
  0x4f   : > { %p2678_p2 = por %p2677_p4, %p2676_p5 }
  0x51   : > { %p2679_p8 = pnand %p2678_p2, %p2672_p13 }
  0x53   : > { %2682 = shalt.err (!%p2679_p8)
}
  0x54   : > { %2439 = dma.hbm_to_vmem [thread:$0]  (!%p2827_p6), %s2911_s17, 48, %s2913_s22, %s2838_s30  }
  0x55   : > { %192 = sbr.rel (%p2893_p9) target bundleno = 756 (0x2f4), region = 32 }
  0x5a   : > { %p4251_p10 = scmp.eq.s32.totalorder %s2867_s25, 0 }
  0x5c   : > { %2726 = dma.done.wait (%p4251_p10), [#allocation3], 24576   ;;  %p4252_p1 = pmov %p4251_p10 }
  0x5d   : > { %s198_s26 = sand.u32 1, %s2867_s25   ;;  %s2955_s5 = sand.u32 1, %s2743_s13  }
  0x5e   : > { %2728 = vsyncadd (%p4252_p1), [#allocation3], 4294942720  ;;  %s2416_s24 = smul.u32 2304, %s2955_s5  ;;  %s199_s7 = scalar_lea.sflag [#allocation6], %s198_s26 }
  0x5f   : > { %p4253_p6 = scmp.ne.s32.totalorder %s4244_s28, 0 }
  0x60   : > { %s2958_s8 = scalar_lea.vmem [#allocation5], %s2416_s24 }
  0x61   : > { %2730 = dma.done.wait (%p4253_p6), %s199_s7, 36912  }
  0x62   : > { %2732 = vsyncadd (%p4253_p6), %s199_s7, 4294930384  ;;  %v480_v0 = vld [vmem:[%s2958_s8 + $0x170] sm:$0xff]  ;;  %v479_v1 = vld [vmem:[%s2958_s8 + $0x168] sm:$0xff]  ;;  %s2417_s30 = smul.u32 3, %s2955_s5  ;;  %p4347_p4 = scmp.ne.s32.totalorder %s4245_s27, 0 }
  0x63   : > { %v576_v2 = vld [vmem:[%s2958_s8 + $0x470] sm:$0xff]  ;;  %739 = vmatprep.subr.mxu0 %v480_v0  ;;  %v477_v3 = vld [vmem:[%s2958_s8 + $0x158] sm:$0xff]  ;;  %v575_v4 = vld [vmem:[%s2958_s8 + $0x468] sm:$0xff]  ;;  %s2418_s4 = smul.u32 768, %s2955_s5  ;;  %s2761_s6 = smov [#allocation8]  }
  0x64   : > { %996 = vmatprep.subr.mxu1 %v576_v2  ;;  %v476_v5 = vld [vmem:[%s2958_s8 + $0x150] sm:$0xff]  ;;  %740 = vmatpush1.msra.mxu0 %v479_v1  ;;  %v573_v6 = vld [vmem:[%s2958_s8 + $0x458] sm:$0xff]  ;;  %v474_v7 = vld [vmem:[%s2958_s8 + $0x140] sm:$0xff]  ;;  %s3478_s28 = scalar_lea.vmem [#allocation7], %s2417_s30  ;;  %s2413_s22 = smul.u32 384, %s2867_s25 }
  0x65   : > { %997 = vmatpush1.msra.mxu1 %v575_v4  ;;  %v572_v8 = vld [vmem:[%s2958_s8 + $0x450] sm:$0xff]  ;;  %741 = vmatprep.subr.mxu0 %v477_v3  ;;  %v473_v9 = vld [vmem:[%s2958_s8 + $0x138] sm:$0xff]  ;;  %v570_v10 = vld [vmem:[%s2958_s8 + $0x440] sm:$0xff]  ;;  %s3854_s17 = scalar_lea.vmem [#allocation8], %s2418_s4  ;;  %s2282_s25 = scalar_lea.sflag [#allocation4], %s2955_s5 }
  0x66   : > { %998 = vmatprep.subr.mxu1 %v573_v6  ;;  %742 = vmatpush1.msra.mxu0 %v476_v5  ;;  %v471_v11 = vld [vmem:[%s2958_s8 + $0x128] sm:$0xff]  ;;  %v569_v12 = vld [vmem:[%s2958_s8 + $0x438] sm:$0xff]  ;;  %v470_v14 = vld [vmem:[%s2958_s8 + $0x120] sm:$0xff]  ;;  %s2295_s10 = sshll.u32 %s3854_s17, 4  ;;  %s4175_s18 = scalar_lea.hbm %s4224_s3, %s2413_s22  ;;  %s4177_s10 = int_to_ptr.vmem [resolvable:$true] %s2295_s10 }
  0x67   : > { %999 = vmatpush1.msra.mxu1 %v572_v8  ;;  %v567_v13 = vld [vmem:[%s2958_s8 + $0x428] sm:$0xff]  ;;  %743 = vmatprep.subr.mxu0 %v474_v7  ;;  %v566_v15 = vld [vmem:[%s2958_s8 + $0x420] sm:$0xff]  ;;  %v468_v16 = vld [vmem:[%s2958_s8 + $0x110] sm:$0xff]  ;;  %s2683_s20 = scalar_lea.vmem %s4177_s10, 12288  ;;  %s2687_s23 = sshll.u32 %s2761_s6, 4  ;;  %s2688_s23 = int_to_ptr.vmem [resolvable:$false] %s2687_s23 }
  0x68   : > { %1000 = vmatprep.subr.mxu1 %v570_v10  ;;  %744 = vmatpush1.msra.mxu0 %v473_v9  ;;  %v564_v17 = vld [vmem:[%s2958_s8 + $0x410] sm:$0xff]  ;;  %v467_v18 = vld [vmem:[%s2958_s8 + $0x108] sm:$0xff]  ;;  %v465_v20 = vld [vmem:[%s2958_s8 + $0xf8] sm:$0xff]  ;;  %p2684_p2 = scmp.ne.s32.totalorder %s4177_s10, %s2683_s20  ;;  %s2689_s21 = scalar_lea.vmem %s2688_s23, 24576 }
  0x69   : > { %1001 = vmatpush1.msra.mxu1 %v569_v12  ;;  %745 = vmatprep.subr.mxu0 %v471_v11  ;;  %v563_v19 = vld [vmem:[%s2958_s8 + $0x408] sm:$0xff]  ;;  %v561_v21 = vld [vmem:[%s2958_s8 + $0x3f8] sm:$0xff]  ;;  %v464_v22 = vld [vmem:[%s2958_s8 + $0xf0] sm:$0xff]  ;;  %p2690_p7 = scmp.lt.s32.totalorder %s4177_s10, %s2688_s23  ;;  %p2691_p11 = scmp.lt.s32.totalorder %s2689_s21, %s2683_s20 }
  0x6a   : > { %1002 = vmatprep.subr.mxu1 %v567_v13  ;;  %746 = vmatpush1.msra.mxu0 %v470_v14  ;;  %v560_v23 = vld [vmem:[%s2958_s8 + $0x3f0] sm:$0xff]  ;;  %v462_v24 = vld [vmem:[%s2958_s8 + $0xe0] sm:$0xff]  ;;  %v461_v26 = vld [vmem:[%s2958_s8 + $0xd8] sm:$0xff]  ;;  %p2685_p5 = pnand %p2684_p2, %p4347_p4 }
  0x6b   : > { %1003 = vmatpush1.msra.mxu1 %v566_v15  ;;  %747 = vmatprep.subr.mxu0 %v468_v16  ;;  %v558_v25 = vld [vmem:[%s2958_s8 + $0x3e0] sm:$0xff]  ;;  %v557_v27 = vld [vmem:[%s2958_s8 + $0x3d8] sm:$0xff]  ;;  %v459_v28 = vld [vmem:[%s2958_s8 + $0xc8] sm:$0xff]  ;;  %p2692_p0 = por %p2691_p11, %p2690_p7 }
  0x6c   : > { %1004 = vmatprep.subr.mxu1 %v564_v17  ;;  %748 = vmatpush1.msra.mxu0 %v467_v18  ;;  %v555_v29 = vld [vmem:[%s2958_s8 + $0x3c8] sm:$0xff]  ;;  %v458_v30 = vld [vmem:[%s2958_s8 + $0xc0] sm:$0xff]  ;;  %v456_v32 = vld [vmem:[%s2958_s8 + $0xb0] sm:$0xff]  ;;  %p2686_p9 = pneg %p2685_p5 }
  0x6d   : > { %1005 = vmatpush1.msra.mxu1 %v563_v19  ;;  %749 = vmatprep.subr.mxu0 %v465_v20  ;;  %v554_v31 = vld [vmem:[%s2958_s8 + $0x3c0] sm:$0xff]  ;;  %v552_v33 = vld [vmem:[%s2958_s8 + $0x3b0] sm:$0xff]  ;;  %v455_v34 = vld [vmem:[%s2958_s8 + $0xa8] sm:$0xff] }
  0x6e   : > { %1006 = vmatprep.subr.mxu1 %v561_v21  ;;  %750 = vmatpush1.msra.mxu0 %v464_v22  ;;  %v551_v35 = vld [vmem:[%s2958_s8 + $0x3a8] sm:$0xff]  ;;  %v453_v36 = vld [vmem:[%s2958_s8 + $0x98] sm:$0xff]  ;;  %v452_v38 = vld [vmem:[%s2958_s8 + $0x90] sm:$0xff]  ;;  %p2693_p3 = pnand %p2692_p0, %p2686_p9 }
  0x6f   : > { %1007 = vmatpush1.msra.mxu1 %v560_v23  ;;  %751 = vmatprep.subr.mxu0 %v462_v24  ;;  %v549_v37 = vld [vmem:[%s2958_s8 + $0x398] sm:$0xff]  ;;  %v548_v39 = vld [vmem:[%s2958_s8 + $0x390] sm:$0xff]  ;;  %v450_v40 = vld [vmem:[%s2958_s8 + $0x80] sm:$0xff] }
  0x70   : > { %1008 = vmatprep.subr.mxu1 %v558_v25  ;;  %752 = vmatpush1.msra.mxu0 %v461_v26  ;;  %v546_v41 = vld [vmem:[%s2958_s8 + $0x380] sm:$0xff]  ;;  %v449_v42 = vld [vmem:[%s2958_s8 + $0x78] sm:$0xff]  ;;  %v447_v44 = vld [vmem:[%s2958_s8 + $0x68] sm:$0xff] }
  0x71   : > { %1009 = vmatpush1.msra.mxu1 %v557_v27  ;;  %753 = vmatprep.subr.mxu0 %v459_v28  ;;  %v545_v43 = vld [vmem:[%s2958_s8 + $0x378] sm:$0xff]  ;;  %v543_v45 = vld [vmem:[%s2958_s8 + $0x368] sm:$0xff]  ;;  %v446_v46 = vld [vmem:[%s2958_s8 + $0x60] sm:$0xff] }
  0x72   : > { %1010 = vmatprep.subr.mxu1 %v555_v29  ;;  %754 = vmatpush1.msra.mxu0 %v458_v30  ;;  %v542_v47 = vld [vmem:[%s2958_s8 + $0x360] sm:$0xff]  ;;  %v444_v48 = vld [vmem:[%s2958_s8 + $0x50] sm:$0xff]  ;;  %v443_v50 = vld [vmem:[%s2958_s8 + $0x48] sm:$0xff] }
  0x73   : > { %1011 = vmatpush1.msra.mxu1 %v554_v31  ;;  %755 = vmatprep.subr.mxu0 %v456_v32  ;;  %v540_v49 = vld [vmem:[%s2958_s8 + $0x350] sm:$0xff]  ;;  %v539_v51 = vld [vmem:[%s2958_s8 + $0x348] sm:$0xff]  ;;  %v441_v52 = vld [vmem:[%s2958_s8 + $0x38] sm:$0xff] }
  0x74   : > { %1012 = vmatprep.subr.mxu1 %v552_v33  ;;  %756 = vmatpush1.msra.mxu0 %v455_v34  ;;  %v537_v53 = vld [vmem:[%s2958_s8 + $0x338] sm:$0xff]  ;;  %v440_v54 = vld [vmem:[%s2958_s8 + $0x30] sm:$0xff]  ;;  %v438_v56 = vld [vmem:[%s2958_s8 + $0x20] sm:$0xff] }
  0x75   : > { %1013 = vmatpush1.msra.mxu1 %v551_v35  ;;  %757 = vmatprep.subr.mxu0 %v453_v36  ;;  %v536_v55 = vld [vmem:[%s2958_s8 + $0x330] sm:$0xff]  ;;  %v534_v57 = vld [vmem:[%s2958_s8 + $0x320] sm:$0xff]  ;;  %v437_v58 = vld [vmem:[%s2958_s8 + $0x18] sm:$0xff] }
  0x76   : > { %1014 = vmatprep.subr.mxu1 %v549_v37  ;;  %758 = vmatpush1.msra.mxu0 %v452_v38  ;;  %v533_v59 = vld [vmem:[%s2958_s8 + $0x318] sm:$0xff]  ;;  %v435_v60 = vld [vmem:[%s2958_s8 + $0x8] sm:$0xff]  ;;  %v434_v62 = vld [vmem:[%s2958_s8] sm:$0xff] }
  0x77   : > { %1015 = vmatpush1.msra.mxu1 %v548_v39  ;;  %759 = vmatprep.subr.mxu0 %v450_v40  ;;  %v531_v61 = vld [vmem:[%s2958_s8 + $0x308] sm:$0xff]  ;;  %v530_v63 = vld [vmem:[%s2958_s8 + $0x300] sm:$0xff]  ;;  %v528_v0 = vld [vmem:[%s2958_s8 + $0x2f0] sm:$0xff] }
  0x78   : > { %1016 = vmatprep.subr.mxu1 %v546_v41  ;;  %760 = vmatpush1.msra.mxu0 %v449_v42  ;;  %v624_v1 = vld [vmem:[%s2958_s8 + $0x5f0] sm:$0xff]  ;;  %v527_v2 = vld [vmem:[%s2958_s8 + $0x2e8] sm:$0xff]  ;;  %v525_v4 = vld [vmem:[%s2958_s8 + $0x2d8] sm:$0xff] }
  0x79   : > { %1017 = vmatpush1.msra.mxu1 %v545_v43  ;;  %761 = vmatprep.subr.mxu0 %v447_v44  ;;  %v623_v3 = vld [vmem:[%s2958_s8 + $0x5e8] sm:$0xff]  ;;  %v621_v5 = vld [vmem:[%s2958_s8 + $0x5d8] sm:$0xff]  ;;  %v524_v6 = vld [vmem:[%s2958_s8 + $0x2d0] sm:$0xff] }
  0x7a   : > { %1018 = vmatprep.subr.mxu1 %v543_v45  ;;  %762 = vmatpush1.msra.mxu0 %v446_v46  ;;  %v620_v7 = vld [vmem:[%s2958_s8 + $0x5d0] sm:$0xff]  ;;  %v522_v8 = vld [vmem:[%s2958_s8 + $0x2c0] sm:$0xff]  ;;  %v521_v10 = vld [vmem:[%s2958_s8 + $0x2b8] sm:$0xff] }
  0x7b   : > { %1019 = vmatpush1.msra.mxu1 %v542_v47  ;;  %763 = vmatprep.subr.mxu0 %v444_v48  ;;  %v618_v9 = vld [vmem:[%s2958_s8 + $0x5c0] sm:$0xff]  ;;  %v617_v11 = vld [vmem:[%s2958_s8 + $0x5b8] sm:$0xff]  ;;  %v519_v12 = vld [vmem:[%s2958_s8 + $0x2a8] sm:$0xff] }
  0x7c   : > { %1020 = vmatprep.subr.mxu1 %v540_v49  ;;  %764 = vmatpush1.msra.mxu0 %v443_v50  ;;  %v615_v13 = vld [vmem:[%s2958_s8 + $0x5a8] sm:$0xff]  ;;  %v518_v14 = vld [vmem:[%s2958_s8 + $0x2a0] sm:$0xff]  ;;  %v516_v16 = vld [vmem:[%s2958_s8 + $0x290] sm:$0xff] }
  0x7d   : > { %1021 = vmatpush1.msra.mxu1 %v539_v51  ;;  %765 = vmatprep.subr.mxu0 %v441_v52  ;;  %v614_v15 = vld [vmem:[%s2958_s8 + $0x5a0] sm:$0xff]  ;;  %v612_v17 = vld [vmem:[%s2958_s8 + $0x590] sm:$0xff]  ;;  %v515_v18 = vld [vmem:[%s2958_s8 + $0x288] sm:$0xff] }
  0x7e   : > { %1022 = vmatprep.subr.mxu1 %v537_v53  ;;  %766 = vmatpush1.msra.mxu0 %v440_v54  ;;  %v611_v19 = vld [vmem:[%s2958_s8 + $0x588] sm:$0xff]  ;;  %v513_v20 = vld [vmem:[%s2958_s8 + $0x278] sm:$0xff]  ;;  %v512_v22 = vld [vmem:[%s2958_s8 + $0x270] sm:$0xff] }
  0x7f   : > { %1023 = vmatpush1.msra.mxu1 %v536_v55  ;;  %767 = vmatprep.subr.mxu0 %v438_v56  ;;  %v609_v21 = vld [vmem:[%s2958_s8 + $0x578] sm:$0xff]  ;;  %v608_v23 = vld [vmem:[%s2958_s8 + $0x570] sm:$0xff]  ;;  %v510_v24 = vld [vmem:[%s2958_s8 + $0x260] sm:$0xff] }
  0x80   : > { %1024 = vmatprep.subr.mxu1 %v534_v57  ;;  %768 = vmatpush1.msra.mxu0 %v437_v58  ;;  %v606_v25 = vld [vmem:[%s2958_s8 + $0x560] sm:$0xff]  ;;  %v509_v26 = vld [vmem:[%s2958_s8 + $0x258] sm:$0xff]  ;;  %v507_v28 = vld [vmem:[%s2958_s8 + $0x248] sm:$0xff] }
  0x81   : > { %1025 = vmatpush1.msra.mxu1 %v533_v59  ;;  %769 = vmatprep.subr.mxu0 %v435_v60  ;;  %v605_v27 = vld [vmem:[%s2958_s8 + $0x558] sm:$0xff]  ;;  %v603_v29 = vld [vmem:[%s2958_s8 + $0x548] sm:$0xff]  ;;  %v506_v30 = vld [vmem:[%s2958_s8 + $0x240] sm:$0xff] }
  0x82   : > { %1026 = vmatprep.subr.mxu1 %v531_v61  ;;  %770 = vmatpush1.msra.mxu0 %v434_v62  ;;  %v602_v31 = vld [vmem:[%s2958_s8 + $0x540] sm:$0xff]  ;;  %v504_v32 = vld [vmem:[%s2958_s8 + $0x230] sm:$0xff]  ;;  %v503_v34 = vld [vmem:[%s2958_s8 + $0x228] sm:$0xff] }
  0x83   : > { %1027 = vmatpush1.msra.mxu1 %v530_v63  ;;  %771 = vmatprep.subr.mxu0 %v528_v0  ;;  %v600_v33 = vld [vmem:[%s2958_s8 + $0x530] sm:$0xff]  ;;  %v599_v35 = vld [vmem:[%s2958_s8 + $0x528] sm:$0xff]  ;;  %v501_v36 = vld [vmem:[%s2958_s8 + $0x218] sm:$0xff] }
  0x84   : > { %1028 = vmatprep.subr.mxu1 %v624_v1  ;;  %772 = vmatpush2.msra.mxu0 %v527_v2  ;;  %v597_v37 = vld [vmem:[%s2958_s8 + $0x518] sm:$0xff]  ;;  %v500_v38 = vld [vmem:[%s2958_s8 + $0x210] sm:$0xff]  ;;  %v498_v40 = vld [vmem:[%s2958_s8 + $0x200] sm:$0xff] }
  0x85   : > { %1029 = vmatpush2.msra.mxu1 %v623_v3  ;;  %773 = vmatprep.subr.mxu0 %v525_v4  ;;  %v596_v39 = vld [vmem:[%s2958_s8 + $0x510] sm:$0xff]  ;;  %v594_v41 = vld [vmem:[%s2958_s8 + $0x500] sm:$0xff]  ;;  %v497_v42 = vld [vmem:[%s2958_s8 + $0x1f8] sm:$0xff] }
  0x86   : > { %1030 = vmatprep.subr.mxu1 %v621_v5  ;;  %774 = vmatpush2.msra.mxu0 %v524_v6  ;;  %v593_v43 = vld [vmem:[%s2958_s8 + $0x4f8] sm:$0xff]  ;;  %v495_v44 = vld [vmem:[%s2958_s8 + $0x1e8] sm:$0xff]  ;;  %v494_v46 = vld [vmem:[%s2958_s8 + $0x1e0] sm:$0xff] }
  0x87   : > { %1031 = vmatpush2.msra.mxu1 %v620_v7  ;;  %775 = vmatprep.subr.mxu0 %v522_v8  ;;  %v591_v45 = vld [vmem:[%s2958_s8 + $0x4e8] sm:$0xff]  ;;  %v590_v47 = vld [vmem:[%s2958_s8 + $0x4e0] sm:$0xff]  ;;  %v492_v48 = vld [vmem:[%s2958_s8 + $0x1d0] sm:$0xff] }
  0x88   : > { %1032 = vmatprep.subr.mxu1 %v618_v9  ;;  %776 = vmatpush2.msra.mxu0 %v521_v10  ;;  %v588_v49 = vld [vmem:[%s2958_s8 + $0x4d0] sm:$0xff]  ;;  %v491_v50 = vld [vmem:[%s2958_s8 + $0x1c8] sm:$0xff]  ;;  %v489_v52 = vld [vmem:[%s2958_s8 + $0x1b8] sm:$0xff] }
  0x89   : > { %1033 = vmatpush2.msra.mxu1 %v617_v11  ;;  %777 = vmatprep.subr.mxu0 %v519_v12  ;;  %v587_v51 = vld [vmem:[%s2958_s8 + $0x4c8] sm:$0xff]  ;;  %v585_v53 = vld [vmem:[%s2958_s8 + $0x4b8] sm:$0xff]  ;;  %v488_v54 = vld [vmem:[%s2958_s8 + $0x1b0] sm:$0xff]  ;;  %v4229_v11 = vmov 0.0  }
  0x8a   : > { %1034 = vmatprep.subr.mxu1 %v615_v13  ;;  %778 = vmatpush2.msra.mxu0 %v518_v14  ;;  %v584_v55 = vld [vmem:[%s2958_s8 + $0x4b0] sm:$0xff]  ;;  %v486_v56 = vld [vmem:[%s2958_s8 + $0x1a0] sm:$0xff]  ;;  %v485_v58 = vld [vmem:[%s2958_s8 + $0x198] sm:$0xff] }
  0x8b   : > { %1035 = vmatpush2.msra.mxu1 %v614_v15  ;;  %779 = vmatprep.subr.mxu0 %v516_v16  ;;  %v582_v57 = vld [vmem:[%s2958_s8 + $0x4a0] sm:$0xff]  ;;  %v581_v59 = vld [vmem:[%s2958_s8 + $0x498] sm:$0xff]  ;;  %v483_v60 = vld [vmem:[%s2958_s8 + $0x188] sm:$0xff] }
  0x8c   : > { %1036 = vmatprep.subr.mxu1 %v612_v17  ;;  %780 = vmatpush2.msra.mxu0 %v515_v18  ;;  %v3089_v61 = vld [vmem:[#allocation2 + $0x8] sm:$0xff]  ;;  %v482_v62 = vld [vmem:[%s2958_s8 + $0x180] sm:$0xff]  ;;  %v245_v2 = vld [vmem:[#allocation2 + $0x18] sm:$0xff] }
  0x8d   : > { %1037 = vmatpush2.msra.mxu1 %v611_v19  ;;  %781 = vmatprep.subr.mxu0 %v513_v20  ;;  %v579_v63 = vld [vmem:[%s2958_s8 + $0x488] sm:$0xff]  ;;  %v3093_v0 = vld [vmem:[#allocation2] sm:$0xff]  ;;  %v672_v3 = vld [vmem:[%s2958_s8 + $0x770] sm:$0xff] }
  0x8e   : > { %1038 = vmatprep.subr.mxu1 %v609_v21  ;;  %782 = vmatpush2.msra.mxu0 %v512_v22  ;;  %v578_v1 = vld [vmem:[%s2958_s8 + $0x480] sm:$0xff]  ;;  %v244_v4 = vld [vmem:[#allocation2 + $0x10] sm:$0xff]  ;;  %v671_v5 = vld [vmem:[%s2958_s8 + $0x768] sm:$0xff] }
  0x8f   : > { %1039 = vmatpush2.msra.mxu1 %v608_v23  ;;  %783 = vmatprep.subr.mxu0 %v510_v24  ;;  %v3100_v6 = vld [vmem:[#allocation2 + $0x38] sm:$0xff]  ;;  %v3103_v8 = vld [vmem:[#allocation2 + $0x30] sm:$0xff]  ;;  %v251_v9 = vld [vmem:[#allocation2 + $0x48] sm:$0xff] }
  0x90   : > { %1040 = vmatprep.subr.mxu1 %v606_v25  ;;  %784 = vmatpush2.msra.mxu0 %v509_v26  ;;  %v481_v7 = vld [vmem:[%s2958_s8 + $0x178] sm:$0xff]  ;;  %v250_v12 = vld [vmem:[#allocation2 + $0x40] sm:$0xff]  ;;  %v668_v13 = vld [vmem:[%s2958_s8 + $0x750] sm:$0xff] }
  0x91   : > { %1041 = vmatpush2.msra.mxu1 %v605_v27  ;;  %785 = vmatprep.subr.mxu0 %v507_v28  ;;  %v669_v10 = vld [vmem:[%s2958_s8 + $0x758] sm:$0xff]  ;;  %v3110_v14 = vld [vmem:[#allocation2 + $0x68] sm:$0xff]  ;;  %v478_v15 = vld [vmem:[%s2958_s8 + $0x160] sm:$0xff] }
  0x92   : > { %1042 = vmatprep.subr.mxu1 %v603_v29  ;;  %786 = vmatpush2.msra.mxu0 %v506_v30  ;;  %v3113_v16 = vld [vmem:[#allocation2 + $0x60] sm:$0xff]  ;;  %v257_v17 = vld [vmem:[#allocation2 + $0x78] sm:$0xff]  ;;  %v256_v19 = vld [vmem:[#allocation2 + $0x70] sm:$0xff] }
  0x93   : > { %1043 = vmatpush2.msra.mxu1 %v602_v31  ;;  %787 = vmatprep.subr.mxu0 %v504_v32  ;;  %v666_v18 = vld [vmem:[%s2958_s8 + $0x740] sm:$0xff]  ;;  %v665_v20 = vld [vmem:[%s2958_s8 + $0x738] sm:$0xff]  ;;  %v475_v22 = vld [vmem:[%s2958_s8 + $0x148] sm:$0xff] }
  0x94   : > { %1044 = vmatprep.subr.mxu1 %v600_v33  ;;  %788 = vmatpush2.msra.mxu0 %v503_v34  ;;  %v3120_v21 = vld [vmem:[#allocation2 + $0x98] sm:$0xff]  ;;  %v3123_v23 = vld [vmem:[#allocation2 + $0x90] sm:$0xff]  ;;  %v263_v24 = vld [vmem:[#allocation2 + $0xa8] sm:$0xff] }
  0x95   : > { %1045 = vmatpush2.msra.mxu1 %v599_v35  ;;  %789 = vmatprep.subr.mxu0 %v501_v36  ;;  %v663_v25 = vld [vmem:[%s2958_s8 + $0x728] sm:$0xff]  ;;  %v262_v26 = vld [vmem:[#allocation2 + $0xa0] sm:$0xff]  ;;  %v472_v29 = vld [vmem:[%s2958_s8 + $0x130] sm:$0xff] }
  0x96   : > { %1046 = vmatprep.subr.mxu1 %v597_v37  ;;  %790 = vmatpush2.msra.mxu0 %v500_v38  ;;  %v662_v27 = vld [vmem:[%s2958_s8 + $0x720] sm:$0xff]  ;;  %v3130_v28 = vld [vmem:[#allocation2 + $0xc8] sm:$0xff]  ;;  %v269_v31 = vld [vmem:[#allocation2 + $0xd8] sm:$0xff] }
  0x97   : > { %1047 = vmatpush2.msra.mxu1 %v596_v39  ;;  %791 = vmatprep.subr.mxu0 %v498_v40  ;;  %v3133_v30 = vld [vmem:[#allocation2 + $0xc0] sm:$0xff]  ;;  %v660_v32 = vld [vmem:[%s2958_s8 + $0x710] sm:$0xff]  ;;  %v659_v34 = vld [vmem:[%s2958_s8 + $0x708] sm:$0xff] }
  0x98   : > { %1048 = vmatprep.subr.mxu1 %v594_v41  ;;  %792 = vmatpush2.msra.mxu0 %v497_v42  ;;  %v268_v33 = vld [vmem:[#allocation2 + $0xd0] sm:$0xff]  ;;  %v3140_v35 = vld [vmem:[#allocation2 + $0xf8] sm:$0xff]  ;;  %v275_v38 = vld [vmem:[#allocation2 + $0x108] sm:$0xff] }
  0x99   : > { %1049 = vmatpush2.msra.mxu1 %v593_v43  ;;  %793 = vmatprep.subr.mxu0 %v495_v44  ;;  %v469_v36 = vld [vmem:[%s2958_s8 + $0x118] sm:$0xff]  ;;  %v3143_v37 = vld [vmem:[#allocation2 + $0xf0] sm:$0xff]  ;;  %v274_v40 = vld [vmem:[#allocation2 + $0x100] sm:$0xff] }
  0x9a   : > { %1050 = vmatprep.subr.mxu1 %v591_v45  ;;  %794 = vmatpush2.msra.mxu0 %v494_v46  ;;  %v657_v39 = vld [vmem:[%s2958_s8 + $0x6f8] sm:$0xff]  ;;  %v656_v41 = vld [vmem:[%s2958_s8 + $0x6f0] sm:$0xff]  ;;  %v3150_v42 = vld [vmem:[#allocation2 + $0x128] sm:$0xff] }
  0x9b   : > { %1051 = vmatpush2.msra.mxu1 %v590_v47  ;;  %795 = vmatprep.subr.mxu0 %v492_v48  ;;  %v466_v43 = vld [vmem:[%s2958_s8 + $0x100] sm:$0xff]  ;;  %v281_v45 = vld [vmem:[#allocation2 + $0x138] sm:$0xff]  ;;  %v280_v47 = vld [vmem:[#allocation2 + $0x130] sm:$0xff] }
  0x9c   : > { %1052 = vmatprep.subr.mxu1 %v588_v49  ;;  %796 = vmatpush2.msra.mxu0 %v491_v50  ;;  %v3153_v44 = vld [vmem:[#allocation2 + $0x120] sm:$0xff]  ;;  %v653_v48 = vld [vmem:[%s2958_s8 + $0x6d8] sm:$0xff]  ;;  %v463_v50 = vld [vmem:[%s2958_s8 + $0xe8] sm:$0xff] }
  0x9d   : > { %1053 = vmatpush2.msra.mxu1 %v587_v51  ;;  %797 = vmatprep.subr.mxu0 %v489_v52  ;;  %v654_v46 = vld [vmem:[%s2958_s8 + $0x6e0] sm:$0xff]  ;;  %v3160_v49 = vld [vmem:[#allocation2 + $0x158] sm:$0xff]  ;;  %v3163_v51 = vld [vmem:[#allocation2 + $0x150] sm:$0xff] }
  0x9e   : > { %1054 = vmatprep.subr.mxu1 %v585_v53  ;;  %798 = vmatpush2.msra.mxu0 %v488_v54  ;;  %v287_v52 = vld [vmem:[#allocation2 + $0x168] sm:$0xff]  ;;  %v286_v54 = vld [vmem:[#allocation2 + $0x160] sm:$0xff] }
  0x9f   : > { %1055 = vmatpush2.msra.mxu1 %v584_v55  ;;  %799 = vmatprep.subr.mxu0 %v486_v56  ;;  %v651_v53 = vld [vmem:[%s2958_s8 + $0x6c8] sm:$0xff]  ;;  %v650_v55 = vld [vmem:[%s2958_s8 + $0x6c0] sm:$0xff] }
  0xa0   : > { %1056 = vmatprep.subr.mxu1 %v582_v57  ;;  %800 = vmatpush2.msra.mxu0 %v485_v58  ;;  %v3170_v56 = vld [vmem:[#allocation2 + $0x188] sm:$0xff]  ;;  %v460_v57 = vld [vmem:[%s2958_s8 + $0xd0] sm:$0xff]  ;;  %v3173_v58 = vld [vmem:[#allocation2 + $0x180] sm:$0xff] }
  0xa1   : > { %1057 = vmatpush2.msra.mxu1 %v581_v59  ;;  %801 = vmatprep.subr.mxu0 %v483_v60  ;;  %v293_v59 = vld [vmem:[#allocation2 + $0x198] sm:$0xff]  ;;  %v648_v60 = vld [vmem:[%s2958_s8 + $0x6b0] sm:$0xff] }
  0xa2   : > { %803 = vmatprep.mubr.f32.mxu0 %v3089_v61  ;;  %802 = vmatpush2.msra.mxu0 %v482_v62  ;;  %v292_v62 = vld [vmem:[#allocation2 + $0x190] sm:$0xff] }
  0xa3   : > { %1058 = vmatprep.subr.mxu1 %v579_v63  ;;  %804 = vmatmul.mubr.f32.vlgmr.msra.gmra.mxu0 %v3093_v0  ;;  %v647_v63 = vld [vmem:[%s2958_s8 + $0x6a8] sm:$0xff] }
  0xa4   : > { %1059 = vmatpush2.msra.mxu1 %v578_v1  ;;  %1060 = vmatprep.mubr.f32.mxu1 %v245_v2  ;;  %v3180_v1 = vld [vmem:[#allocation2 + $0x1b8] sm:$0xff] }
  0xa5   : > { %1253 = vmatprep.subr.mxu0 %v672_v3  ;;  %1061 = vmatmul.mubr.f32.vlgmr.msra.gmra.mxu1 %v244_v4  ;;  %v457_v2 = vld [vmem:[%s2958_s8 + $0xb8] sm:$0xff]  ;;  %v3183_v3 = vld [vmem:[#allocation2 + $0x1b0] sm:$0xff]  ;;  %v299_v4 = vld [vmem:[#allocation2 + $0x1c8] sm:$0xff] }
  0xa6   : > { %1254 = vmatpush1.msra.mxu0 %v671_v5  ;;  %1510 = vmatprep.subr.mxu1 %v4229_v11  ;;  %v645_v5 = vld [vmem:[%s2958_s8 + $0x698] sm:$0xff] }
  0xa7   : > { %809 = vmatprep.mubr.f32.mxu0 %v3100_v6  ;;  %1511 = vmatpush1.msra.mxu1 %v481_v7  ;;  %v298_v7 = vld [vmem:[#allocation2 + $0x1c0] sm:$0xff] }
  0xa8   : > { %810 = vmatmul.mubr.f32.gmra.mxu0 %v3103_v8  ;;  %1066 = vmatprep.mubr.f32.mxu1 %v251_v9  ;;  %v644_v9 = vld [vmem:[%s2958_s8 + $0x690] sm:$0xff] }
  0xa9   : > { %1255 = vmatprep.subr.mxu0 %v669_v10  ;;  %1067 = vmatmul.mubr.f32.gmra.mxu1 %v250_v12  ;;  %v3190_v10 = vld [vmem:[#allocation2 + $0x1e8] sm:$0xff]  ;;  %v454_v12 = vld [vmem:[%s2958_s8 + $0xa0] sm:$0xff] }
  0xaa   : > { %1256 = vmatpush1.msra.mxu0 %v668_v13  ;;  %1512 = vmatprep.subr.mxu1 %v4229_v11  ;;  %v3193_v13 = vld [vmem:[#allocation2 + $0x1e0] sm:$0xff] }
  0xab   : > { %815 = vmatprep.mubr.f32.mxu0 %v3110_v14  ;;  %1513 = vmatpush1.msra.mxu1 %v478_v15  ;;  %v305_v15 = vld [vmem:[#allocation2 + $0x1f8] sm:$0xff] }
  0xac   : > { %816 = vmatmul.mubr.f32.gmra.mxu0 %v3113_v16  ;;  %1072 = vmatprep.mubr.f32.mxu1 %v257_v17  ;;  %v642_v17 = vld [vmem:[%s2958_s8 + $0x680] sm:$0xff] }
  0xad   : > { %1257 = vmatprep.subr.mxu0 %v666_v18  ;;  %1073 = vmatmul.mubr.f32.gmra.mxu1 %v256_v19  ;;  %v304_v18 = vld [vmem:[#allocation2 + $0x1f0] sm:$0xff]  ;;  %v641_v19 = vld [vmem:[%s2958_s8 + $0x678] sm:$0xff] }
  0xae   : > { %1258 = vmatpush1.msra.mxu0 %v665_v20  ;;  %1514 = vmatprep.subr.mxu1 %v4229_v11  ;;  %v3200_v20 = vld [vmem:[#allocation2 + $0x218] sm:$0xff] }
  0xaf   : > { %821 = vmatprep.mubr.f32.mxu0 %v3120_v21  ;;  %1515 = vmatpush1.msra.mxu1 %v475_v22  ;;  %v451_v22 = vld [vmem:[%s2958_s8 + $0x88] sm:$0xff] }
  0xb0   : > { %822 = vmatmul.mubr.f32.gmra.mxu0 %v3123_v23  ;;  %1078 = vmatprep.mubr.f32.mxu1 %v263_v24  ;;  %v3203_v24 = vld [vmem:[#allocation2 + $0x210] sm:$0xff] }
  0xb1   : > { %1259 = vmatprep.subr.mxu0 %v663_v25  ;;  %1079 = vmatmul.mubr.f32.gmra.mxu1 %v262_v26  ;;  %v311_v25 = vld [vmem:[#allocation2 + $0x228] sm:$0xff] }
  0xb2   : > { %1260 = vmatpush1.msra.mxu0 %v662_v27  ;;  %1516 = vmatprep.subr.mxu1 %v4229_v11  ;;  %v639_v26 = vld [vmem:[%s2958_s8 + $0x668] sm:$0xff]  ;;  %v310_v27 = vld [vmem:[#allocation2 + $0x220] sm:$0xff] }
  0xb3   : > { %827 = vmatprep.mubr.f32.mxu0 %v3130_v28  ;;  %1517 = vmatpush1.msra.mxu1 %v472_v29  ;;  %v638_v29 = vld [vmem:[%s2958_s8 + $0x660] sm:$0xff] }
  0xb4   : > { %828 = vmatmul.mubr.f32.gmra.mxu0 %v3133_v30  ;;  %1084 = vmatprep.mubr.f32.mxu1 %v269_v31  ;;  %v3210_v31 = vld [vmem:[#allocation2 + $0x248] sm:$0xff] }
  0xb5   : > { %1261 = vmatprep.subr.mxu0 %v660_v32  ;;  %1085 = vmatmul.mubr.f32.gmra.mxu1 %v268_v33  ;;  %v448_v32 = vld [vmem:[%s2958_s8 + $0x70] sm:$0xff]  ;;  %v3213_v33 = vld [vmem:[#allocation2 + $0x240] sm:$0xff] }
  0xb6   : > { %1262 = vmatpush1.msra.mxu0 %v659_v34  ;;  %1518 = vmatprep.subr.mxu1 %v4229_v11  ;;  %v317_v34 = vld [vmem:[#allocation2 + $0x258] sm:$0xff] }
  0xb7   : > { %833 = vmatprep.mubr.f32.mxu0 %v3140_v35  ;;  %1519 = vmatpush1.msra.mxu1 %v469_v36  ;;  %v636_v36 = vld [vmem:[%s2958_s8 + $0x650] sm:$0xff] }
  0xb8   : > { %834 = vmatmul.mubr.f32.gmra.mxu0 %v3143_v37  ;;  %1090 = vmatprep.mubr.f32.mxu1 %v275_v38  ;;  %v316_v38 = vld [vmem:[#allocation2 + $0x250] sm:$0xff] }
  0xb9   : > { %1263 = vmatprep.subr.mxu0 %v657_v39  ;;  %1091 = vmatmul.mubr.f32.gmra.mxu1 %v274_v40  ;;  %v635_v39 = vld [vmem:[%s2958_s8 + $0x648] sm:$0xff]  ;;  %v3220_v40 = vld [vmem:[#allocation2 + $0x278] sm:$0xff] }
  0xba   : > { %1264 = vmatpush1.msra.mxu0 %v656_v41  ;;  %1520 = vmatprep.subr.mxu1 %v4229_v11  ;;  %v445_v41 = vld [vmem:[%s2958_s8 + $0x58] sm:$0xff] }
  0xbb   : > { %839 = vmatprep.mubr.f32.mxu0 %v3150_v42  ;;  %1521 = vmatpush1.msra.mxu1 %v466_v43  ;;  %v3223_v43 = vld [vmem:[#allocation2 + $0x270] sm:$0xff] }
  0xbc   : > { %840 = vmatmul.mubr.f32.gmra.mxu0 %v3153_v44  ;;  %1096 = vmatprep.mubr.f32.mxu1 %v281_v45  ;;  %v323_v45 = vld [vmem:[#allocation2 + $0x288] sm:$0xff] }
  0xbd   : > { %1265 = vmatprep.subr.mxu0 %v654_v46  ;;  %1097 = vmatmul.mubr.f32.gmra.mxu1 %v280_v47  ;;  %v633_v46 = vld [vmem:[%s2958_s8 + $0x638] sm:$0xff]  ;;  %v322_v47 = vld [vmem:[#allocation2 + $0x280] sm:$0xff] }
  0xbe   : > { %1266 = vmatpush1.msra.mxu0 %v653_v48  ;;  %1522 = vmatprep.subr.mxu1 %v4229_v11  ;;  %v632_v48 = vld [vmem:[%s2958_s8 + $0x630] sm:$0xff] }
  0xbf   : > { %845 = vmatprep.mubr.f32.mxu0 %v3160_v49  ;;  %1523 = vmatpush1.msra.mxu1 %v463_v50  ;;  %v3230_v50 = vld [vmem:[#allocation2 + $0x2a8] sm:$0xff] }
  0xc0   : > { %846 = vmatmul.mubr.f32.gmra.mxu0 %v3163_v51  ;;  %1102 = vmatprep.mubr.f32.mxu1 %v287_v52  ;;  %v442_v52 = vld [vmem:[%s2958_s8 + $0x40] sm:$0xff] }
  0xc1   : > { %1267 = vmatprep.subr.mxu0 %v651_v53  ;;  %1103 = vmatmul.mubr.f32.gmra.mxu1 %v286_v54  ;;  %v3233_v53 = vld [vmem:[#allocation2 + $0x2a0] sm:$0xff]  ;;  %v329_v54 = vld [vmem:[#allocation2 + $0x2b8] sm:$0xff] }
  0xc2   : > { %1268 = vmatpush1.msra.mxu0 %v650_v55  ;;  %1524 = vmatprep.subr.mxu1 %v4229_v11  ;;  %v630_v55 = vld [vmem:[%s2958_s8 + $0x620] sm:$0xff] }
  0xc3   : > { %851 = vmatprep.mubr.f32.mxu0 %v3170_v56  ;;  %1525 = vmatpush1.msra.mxu1 %v460_v57  ;;  %v328_v57 = vld [vmem:[#allocation2 + $0x2b0] sm:$0xff] }
  0xc4   : > { %852 = vmatmul.mubr.f32.gmra.mxu0 %v3173_v58  ;;  %1108 = vmatprep.mubr.f32.mxu1 %v293_v59  ;;  %v629_v59 = vld [vmem:[%s2958_s8 + $0x618] sm:$0xff] }
  0xc5   : > { %1269 = vmatprep.subr.mxu0 %v648_v60  ;;  %1109 = vmatmul.mubr.f32.gmra.mxu1 %v292_v62  ;;  %v3240_v60 = vld [vmem:[#allocation2 + $0x2d8] sm:$0xff]  ;;  %v439_v62 = vld [vmem:[%s2958_s8 + $0x28] sm:$0xff] }
  0xc6   : > { %1270 = vmatpush1.msra.mxu0 %v647_v63  ;;  %1526 = vmatprep.subr.mxu1 %v4229_v11  ;;  %v3243_v63 = vld [vmem:[#allocation2 + $0x2d0] sm:$0xff] }
  0xc7   : > { %857 = vmatprep.mubr.f32.mxu0 %v3180_v1  ;;  %1527 = vmatpush1.msra.mxu1 %v457_v2  ;;  %v335_v2 = vld [vmem:[#allocation2 + $0x2e8] sm:$0xff] }
  0xc8   : > { %858 = vmatmul.mubr.f32.gmra.mxu0 %v3183_v3  ;;  %1114 = vmatprep.mubr.f32.mxu1 %v299_v4  ;;  %v627_v4 = vld [vmem:[%s2958_s8 + $0x608] sm:$0xff] }
  0xc9   : > { %1271 = vmatprep.subr.mxu0 %v645_v5  ;;  %1115 = vmatmul.mubr.f32.gmra.mxu1 %v298_v7  ;;  %v334_v5 = vld [vmem:[#allocation2 + $0x2e0] sm:$0xff] }
  0xca   : > { %1272 = vmatpush1.msra.mxu0 %v644_v9  ;;  %1528 = vmatprep.subr.mxu1 %v4229_v11  ;;  %v626_v7 = vld [vmem:[%s2958_s8 + $0x600] sm:$0xff]  ;;  %v3250_v9 = vld [vmem:[#allocation2 + $0x308] sm:$0xff] }
  0xcb   : > { %863 = vmatprep.mubr.f32.mxu0 %v3190_v10  ;;  %1529 = vmatpush1.msra.mxu1 %v454_v12  ;;  %v436_v12 = vld [vmem:[%s2958_s8 + $0x10] sm:$0xff] }
  0xcc   : > { %864 = vmatmul.mubr.f32.gmra.mxu0 %v3193_v13  ;;  %1120 = vmatprep.mubr.f32.mxu1 %v305_v15  ;;  %v3253_v15 = vld [vmem:[#allocation2 + $0x300] sm:$0xff] }
  0xcd   : > { %1273 = vmatprep.subr.mxu0 %v642_v17  ;;  %1121 = vmatmul.mubr.f32.gmra.mxu1 %v304_v18  ;;  %v341_v17 = vld [vmem:[#allocation2 + $0x318] sm:$0xff]  ;;  %v720_v18 = vld [vmem:[%s2958_s8 + $0x8f0] sm:$0xff] }
  0xce   : > { %1274 = vmatpush1.msra.mxu0 %v641_v19  ;;  %1530 = vmatprep.subr.mxu1 %v4229_v11  ;;  %v340_v19 = vld [vmem:[#allocation2 + $0x310] sm:$0xff] }
  0xcf   : > { %869 = vmatprep.mubr.f32.mxu0 %v3200_v20  ;;  %1531 = vmatpush1.msra.mxu1 %v451_v22  ;;  %v719_v22 = vld [vmem:[%s2958_s8 + $0x8e8] sm:$0xff] }
  0xd0   : > { %870 = vmatmul.mubr.f32.gmra.mxu0 %v3203_v24  ;;  %1126 = vmatprep.mubr.f32.mxu1 %v311_v25  ;;  %v3260_v25 = vld [vmem:[#allocation2 + $0x338] sm:$0xff] }
  0xd1   : > { %1275 = vmatprep.subr.mxu0 %v639_v26  ;;  %1127 = vmatmul.mubr.f32.gmra.mxu1 %v310_v27  ;;  %v529_v26 = vld [vmem:[%s2958_s8 + $0x2f8] sm:$0xff]  ;;  %v3263_v27 = vld [vmem:[#allocation2 + $0x330] sm:$0xff] }
  0xd2   : > { %1276 = vmatpush1.msra.mxu0 %v638_v29  ;;  %1532 = vmatprep.subr.mxu1 %v4229_v11  ;;  %v347_v29 = vld [vmem:[#allocation2 + $0x348] sm:$0xff] }
  0xd3   : > { %875 = vmatprep.mubr.f32.mxu0 %v3210_v31  ;;  %1533 = vmatpush1.msra.mxu1 %v448_v32  ;;  %v717_v32 = vld [vmem:[%s2958_s8 + $0x8d8] sm:$0xff] }
  0xd4   : > { %876 = vmatmul.mubr.f32.gmra.mxu0 %v3213_v33  ;;  %1132 = vmatprep.mubr.f32.mxu1 %v317_v34  ;;  %v346_v34 = vld [vmem:[#allocation2 + $0x340] sm:$0xff] }
  0xd5   : > { %1277 = vmatprep.subr.mxu0 %v636_v36  ;;  %1133 = vmatmul.mubr.f32.gmra.mxu1 %v316_v38  ;;  %v716_v36 = vld [vmem:[%s2958_s8 + $0x8d0] sm:$0xff]  ;;  %v3270_v38 = vld [vmem:[#allocation2 + $0x368] sm:$0xff] }
  0xd6   : > { %1278 = vmatpush1.msra.mxu0 %v635_v39  ;;  %1534 = vmatprep.subr.mxu1 %v4229_v11  ;;  %v526_v39 = vld [vmem:[%s2958_s8 + $0x2e0] sm:$0xff] }
  0xd7   : > { %881 = vmatprep.mubr.f32.mxu0 %v3220_v40  ;;  %1535 = vmatpush1.msra.mxu1 %v445_v41  ;;  %v3273_v41 = vld [vmem:[#allocation2 + $0x360] sm:$0xff] }
  0xd8   : > { %882 = vmatmul.mubr.f32.gmra.mxu0 %v3223_v43  ;;  %1138 = vmatprep.mubr.f32.mxu1 %v323_v45  ;;  %v353_v45 = vld [vmem:[#allocation2 + $0x378] sm:$0xff] }
  0xd9   : > { %1279 = vmatprep.subr.mxu0 %v633_v46  ;;  %1139 = vmatmul.mubr.f32.gmra.mxu1 %v322_v47  ;;  %v714_v46 = vld [vmem:[%s2958_s8 + $0x8c0] sm:$0xff]  ;;  %v352_v47 = vld [vmem:[#allocation2 + $0x370] sm:$0xff] }
  0xda   : > { %1280 = vmatpush1.msra.mxu0 %v632_v48  ;;  %1536 = vmatprep.subr.mxu1 %v4229_v11  ;;  %v713_v48 = vld [vmem:[%s2958_s8 + $0x8b8] sm:$0xff] }
  0xdb   : > { %887 = vmatprep.mubr.f32.mxu0 %v3230_v50  ;;  %1537 = vmatpush1.msra.mxu1 %v442_v52  ;;  %v3280_v52 = vld [vmem:[#allocation2 + $0x398] sm:$0xff] }
  0xdc   : > { %888 = vmatmul.mubr.f32.gmra.mxu0 %v3233_v53  ;;  %1144 = vmatprep.mubr.f32.mxu1 %v329_v54  ;;  %v523_v54 = vld [vmem:[%s2958_s8 + $0x2c8] sm:$0xff] }
  0xdd   : > { %1281 = vmatprep.subr.mxu0 %v630_v55  ;;  %1145 = vmatmul.mubr.f32.gmra.mxu1 %v328_v57  ;;  %v3283_v55 = vld [vmem:[#allocation2 + $0x390] sm:$0xff]  ;;  %v359_v57 = vld [vmem:[#allocation2 + $0x3a8] sm:$0xff] }
  0xde   : > { %1282 = vmatpush1.msra.mxu0 %v629_v59  ;;  %1538 = vmatprep.subr.mxu1 %v4229_v11  ;;  %v711_v59 = vld [vmem:[%s2958_s8 + $0x8a8] sm:$0xff] }
  0xdf   : > { %893 = vmatprep.mubr.f32.mxu0 %v3240_v60  ;;  %1539 = vmatpush1.msra.mxu1 %v439_v62  ;;  %v358_v62 = vld [vmem:[#allocation2 + $0x3a0] sm:$0xff] }
  0xe0   : > { %894 = vmatmul.mubr.f32.gmra.mxu0 %v3243_v63  ;;  %1150 = vmatprep.mubr.f32.mxu1 %v335_v2  ;;  %v710_v2 = vld [vmem:[%s2958_s8 + $0x8a0] sm:$0xff] }
  0xe1   : > { %1283 = vmatprep.subr.mxu0 %v627_v4  ;;  %1151 = vmatmul.mubr.f32.gmra.mxu1 %v334_v5  ;;  %v3290_v4 = vld [vmem:[#allocation2 + $0x3c8] sm:$0xff]  ;;  %v520_v5 = vld [vmem:[%s2958_s8 + $0x2b0] sm:$0xff] }
  0xe2   : > { %1284 = vmatpush1.msra.mxu0 %v626_v7  ;;  %1540 = vmatprep.subr.mxu1 %v4229_v11  ;;  %v3293_v7 = vld [vmem:[#allocation2 + $0x3c0] sm:$0xff] }
  0xe3   : > { %899 = vmatprep.mubr.f32.mxu0 %v3250_v9  ;;  %1541 = vmatpush1.msra.mxu1 %v436_v12  ;;  %v365_v12 = vld [vmem:[#allocation2 + $0x3d8] sm:$0xff] }
  0xe4   : > { %900 = vmatmul.mubr.f32.gmra.mxu0 %v3253_v15  ;;  %1156 = vmatprep.mubr.f32.mxu1 %v341_v17  ;;  %v708_v17 = vld [vmem:[%s2958_s8 + $0x890] sm:$0xff] }
  0xe5   : > { %1285 = vmatprep.subr.mxu0 %v720_v18  ;;  %1157 = vmatmul.mubr.f32.gmra.mxu1 %v340_v19  ;;  %v364_v18 = vld [vmem:[#allocation2 + $0x3d0] sm:$0xff]  ;;  %v707_v19 = vld [vmem:[%s2958_s8 + $0x888] sm:$0xff] }
  0xe6   : > { %1286 = vmatpush2.msra.mxu0 %v719_v22  ;;  %1542 = vmatprep.subr.mxu1 %v4229_v11  ;;  %v3300_v22 = vld [vmem:[#allocation2 + $0x3f8] sm:$0xff] }
  0xe7   : > { %905 = vmatprep.mubr.f32.mxu0 %v3260_v25  ;;  %1543 = vmatpush2.msra.mxu1 %v529_v26  ;;  %v517_v26 = vld [vmem:[%s2958_s8 + $0x298] sm:$0xff] }
  0xe8   : > { %906 = vmatmul.mubr.f32.gmra.mxu0 %v3263_v27  ;;  %1162 = vmatprep.mubr.f32.mxu1 %v347_v29  ;;  %v3303_v29 = vld [vmem:[#allocation2 + $0x3f0] sm:$0xff] }
  0xe9   : > { %1287 = vmatprep.subr.mxu0 %v717_v32  ;;  %1163 = vmatmul.mubr.f32.gmra.mxu1 %v346_v34  ;;  %v371_v32 = vld [vmem:[#allocation2 + $0x408] sm:$0xff]  ;;  %v705_v34 = vld [vmem:[%s2958_s8 + $0x878] sm:$0xff] }
  0xea   : > { %1288 = vmatpush2.msra.mxu0 %v716_v36  ;;  %1544 = vmatprep.subr.mxu1 %v4229_v11  ;;  %v370_v36 = vld [vmem:[#allocation2 + $0x400] sm:$0xff] }
  0xeb   : > { %911 = vmatprep.mubr.f32.mxu0 %v3270_v38  ;;  %1545 = vmatpush2.msra.mxu1 %v526_v39  ;;  %v704_v39 = vld [vmem:[%s2958_s8 + $0x870] sm:$0xff] }
  0xec   : > { %912 = vmatmul.mubr.f32.gmra.mxu0 %v3273_v41  ;;  %1168 = vmatprep.mubr.f32.mxu1 %v353_v45  ;;  %v3310_v45 = vld [vmem:[#allocation2 + $0x428] sm:$0xff] }
  0xed   : > { %1289 = vmatprep.subr.mxu0 %v714_v46  ;;  %1169 = vmatmul.mubr.f32.gmra.mxu1 %v352_v47  ;;  %v514_v46 = vld [vmem:[%s2958_s8 + $0x280] sm:$0xff] }
  0xee   : > { %1290 = vmatpush2.msra.mxu0 %v713_v48  ;;  %1546 = vmatprep.subr.mxu1 %v4229_v11  ;;  %v3313_v47 = vld [vmem:[#allocation2 + $0x420] sm:$0xff]  ;;  %v377_v48 = vld [vmem:[#allocation2 + $0x438] sm:$0xff] }
  0xef   : > { %917 = vmatprep.mubr.f32.mxu0 %v3280_v52  ;;  %1547 = vmatpush2.msra.mxu1 %v523_v54  ;;  %v702_v54 = vld [vmem:[%s2958_s8 + $0x860] sm:$0xff] }
  0xf0   : > { %918 = vmatmul.mubr.f32.gmra.mxu0 %v3283_v55  ;;  %1174 = vmatprep.mubr.f32.mxu1 %v359_v57  ;;  %v376_v57 = vld [vmem:[#allocation2 + $0x430] sm:$0xff] }
  0xf1   : > { %1291 = vmatprep.subr.mxu0 %v711_v59  ;;  %1175 = vmatmul.mubr.f32.gmra.mxu1 %v358_v62  ;;  %v701_v59 = vld [vmem:[%s2958_s8 + $0x858] sm:$0xff] }
  0xf2   : > { %1292 = vmatpush2.msra.mxu0 %v710_v2  ;;  %1548 = vmatprep.subr.mxu1 %v4229_v11  ;;  %v3320_v62 = vld [vmem:[#allocation2 + $0x458] sm:$0xff]  ;;  %v511_v2 = vld [vmem:[%s2958_s8 + $0x268] sm:$0xff] }
  0xf3   : > { %923 = vmatprep.mubr.f32.mxu0 %v3290_v4  ;;  %1549 = vmatpush2.msra.mxu1 %v520_v5  ;;  %v3323_v5 = vld [vmem:[#allocation2 + $0x450] sm:$0xff] }
  0xf4   : > { %924 = vmatmul.mubr.f32.gmra.mxu0 %v3293_v7  ;;  %1180 = vmatprep.mubr.f32.mxu1 %v365_v12  ;;  %v383_v12 = vld [vmem:[#allocation2 + $0x468] sm:$0xff] }
  0xf5   : > { %1293 = vmatprep.subr.mxu0 %v708_v17  ;;  %1181 = vmatmul.mubr.f32.gmra.mxu1 %v364_v18  ;;  %v699_v17 = vld [vmem:[%s2958_s8 + $0x848] sm:$0xff]  ;;  %v382_v18 = vld [vmem:[#allocation2 + $0x460] sm:$0xff] }
  0xf6   : > { %1294 = vmatpush2.msra.mxu0 %v707_v19  ;;  %1550 = vmatprep.subr.mxu1 %v4229_v11  ;;  %v698_v19 = vld [vmem:[%s2958_s8 + $0x840] sm:$0xff] }
  0xf7   : > { %929 = vmatprep.mubr.f32.mxu0 %v3300_v22  ;;  %1551 = vmatpush2.msra.mxu1 %v517_v26  ;;  %v3330_v26 = vld [vmem:[#allocation2 + $0x488] sm:$0xff] }
  0xf8   : > { %930 = vmatmul.mubr.f32.gmra.mxu0 %v3303_v29  ;;  %1186 = vmatprep.mubr.f32.mxu1 %v371_v32  ;;  %v508_v32 = vld [vmem:[%s2958_s8 + $0x250] sm:$0xff] }
  0xf9   : > { %1295 = vmatprep.subr.mxu0 %v705_v34  ;;  %1187 = vmatmul.mubr.f32.gmra.mxu1 %v370_v36  ;;  %v3333_v34 = vld [vmem:[#allocation2 + $0x480] sm:$0xff]  ;;  %v389_v36 = vld [vmem:[#allocation2 + $0x498] sm:$0xff] }
  0xfa   : > { %1296 = vmatpush2.msra.mxu0 %v704_v39  ;;  %1552 = vmatprep.subr.mxu1 %v4229_v11  ;;  %v696_v39 = vld [vmem:[%s2958_s8 + $0x830] sm:$0xff] }
  0xfb   : > { %935 = vmatprep.mubr.f32.mxu0 %v3310_v45  ;;  %1553 = vmatpush2.msra.mxu1 %v514_v46  ;;  %v388_v46 = vld [vmem:[#allocation2 + $0x490] sm:$0xff] }
  0xfc   : > { %936 = vmatmul.mubr.f32.gmra.mxu0 %v3313_v47  ;;  %1192 = vmatprep.mubr.f32.mxu1 %v377_v48  ;;  %v695_v48 = vld [vmem:[%s2958_s8 + $0x828] sm:$0xff] }
  0xfd   : > { %1297 = vmatprep.subr.mxu0 %v702_v54  ;;  %1193 = vmatmul.mubr.f32.gmra.mxu1 %v376_v57  ;;  %v3340_v54 = vld [vmem:[#allocation2 + $0x4b8] sm:$0xff] }
  0xfe   : > { %1298 = vmatpush2.msra.mxu0 %v701_v59  ;;  %1554 = vmatprep.subr.mxu1 %v4229_v11  ;;  %4254 = vst [vmem:[#allocation12_spill] sm:$0xff] %v3340_v54  ;;  %v505_v57 = vld [vmem:[%s2958_s8 + $0x238] sm:$0xff]  ;;  %v3343_v59 = vld [vmem:[#allocation2 + $0x4b0] sm:$0xff] }
  0xff   : > { %941 = vmatprep.mubr.f32.mxu0 %v3320_v62  ;;  %1555 = vmatpush2.msra.mxu1 %v511_v2  ;;  %4255 = vst [vmem:[#allocation13_spill] sm:$0xff] %v3343_v59  ;;  %v395_v2 = vld [vmem:[#allocation2 + $0x4c8] sm:$0xff] }
 0x100   : > { %942 = vmatmul.mubr.f32.gmra.mxu0 %v3323_v5  ;;  %1198 = vmatprep.mubr.f32.mxu1 %v383_v12  ;;  %v693_v12 = vld [vmem:[%s2958_s8 + $0x818] sm:$0xff] }
 0x101   : > { %1299 = vmatprep.subr.mxu0 %v699_v17  ;;  %1199 = vmatmul.mubr.f32.gmra.mxu1 %v382_v18  ;;  %v394_v17 = vld [vmem:[#allocation2 + $0x4c0] sm:$0xff]  ;;  %v692_v18 = vld [vmem:[%s2958_s8 + $0x810] sm:$0xff] }
 0x102   : > { %1300 = vmatpush2.msra.mxu0 %v698_v19  ;;  %1556 = vmatprep.subr.mxu1 %v4229_v11  ;;  %v3350_v19 = vld [vmem:[#allocation2 + $0x4e8] sm:$0xff] }
 0x103   : > { %947 = vmatprep.mubr.f32.mxu0 %v3330_v26  ;;  %1557 = vmatpush2.msra.mxu1 %v508_v32  ;;  %4256 = vst [vmem:[#allocation14_spill] sm:$0xff] %v3350_v19  ;;  %v502_v32 = vld [vmem:[%s2958_s8 + $0x220] sm:$0xff] }
 0x104   : > { %948 = vmatmul.mubr.f32.gmra.mxu0 %v3333_v34  ;;  %1204 = vmatprep.mubr.f32.mxu1 %v389_v36  ;;  %v3353_v36 = vld [vmem:[#allocation2 + $0x4e0] sm:$0xff] }
 0x105   : > { %1301 = vmatprep.subr.mxu0 %v696_v39  ;;  %1205 = vmatmul.mubr.f32.gmra.mxu1 %v388_v46  ;;  %4257 = vst [vmem:[#allocation15_spill] sm:$0xff] %v3353_v36  ;;  %v401_v39 = vld [vmem:[#allocation2 + $0x4f8] sm:$0xff]  ;;  %v690_v46 = vld [vmem:[%s2958_s8 + $0x800] sm:$0xff] }
 0x106   : > { %1302 = vmatpush2.msra.mxu0 %v695_v48  ;;  %1558 = vmatprep.subr.mxu1 %v4229_v11  ;;  %v400_v48 = vld [vmem:[#allocation2 + $0x4f0] sm:$0xff] }
 0x107   : > { %953 = vmatprep.mubr.f32.mxu0 %v3340_v54  ;;  %1559 = vmatpush2.msra.mxu1 %v505_v57  ;;  %v689_v57 = vld [vmem:[%s2958_s8 + $0x7f8] sm:$0xff]  ;;  %v683_v54 = vld [vmem:[%s2958_s8 + $0x7c8] sm:$0xff] }
 0x108   : > { %954 = vmatmul.mubr.f32.gmra.mxu0 %v3343_v59  ;;  %1210 = vmatprep.mubr.f32.mxu1 %v395_v2  ;;  %v3360_v2 = vld [vmem:[#allocation2 + $0x518] sm:$0xff]  ;;  %v4259_v59 = vmov 0.0  }
 0x109   : > { %1303 = vmatprep.subr.mxu0 %v693_v12  ;;  %1211 = vmatmul.mubr.f32.gmra.mxu1 %v394_v17  ;;  %4258 = vst [vmem:[#allocation16_spill] sm:$0xff] %v3360_v2  ;;  %v499_v12 = vld [vmem:[%s2958_s8 + $0x208] sm:$0xff]  ;;  %v404_v17 = vld [vmem:[#allocation2 + $0x510] sm:$0xff] }
 0x10a   : > { %1304 = vmatpush2.msra.mxu0 %v692_v18  ;;  %1560 = vmatprep.subr.mxu1 %v4229_v11  ;;  %v407_v18 = vld [vmem:[#allocation2 + $0x528] sm:$0xff] }
 0x10b   : > { %959 = vmatprep.mubr.f32.mxu0 %v3350_v19  ;;  %1561 = vmatpush2.msra.mxu1 %v502_v32  ;;  %v687_v11 = vld [vmem:[%s2958_s8 + $0x7e8] sm:$0xff]  ;;  %v406_v19 = vld [vmem:[#allocation2 + $0x520] sm:$0xff] }
 0x10c   : > { %960 = vmatmul.mubr.f32.gmra.mxu0 %v3353_v36  ;;  %1216 = vmatprep.mubr.f32.mxu1 %v401_v39  ;;  %v686_v32 = vld [vmem:[%s2958_s8 + $0x7e0] sm:$0xff]  ;;  %v411_v36 = vld [vmem:[#allocation2 + $0x548] sm:$0xff]  ;;  %v496_v39 = vld [vmem:[%s2958_s8 + $0x1f0] sm:$0xff] }
 0x10d   : > { %1305 = vmatprep.subr.mxu0 %v690_v46  ;;  %1217 = vmatmul.mubr.f32.gmra.mxu1 %v400_v48  ;;  %v410_v46 = vld [vmem:[#allocation2 + $0x540] sm:$0xff]  ;;  %v413_v48 = vld [vmem:[#allocation2 + $0x558] sm:$0xff] }
 0x10e   : > { %1306 = vmatpush2.msra.mxu0 %v689_v57  ;;  %1562 = vmatprep.subr.mxu1 %v4259_v59  ;;  %v684_v57 = vld [vmem:[%s2958_s8 + $0x7d0] sm:$0xff] }
 0x10f   : > { %965 = vmatprep.mubr.f32.mxu0 %v3360_v2  ;;  %1563 = vmatpush2.msra.mxu1 %v499_v12  ;;  %v412_v2 = vld [vmem:[#allocation2 + $0x550] sm:$0xff]  ;;  %v417_v12 = vld [vmem:[#allocation2 + $0x578] sm:$0xff] }
 0x110   : > { %966 = vmatmul.mubr.f32.gmra.mxu0 %v404_v17  ;;  %1222 = vmatprep.mubr.f32.mxu1 %v407_v18  ;;  %v416_v17 = vld [vmem:[#allocation2 + $0x570] sm:$0xff]  ;;  %v681_v18 = vld [vmem:[%s2958_s8 + $0x7b8] sm:$0xff] }
 0x111   : > { %1307 = vmatprep.subr.mxu0 %v687_v11  ;;  %1223 = vmatmul.mubr.f32.gmra.mxu1 %v406_v19  ;;  %v493_v11 = vld [vmem:[%s2958_s8 + $0x1d8] sm:$0xff]  ;;  %v419_v19 = vld [vmem:[#allocation2 + $0x588] sm:$0xff] }
 0x112   : > { %1308 = vmatpush2.msra.mxu0 %v686_v32  ;;  %1564 = vmatprep.subr.mxu1 %v4259_v59  ;;  %v680_v32 = vld [vmem:[%s2958_s8 + $0x7b0] sm:$0xff] }
 0x113   : > { %971 = vmatprep.mubr.f32.mxu0 %v411_v36  ;;  %1565 = vmatpush2.msra.mxu1 %v496_v39  ;;  %v418_v36 = vld [vmem:[#allocation2 + $0x580] sm:$0xff]  ;;  %v423_v39 = vld [vmem:[#allocation2 + $0x5a8] sm:$0xff] }
 0x114   : > { %972 = vmatmul.mubr.f32.gmra.mxu0 %v410_v46  ;;  %1228 = vmatprep.mubr.f32.mxu1 %v413_v48  ;;  %v490_v46 = vld [vmem:[%s2958_s8 + $0x1c0] sm:$0xff] }
 0x115   : > { %1309 = vmatprep.subr.mxu0 %v684_v57  ;;  %1229 = vmatmul.mubr.f32.gmra.mxu1 %v412_v2  ;;  %v422_v48 = vld [vmem:[#allocation2 + $0x5a0] sm:$0xff]  ;;  %v424_v57 = vld [vmem:[#allocation2 + $0x5b0] sm:$0xff] }
 0x116   : > { %1310 = vmatpush2.msra.mxu0 %v683_v54  ;;  %1566 = vmatprep.subr.mxu1 %v4259_v59  ;;  %v425_v54 = vld [vmem:[#allocation2 + $0x5b8] sm:$0xff]  ;;  %v678_v2 = vld [vmem:[%s2958_s8 + $0x7a0] sm:$0xff] }
 0x117   : > { %977 = vmatprep.mubr.f32.mxu0 %v417_v12  ;;  %1567 = vmatpush2.msra.mxu1 %v493_v11  ;;  %v677_v12 = vld [vmem:[%s2958_s8 + $0x798] sm:$0xff] }
 0x118   : > { %978 = vmatmul.mubr.f32.gmra.mxu0 %v416_v17  ;;  %1234 = vmatprep.mubr.f32.mxu1 %v419_v19  ;;  %v429_v11 = vld [vmem:[#allocation2 + $0x5d8] sm:$0xff]  ;;  %v487_v17 = vld [vmem:[%s2958_s8 + $0x1a8] sm:$0xff]  ;;  %v428_v19 = vld [vmem:[#allocation2 + $0x5d0] sm:$0xff] }
 0x119   : > { %1311 = vmatprep.subr.mxu0 %v681_v18  ;;  %1235 = vmatmul.mubr.f32.gmra.mxu1 %v418_v36  ;;  %v431_v18 = vld [vmem:[#allocation2 + $0x5e8] sm:$0xff] }
 0x11a   : > { %1312 = vmatpush2.msra.mxu0 %v680_v32  ;;  %1568 = vmatprep.subr.mxu1 %v4259_v59  ;;  %v675_v36 = vld [vmem:[%s2958_s8 + $0x788] sm:$0xff]  ;;  %v430_v32 = vld [vmem:[#allocation2 + $0x5e0] sm:$0xff] }
 0x11b   : > { %983 = vmatprep.mubr.f32.mxu0 %v423_v39  ;;  %1569 = vmatpush2.msra.mxu1 %v490_v46  ;;  %v674_v39 = vld [vmem:[%s2958_s8 + $0x780] sm:$0xff]  ;;  %v247_v46 = vld [vmem:[#allocation2 + $0x28] sm:$0xff] }
 0x11c   : > { %984 = vmatmul.mubr.f32.gmra.mxu0 %v422_v48  ;;  %1240 = vmatprep.mubr.f32.mxu1 %v425_v54  ;;  %v484_v48 = vld [vmem:[%s2958_s8 + $0x190] sm:$0xff]  ;;  %v246_v54 = vld [vmem:[#allocation2 + $0x20] sm:$0xff] }
 0x11d   : > { %1313 = vmatprep.subr.mxu0 %v678_v2  ;;  %1241 = vmatmul.mubr.f32.gmra.mxu1 %v424_v57  ;;  %v577_v2 = vld [vmem:[%s2958_s8 + $0x478] sm:$0xff] }
 0x11e   : > { %1314 = vmatpush2.msra.mxu0 %v677_v12  ;;  %1570 = vmatprep.subr.mxu1 %v4259_v59  ;;  %v253_v57 = vld [vmem:[#allocation2 + $0x58] sm:$0xff] }
 0x11f   : > { %989 = vmatprep.mubr.f32.mxu0 %v429_v11  ;;  %1571 = vmatpush2.msra.mxu1 %v487_v17  ;;  %v673_v12 = vld [vmem:[%s2958_s8 + $0x778] sm:$0xff]  ;;  %v252_v11 = vld [vmem:[#allocation2 + $0x50] sm:$0xff]  ;;  %v574_v17 = vld [vmem:[%s2958_s8 + $0x460] sm:$0xff] }
 0x120   : > { %990 = vmatmul.mubr.f32.gmra.mxu0 %v428_v19  ;;  %1246 = vmatprep.mubr.f32.mxu1 %v431_v18  ;;  %v259_v19 = vld [vmem:[#allocation2 + $0x88] sm:$0xff]  ;;  %v258_v18 = vld [vmem:[#allocation2 + $0x80] sm:$0xff] }
 0x121   : > { %1315 = vmatprep.subr.mxu0 %v675_v36  ;;  %1247 = vmatmul.mubr.f32.gmra.mxu1 %v430_v32  ;;  %v265_v36 = vld [vmem:[#allocation2 + $0xb8] sm:$0xff]  ;;  %v264_v32 = vld [vmem:[#allocation2 + $0xb0] sm:$0xff] }
 0x122   : > { %1316 = vmatpush2.msra.mxu0 %v674_v39  ;;  %1572 = vmatprep.subr.mxu1 %v4259_v59  ;;  %v271_v39 = vld [vmem:[#allocation2 + $0xe8] sm:$0xff] }
 0x123   : > { %1317 = vmatprep.mubr.f32.mxu0 %v247_v46  ;;  %1573 = vmatpush2.msra.mxu1 %v484_v48  ;;  %v270_v46 = vld [vmem:[#allocation2 + $0xe0] sm:$0xff]  ;;  %v277_v48 = vld [vmem:[#allocation2 + $0x118] sm:$0xff] }
 0x124   : > { %1318 = vmatmul.mubr.f32.vlgmr.msra.gmra.mxu0 %v246_v54  ;;  %1574 = vmatprep.mubr.f32.mxu1 %v3089_v61  ;;  %v670_v61 = vld [vmem:[%s2958_s8 + $0x760] sm:$0xff]  ;;  %v276_v54 = vld [vmem:[#allocation2 + $0x110] sm:$0xff] }
 0x125   : > { %1735 = vmatprep.subr.mxu0 %v4259_v59  ;;  %1575 = vmatmul.mubr.f32.vlgmr.msra.gmra.mxu1 %v3093_v0  ;;  %v571_v0 = vld [vmem:[%s2958_s8 + $0x448] sm:$0xff] }
 0x126   : > { %1736 = vmatpush1.msra.mxu0 %v577_v2  ;;  %1960 = vmatprep.subr.mxu1 %v4259_v59  ;;  %v283_v2 = vld [vmem:[#allocation2 + $0x148] sm:$0xff] }
 0x127   : > { %1323 = vmatprep.mubr.f32.mxu0 %v253_v57  ;;  %1961 = vmatpush1.msra.mxu1 %v673_v12  ;;  %v282_v57 = vld [vmem:[#allocation2 + $0x140] sm:$0xff]  ;;  %v289_v12 = vld [vmem:[#allocation2 + $0x178] sm:$0xff] }
 0x128   : > { %1324 = vmatmul.mubr.f32.gmra.mxu0 %v252_v11  ;;  %1579 = vmatprep.mubr.f32.mxu1 %v3100_v6  ;;  %v667_v6 = vld [vmem:[%s2958_s8 + $0x748] sm:$0xff]  ;;  %v288_v11 = vld [vmem:[#allocation2 + $0x170] sm:$0xff] }
 0x129   : > { %1737 = vmatprep.subr.mxu0 %v4259_v59  ;;  %1580 = vmatmul.mubr.f32.gmra.mxu1 %v3103_v8  ;;  %v568_v8 = vld [vmem:[%s2958_s8 + $0x430] sm:$0xff] }
 0x12a   : > { %1738 = vmatpush1.msra.mxu0 %v574_v17  ;;  %1962 = vmatprep.subr.mxu1 %v4259_v59  ;;  %v295_v17 = vld [vmem:[#allocation2 + $0x1a8] sm:$0xff] }
 0x12b   : > { %1329 = vmatprep.mubr.f32.mxu0 %v259_v19  ;;  %1963 = vmatpush1.msra.mxu1 %v670_v61  ;;  %v294_v19 = vld [vmem:[#allocation2 + $0x1a0] sm:$0xff]  ;;  %v301_v61 = vld [vmem:[#allocation2 + $0x1d8] sm:$0xff] }
 0x12c   : > { %1330 = vmatmul.mubr.f32.gmra.mxu0 %v258_v18  ;;  %1584 = vmatprep.mubr.f32.mxu1 %v3110_v14  ;;  %v664_v14 = vld [vmem:[%s2958_s8 + $0x730] sm:$0xff] }
 0x12d   : > { %1739 = vmatprep.subr.mxu0 %v4259_v59  ;;  %1585 = vmatmul.mubr.f32.gmra.mxu1 %v3113_v16  ;;  %v565_v16 = vld [vmem:[%s2958_s8 + $0x418] sm:$0xff]  ;;  %v300_v18 = vld [vmem:[#allocation2 + $0x1d0] sm:$0xff] }
 0x12e   : > { %1740 = vmatpush1.msra.mxu0 %v571_v0  ;;  %1964 = vmatprep.subr.mxu1 %v4259_v59  ;;  %v307_v0 = vld [vmem:[#allocation2 + $0x208] sm:$0xff] }
 0x12f   : > { %1335 = vmatprep.mubr.f32.mxu0 %v265_v36  ;;  %1965 = vmatpush1.msra.mxu1 %v667_v6  ;;  %v306_v36 = vld [vmem:[#allocation2 + $0x200] sm:$0xff]  ;;  %v313_v6 = vld [vmem:[#allocation2 + $0x238] sm:$0xff] }
 0x130   : > { %1336 = vmatmul.mubr.f32.gmra.mxu0 %v264_v32  ;;  %1589 = vmatprep.mubr.f32.mxu1 %v3120_v21  ;;  %v661_v21 = vld [vmem:[%s2958_s8 + $0x718] sm:$0xff]  ;;  %v312_v32 = vld [vmem:[#allocation2 + $0x230] sm:$0xff] }
 0x131   : > { %1741 = vmatprep.subr.mxu0 %v4259_v59  ;;  %1590 = vmatmul.mubr.f32.gmra.mxu1 %v3123_v23  ;;  %v562_v23 = vld [vmem:[%s2958_s8 + $0x400] sm:$0xff] }
 0x132   : > { %1742 = vmatpush1.msra.mxu0 %v568_v8  ;;  %1966 = vmatprep.subr.mxu1 %v4259_v59  ;;  %v319_v8 = vld [vmem:[#allocation2 + $0x268] sm:$0xff] }
 0x133   : > { %1341 = vmatprep.mubr.f32.mxu0 %v271_v39  ;;  %1967 = vmatpush1.msra.mxu1 %v664_v14  ;;  %v318_v39 = vld [vmem:[#allocation2 + $0x260] sm:$0xff]  ;;  %v325_v14 = vld [vmem:[#allocation2 + $0x298] sm:$0xff] }
 0x134   : > { %1342 = vmatmul.mubr.f32.gmra.mxu0 %v270_v46  ;;  %1594 = vmatprep.mubr.f32.mxu1 %v3130_v28  ;;  %v658_v28 = vld [vmem:[%s2958_s8 + $0x700] sm:$0xff]  ;;  %v324_v46 = vld [vmem:[#allocation2 + $0x290] sm:$0xff] }
 0x135   : > { %1743 = vmatprep.subr.mxu0 %v4259_v59  ;;  %1595 = vmatmul.mubr.f32.gmra.mxu1 %v3133_v30  ;;  %v559_v30 = vld [vmem:[%s2958_s8 + $0x3e8] sm:$0xff] }
 0x136   : > { %1744 = vmatpush1.msra.mxu0 %v565_v16  ;;  %1968 = vmatprep.subr.mxu1 %v4259_v59  ;;  %v724_v16 = vlaneseq }
 0x137   : > { %1347 = vmatprep.mubr.f32.mxu0 %v277_v48  ;;  %1969 = vmatpush1.msra.mxu1 %v661_v21  ;;  %v331_v48 = vld [vmem:[#allocation2 + $0x2c8] sm:$0xff]  ;;  %v330_v21 = vld [vmem:[#allocation2 + $0x2c0] sm:$0xff] }
 0x138   : > { %1348 = vmatmul.mubr.f32.gmra.mxu0 %v276_v54  ;;  %1599 = vmatprep.mubr.f32.mxu1 %v3140_v35  ;;  %v655_v35 = vld [vmem:[%s2958_s8 + $0x6e8] sm:$0xff]  ;;  %v3468_v54 = vshrl.u32 %v724_v16, 7 }
 0x139   : > { %1745 = vmatprep.subr.mxu0 %v4259_v59  ;;  %1600 = vmatmul.mubr.f32.gmra.mxu1 %v3143_v37  ;;  %v556_v37 = vld [vmem:[%s2958_s8 + $0x3d0] sm:$0xff] }
 0x13a   : > { %1746 = vmatpush1.msra.mxu0 %v562_v23  ;;  %1970 = vmatprep.subr.mxu1 %v4259_v59  ;;  %4260 = vst [vmem:[#allocation17_spill] sm:$0xff] %v3468_v54  ;;  %v337_v23 = vld [vmem:[#allocation2 + $0x2f8] sm:$0xff] }
 0x13b   : > { %1353 = vmatprep.mubr.f32.mxu0 %v283_v2  ;;  %1971 = vmatpush1.msra.mxu1 %v658_v28  ;;  %v336_v2 = vld [vmem:[#allocation2 + $0x2f0] sm:$0xff]  ;;  %v726_v28 = vsub.s32 0, %v3468_v54 }
 0x13c   : > { %1354 = vmatmul.mubr.f32.gmra.mxu0 %v282_v57  ;;  %1604 = vmatprep.mubr.f32.mxu1 %v3150_v42  ;;  %v652_v42 = vld [vmem:[%s2958_s8 + $0x6d0] sm:$0xff] }
 0x13d   : > { %1747 = vmatprep.subr.mxu0 %v4259_v59  ;;  %1605 = vmatmul.mubr.f32.gmra.mxu1 %v3153_v44  ;;  %v553_v44 = vld [vmem:[%s2958_s8 + $0x3b8] sm:$0xff]  ;;  %v532_v57 = vld [vmem:[%s2958_s8 + $0x310] sm:$0xff] }
 0x13e   : > { %1748 = vmatpush1.msra.mxu0 %v559_v30  ;;  %1972 = vmatprep.subr.mxu1 %v4259_v59  ;;  %v343_v30 = vld [vmem:[#allocation2 + $0x328] sm:$0xff] }
 0x13f   : > { %1359 = vmatprep.mubr.f32.mxu0 %v289_v12  ;;  %1973 = vmatpush1.msra.mxu1 %v655_v35  ;;  %v342_v35 = vld [vmem:[#allocation2 + $0x320] sm:$0xff] }
 0x140   : > { %1360 = vmatmul.mubr.f32.gmra.mxu0 %v288_v11  ;;  %1609 = vmatprep.mubr.f32.mxu1 %v3160_v49  ;;  %v649_v49 = vld [vmem:[%s2958_s8 + $0x6b8] sm:$0xff] }
 0x141   : > { %1749 = vmatprep.subr.mxu0 %v4259_v59  ;;  %1610 = vmatmul.mubr.f32.gmra.mxu1 %v3163_v51  ;;  %v550_v51 = vld [vmem:[%s2958_s8 + $0x3a0] sm:$0xff]  ;;  %v625_v11 = vld [vmem:[%s2958_s8 + $0x5f8] sm:$0xff] }
 0x142   : > { %1750 = vmatpush1.msra.mxu0 %v556_v37  ;;  %1974 = vmatprep.subr.mxu1 %v4259_v59 }
 0x143   : > { %1365 = vmatprep.mubr.f32.mxu0 %v295_v17  ;;  %1975 = vmatpush1.msra.mxu1 %v652_v42 }
 0x144   : > { %1366 = vmatmul.mubr.f32.gmra.mxu0 %v294_v19  ;;  %1614 = vmatprep.mubr.f32.mxu1 %v3170_v56  ;;  %v646_v56 = vld [vmem:[%s2958_s8 + $0x6a0] sm:$0xff]  ;;  %v721_v19 = vld [vmem:[%s2958_s8 + $0x8f8] sm:$0xff] }
 0x145   : > { %1751 = vmatprep.subr.mxu0 %v4259_v59  ;;  %1615 = vmatmul.mubr.f32.gmra.mxu1 %v3173_v58  ;;  %v547_v58 = vld [vmem:[%s2958_s8 + $0x388] sm:$0xff] }
 0x146   : > { %1752 = vmatpush1.msra.mxu0 %v553_v44  ;;  %1976 = vmatprep.subr.mxu1 %v4259_v59 }
 0x147   : > { %1371 = vmatprep.mubr.f32.mxu0 %v301_v61  ;;  %1977 = vmatpush1.msra.mxu1 %v649_v49 }
 0x148   : > { %1372 = vmatmul.mubr.f32.gmra.mxu0 %v300_v18  ;;  %1619 = vmatprep.mubr.f32.mxu1 %v3180_v1  ;;  %v643_v1 = vld [vmem:[%s2958_s8 + $0x688] sm:$0xff] }
 0x149   : > { %1753 = vmatprep.subr.mxu0 %v4259_v59  ;;  %1620 = vmatmul.mubr.f32.gmra.mxu1 %v3183_v3  ;;  %v544_v3 = vld [vmem:[%s2958_s8 + $0x370] sm:$0xff] }
 0x14a   : > { %1754 = vmatpush1.msra.mxu0 %v550_v51  ;;  %1978 = vmatprep.subr.mxu1 %v4259_v59  ;;  %v622_v51 = vld [vmem:[%s2958_s8 + $0x5e0] sm:$0xff] }
 0x14b   : > { %1377 = vmatprep.mubr.f32.mxu0 %v307_v0  ;;  %1979 = vmatpush1.msra.mxu1 %v646_v56  ;;  %v355_v56 = vld [vmem:[#allocation2 + $0x388] sm:$0xff] }
 0x14c   : > { %1378 = vmatmul.mubr.f32.gmra.mxu0 %v306_v36  ;;  %1624 = vmatprep.mubr.f32.mxu1 %v3190_v10  ;;  %v640_v10 = vld [vmem:[%s2958_s8 + $0x670] sm:$0xff] }
 0x14d   : > { %1755 = vmatprep.subr.mxu0 %v4259_v59  ;;  %1625 = vmatmul.mubr.f32.gmra.mxu1 %v3193_v13  ;;  %v541_v13 = vld [vmem:[%s2958_s8 + $0x358] sm:$0xff] }
 0x14e   : > { %1756 = vmatpush1.msra.mxu0 %v547_v58  ;;  %1980 = vmatprep.subr.mxu1 %v4259_v59  ;;  %v718_v58 = vld [vmem:[%s2958_s8 + $0x8e0] sm:$0xff] }
 0x14f   : > { %1383 = vmatprep.mubr.f32.mxu0 %v313_v6  ;;  %1981 = vmatpush1.msra.mxu1 %v643_v1  ;;  %v354_v6 = vld [vmem:[#allocation2 + $0x380] sm:$0xff] }
 0x150   : > { %1384 = vmatmul.mubr.f32.gmra.mxu0 %v312_v32  ;;  %1629 = vmatprep.mubr.f32.mxu1 %v3200_v20  ;;  %v637_v20 = vld [vmem:[%s2958_s8 + $0x658] sm:$0xff] }
 0x151   : > { %1757 = vmatprep.subr.mxu0 %v4259_v59  ;;  %1630 = vmatmul.mubr.f32.gmra.mxu1 %v3203_v24  ;;  %v538_v24 = vld [vmem:[%s2958_s8 + $0x340] sm:$0xff] }
 0x152   : > { %1758 = vmatpush1.msra.mxu0 %v544_v3  ;;  %1982 = vmatprep.subr.mxu1 %v4259_v59 }
 0x153   : > { %1389 = vmatprep.mubr.f32.mxu0 %v319_v8  ;;  %1983 = vmatpush1.msra.mxu1 %v640_v10  ;;  %v619_v10 = vld [vmem:[%s2958_s8 + $0x5c8] sm:$0xff] }
 0x154   : > { %1390 = vmatmul.mubr.f32.gmra.mxu0 %v318_v39  ;;  %1634 = vmatprep.mubr.f32.mxu1 %v3210_v31  ;;  %v634_v31 = vld [vmem:[%s2958_s8 + $0x640] sm:$0xff] }
 0x155   : > { %1759 = vmatprep.subr.mxu0 %v4259_v59  ;;  %1635 = vmatmul.mubr.f32.gmra.mxu1 %v3213_v33  ;;  %v535_v33 = vld [vmem:[%s2958_s8 + $0x328] sm:$0xff] }
 0x156   : > { %1760 = vmatpush1.msra.mxu0 %v541_v13  ;;  %1984 = vmatprep.subr.mxu1 %v4259_v59  ;;  %v3516_v13 = vld [vmem:[#allocation2 + $0x3b8] sm:$0xff] }
 0x157   : > { %1395 = vmatprep.mubr.f32.mxu0 %v325_v14  ;;  %1985 = vmatpush1.msra.mxu1 %v637_v20  ;;  %v715_v20 = vld [vmem:[%s2958_s8 + $0x8c8] sm:$0xff] }
 0x158   : > { %1396 = vmatmul.mubr.f32.gmra.mxu0 %v324_v46  ;;  %1639 = vmatprep.mubr.f32.mxu1 %v3220_v40  ;;  %v631_v40 = vld [vmem:[%s2958_s8 + $0x628] sm:$0xff]  ;;  %v3524_v46 = vld [vmem:[#allocation2 + $0x3b0] sm:$0xff] }
 0x159   : > { %1761 = vmatprep.subr.mxu0 %v4259_v59  ;;  %1640 = vmatmul.mubr.f32.gmra.mxu1 %v3223_v43  ;;  %v722_v43 = vld [vmem:[%s3478_s28] sm:$0x7] }
 0x15a   : > { %1762 = vmatpush1.msra.mxu0 %v538_v24  ;;  %1986 = vmatprep.subr.mxu1 %v4259_v59  ;;  %v3487_v12 = vrot.slane %v722_v43, %v726_v28  ;;  %v3542_v28 = vld [vmem:[#allocation2 + $0x3e0] sm:$0xff] }
 0x15b   : > { %1401 = vmatprep.mubr.f32.mxu0 %v331_v48  ;;  %1987 = vmatpush1.msra.mxu1 %v634_v31 }
 0x15c   : > { %1402 = vmatmul.mubr.f32.gmra.mxu0 %v330_v21  ;;  %1644 = vmatprep.mubr.f32.mxu1 %v3230_v50  ;;  %v730_v50 = vsub.s32 1, %v3468_v54 }
 0x15d   : > { %1763 = vmatprep.subr.mxu0 %v4259_v59  ;;  %1645 = vmatmul.mubr.f32.gmra.mxu1 %v3233_v53  ;;  %v628_v53 = vld [vmem:[%s2958_s8 + $0x610] sm:$0xff] }
 0x15e   : > { %1764 = vmatpush1.msra.mxu0 %v535_v33  ;;  %1988 = vmatprep.subr.mxu1 %v4259_v59  ;;  %v3492_v37 = vrot.slane %v722_v43, %v730_v50 }
 0x15f   : > { %1407 = vmatprep.mubr.f32.mxu0 %v337_v23  ;;  %1989 = vmatpush1.msra.mxu1 %v631_v40  ;;  %v3534_v23 = vld [vmem:[#allocation2 + $0x3e8] sm:$0xff] }
 0x160   : > { %1408 = vmatmul.mubr.f32.gmra.mxu0 %v336_v2  ;;  %1649 = vmatprep.mubr.f32.mxu1 %v3240_v60  ;;  %v349_v60 = vld [vmem:[#allocation2 + $0x358] sm:$0xff]  ;;  %v712_v2 = vld [vmem:[%s2958_s8 + $0x8b0] sm:$0xff] }
 0x161   : > { %1765 = vmatprep.subr.mxu0 %v4259_v59  ;;  %1650 = vmatmul.mubr.f32.gmra.mxu1 %v3243_v63  ;;  %v348_v63 = vld [vmem:[#allocation2 + $0x350] sm:$0xff] }
 0x162   : > { %1766 = vmatpush1.msra.mxu0 %v532_v57  ;;  %1990 = vmatprep.subr.mxu1 %v4259_v59 }
 0x163   : > { %1413 = vmatprep.mubr.f32.mxu0 %v343_v30  ;;  %1991 = vmatpush1.msra.mxu1 %v628_v53  ;;  %v805_v17 = vpop.f32.mrf.mxu0 }
 0x164   : > { %1414 = vmatmul.mubr.f32.gmra.mxu0 %v342_v35  ;;  %v806_v42 = vadd.f32 %v805_v17, %v3487_v12  ;;  %1654 = vmatprep.mubr.f32.mxu1 %v3250_v9 }
 0x165   : > { %1767 = vmatprep.subr.mxu0 %v4259_v59  ;;  %v1062_v44 = vpop.f32.mrf.mxu1  ;;  %1655 = vmatmul.mubr.f32.gmra.mxu1 %v3253_v15  ;;  %v807_v61 = vpop.f32.mrf.mxu0 }
 0x166   : > { %1768 = vmatpush2.msra.mxu0 %v625_v11  ;;  %v3499_v49 = vadd.f32 %v1062_v44, %v806_v42  ;;  %v808_v18 = vadd.f32 %v807_v61, %v3492_v37  ;;  %1992 = vmatprep.subr.mxu1 %v4259_v59  ;;  %v3552_v11 = vld [vmem:[#allocation2 + $0x418] sm:$0xff]  ;;  %v3560_v42 = vld [vmem:[#allocation2 + $0x410] sm:$0xff] }
 0x167   : > { %1419 = vmatprep.mubr.f32.mxu0 %v349_v60  ;;  %v1064_v0 = vpop.f32.mrf.mxu1  ;;  %1993 = vmatpush2.msra.mxu1 %v721_v19  ;;  %v709_v60 = vld [vmem:[%s2958_s8 + $0x898] sm:$0xff] }
 0x168   : > { %v811_v9 = vpop.f32.mrf.mxu0  ;;  %1420 = vmatmul.mubr.f32.gmra.mxu0 %v348_v63  ;;  %v3504_v36 = vadd.f32 %v1064_v0, %v808_v18  ;;  %1659 = vmatprep.mubr.f32.mxu1 %v3260_v25  ;;  %v3570_v0 = vld [vmem:[#allocation2 + $0x448] sm:$0xff] }
 0x169   : > { %v812_v15 = vadd.f32 %v811_v9, %v3487_v12  ;;  %1769 = vmatprep.subr.mxu0 %v4259_v59  ;;  %v1068_v1 = vpop.f32.mrf.mxu1  ;;  %1660 = vmatmul.mubr.f32.gmra.mxu1 %v3263_v27 }
 0x16a   : > { %1770 = vmatpush2.msra.mxu0 %v622_v51  ;;  %v813_v32 = vpop.f32.mrf.mxu0  ;;  %1994 = vmatprep.subr.mxu1 %v4259_v59 }
 0x16b   : > { %v3511_v3 = vadd.f32 %v1068_v1, %v812_v15  ;;  %v814_v8 = vadd.f32 %v813_v32, %v3492_v37  ;;  %1425 = vmatprep.mubr.f32.mxu0 %v355_v56  ;;  %v1070_v39 = vpop.f32.mrf.mxu1  ;;  %1995 = vmatpush2.msra.mxu1 %v718_v58  ;;  %v706_v56 = vld [vmem:[%s2958_s8 + $0x880] sm:$0xff] }
 0x16c   : > { %v817_v25 = vpop.f32.mrf.mxu0  ;;  %1426 = vmatmul.mubr.f32.gmra.mxu0 %v354_v6  ;;  %1664 = vmatprep.mubr.f32.mxu1 %v3270_v38  ;;  %v616_v38 = vld [vmem:[%s2958_s8 + $0x5b0] sm:$0xff]  ;;  %v3578_v15 = vld [vmem:[#allocation2 + $0x440] sm:$0xff] }
 0x16d   : > { %v3518_v14 = vadd.f32 %v1070_v39, %v814_v8  ;;  %v818_v27 = vadd.f32 %v817_v25, %v3487_v12  ;;  %1771 = vmatprep.subr.mxu0 %v4259_v59  ;;  %v1074_v16 = vpop.f32.mrf.mxu1  ;;  %1665 = vmatmul.mubr.f32.gmra.mxu1 %v3273_v41  ;;  %v3588_v39 = vld [vmem:[#allocation2 + $0x478] sm:$0xff] }
 0x16e   : > { %1772 = vmatpush2.msra.mxu0 %v619_v10  ;;  %v819_v24 = vpop.f32.mrf.mxu0  ;;  %1996 = vmatprep.subr.mxu1 %v4259_v59 }
 0x16f   : > { %v3527_v48 = vadd.f32 %v1074_v16, %v818_v27  ;;  %v820_v31 = vadd.f32 %v819_v24, %v3492_v37  ;;  %1431 = vmatprep.mubr.f32.mxu0 %v3516_v13  ;;  %v1076_v21 = vpop.f32.mrf.mxu1  ;;  %1997 = vmatpush2.msra.mxu1 %v715_v20  ;;  %v703_v27 = vld [vmem:[%s2958_s8 + $0x868] sm:$0xff]  ;;  %v3596_v20 = vld [vmem:[#allocation2 + $0x470] sm:$0xff] }
 0x170   : > { %v823_v33 = vpop.f32.mrf.mxu0  ;;  %1432 = vmatmul.mubr.f32.gmra.mxu0 %v3524_v46  ;;  %1669 = vmatprep.mubr.f32.mxu1 %v3280_v52  ;;  %v613_v52 = vld [vmem:[%s2958_s8 + $0x598] sm:$0xff] }
 0x171   : > { %v3536_v41 = vadd.f32 %v1076_v21, %v820_v31  ;;  %v824_v40 = vadd.f32 %v823_v33, %v3487_v12  ;;  %1773 = vmatprep.subr.mxu0 %v4259_v59  ;;  %v1080_v43 = vpop.f32.mrf.mxu1  ;;  %1670 = vmatmul.mubr.f32.gmra.mxu1 %v3283_v55 }
 0x172   : > { %1774 = vmatpush2.msra.mxu0 %v616_v38  ;;  %v825_v57 = vpop.f32.mrf.mxu0  ;;  %1998 = vmatprep.subr.mxu1 %v4259_v59 }
 0x173   : > { %v3545_v50 = vadd.f32 %v1080_v43, %v824_v40  ;;  %v826_v30 = vadd.f32 %v825_v57, %v3492_v37  ;;  %1437 = vmatprep.mubr.f32.mxu0 %v3534_v23  ;;  %v1082_v53 = vpop.f32.mrf.mxu1  ;;  %1999 = vmatpush2.msra.mxu1 %v712_v2  ;;  %v3606_v40 = vld [vmem:[#allocation2 + $0x4a8] sm:$0xff]  ;;  %v700_v43 = vld [vmem:[%s2958_s8 + $0x850] sm:$0xff]  ;;  %v3614_v57 = vld [vmem:[#allocation2 + $0x4a0] sm:$0xff] }
 0x174   : > { %v829_v35 = vpop.f32.mrf.mxu0  ;;  %1438 = vmatmul.mubr.f32.gmra.mxu0 %v3542_v28  ;;  %1674 = vmatprep.mubr.f32.mxu1 %v3290_v4  ;;  %v610_v4 = vld [vmem:[%s2958_s8 + $0x580] sm:$0xff] }
 0x175   : > { %v3554_v55 = vadd.f32 %v1082_v53, %v826_v30  ;;  %v830_v17 = vadd.f32 %v829_v35, %v3487_v12  ;;  %1775 = vmatprep.subr.mxu0 %v4259_v59  ;;  %v1086_v19 = vpop.f32.mrf.mxu1  ;;  %1675 = vmatmul.mubr.f32.gmra.mxu1 %v3293_v7 }
 0x176   : > { %1776 = vmatpush2.msra.mxu0 %v613_v52  ;;  %v831_v63 = vpop.f32.mrf.mxu0  ;;  %2000 = vmatprep.subr.mxu1 %v4259_v59 }
 0x177   : > { %v3563_v44 = vadd.f32 %v1086_v19, %v830_v17  ;;  %v832_v61 = vadd.f32 %v831_v63, %v3492_v37  ;;  %1443 = vmatprep.mubr.f32.mxu0 %v3552_v11  ;;  %v1088_v18 = vpop.f32.mrf.mxu1  ;;  %2001 = vmatpush2.msra.mxu1 %v709_v60  ;;  %v3624_v19 = vld [vmem:[#allocation2 + $0x4d8] sm:$0xff] }
 0x178   : > { %v835_v51 = vpop.f32.mrf.mxu0  ;;  %1444 = vmatmul.mubr.f32.gmra.mxu0 %v3560_v42  ;;  %1679 = vmatprep.mubr.f32.mxu1 %v3300_v22  ;;  %v607_v22 = vld [vmem:[%s2958_s8 + $0x568] sm:$0xff] }
 0x179   : > { %v3572_v7 = vadd.f32 %v1088_v18, %v832_v61  ;;  %v836_v9 = vadd.f32 %v835_v51, %v3487_v12  ;;  %1777 = vmatprep.subr.mxu0 %v4259_v59  ;;  %v1092_v58 = vpop.f32.mrf.mxu1  ;;  %1680 = vmatmul.mubr.f32.gmra.mxu1 %v3303_v29  ;;  %v697_v61 = vld [vmem:[%s2958_s8 + $0x838] sm:$0xff] }
 0x17a   : > { %1778 = vmatpush2.msra.mxu0 %v610_v4  ;;  %v837_v6 = vpop.f32.mrf.mxu0  ;;  %2002 = vmatprep.subr.mxu1 %v4259_v59  ;;  %v3632_v4 = vld [vmem:[#allocation2 + $0x4d0] sm:$0xff] }
 0x17b   : > { %v3581_v1 = vadd.f32 %v1092_v58, %v836_v9  ;;  %v838_v32 = vadd.f32 %v837_v6, %v3492_v37  ;;  %1449 = vmatprep.mubr.f32.mxu0 %v3570_v0  ;;  %v1094_v8 = vpop.f32.mrf.mxu1  ;;  %2003 = vmatpush2.msra.mxu1 %v706_v56 }
 0x17c   : > { %v841_v10 = vpop.f32.mrf.mxu0  ;;  %1450 = vmatmul.mubr.f32.gmra.mxu0 %v3578_v15  ;;  %1684 = vmatprep.mubr.f32.mxu1 %v3310_v45  ;;  %v604_v45 = vld [vmem:[%s2958_s8 + $0x550] sm:$0xff] }
 0x17d   : > { %v3590_v29 = vadd.f32 %v1094_v8, %v838_v32  ;;  %v842_v25 = vadd.f32 %v841_v10, %v3487_v12  ;;  %1779 = vmatprep.subr.mxu0 %v4259_v59  ;;  %v1098_v16 = vpop.f32.mrf.mxu1  ;;  %1685 = vmatmul.mubr.f32.gmra.mxu1 %v3313_v47  ;;  %v3642_v32 = vld [vmem:[#allocation2 + $0x508] sm:$0xff]  ;;  %v694_v10 = vld [vmem:[%s2958_s8 + $0x820] sm:$0xff] }
 0x17e   : > { %1780 = vmatpush2.msra.mxu0 %v607_v22  ;;  %v843_v24 = vpop.f32.mrf.mxu0  ;;  %2004 = vmatprep.subr.mxu1 %v4259_v59  ;;  %v4261_v8 = vld [vmem:[#allocation12_spill] sm:$0xff] }
 0x17f   : > { %v3599_v31 = vadd.f32 %v1098_v16, %v842_v25  ;;  %v844_v38 = vadd.f32 %v843_v24, %v3492_v37  ;;  %1455 = vmatprep.mubr.f32.mxu0 %v3588_v39  ;;  %v1100_v21 = vpop.f32.mrf.mxu1  ;;  %2005 = vmatpush2.msra.mxu1 %v703_v27  ;;  %v3650_v25 = vld [vmem:[#allocation2 + $0x500] sm:$0xff]  ;;  %v4262_v16 = vld [vmem:[#allocation13_spill] sm:$0xff] }
 0x180   : > { %v847_v33 = vpop.f32.mrf.mxu0  ;;  %1456 = vmatmul.mubr.f32.gmra.mxu0 %v3596_v20  ;;  %1689 = vmatprep.mubr.f32.mxu1 %v3320_v62  ;;  %v601_v62 = vld [vmem:[%s2958_s8 + $0x538] sm:$0xff] }
 0x181   : > { %v3608_v47 = vadd.f32 %v1100_v21, %v844_v38  ;;  %v848_v2 = vadd.f32 %v847_v33, %v3487_v12  ;;  %1781 = vmatprep.subr.mxu0 %v4259_v59  ;;  %v1104_v30 = vpop.f32.mrf.mxu1  ;;  %1690 = vmatmul.mubr.f32.gmra.mxu1 %v3323_v5  ;;  %v595_v21 = vld [vmem:[%s2958_s8 + $0x508] sm:$0xff] }
 0x182   : > { %1782 = vmatpush2.msra.mxu0 %v604_v45  ;;  %v849_v52 = vpop.f32.mrf.mxu0  ;;  %2006 = vmatprep.subr.mxu1 %v4259_v59 }
 0x183   : > { %v3617_v53 = vadd.f32 %v1104_v30, %v848_v2  ;;  %v850_v35 = vadd.f32 %v849_v52, %v3492_v37  ;;  %1461 = vmatprep.mubr.f32.mxu0 %v3606_v40  ;;  %v1106_v17 = vpop.f32.mrf.mxu1  ;;  %2007 = vmatpush2.msra.mxu1 %v700_v43  ;;  %v3660_v43 = vld [vmem:[#allocation2 + $0x538] sm:$0xff] }
 0x184   : > { %v853_v60 = vpop.f32.mrf.mxu0  ;;  %1462 = vmatmul.mubr.f32.gmra.mxu0 %v3614_v57  ;;  %1694 = vmatprep.mubr.f32.mxu1 %v3330_v26  ;;  %v598_v26 = vld [vmem:[%s2958_s8 + $0x520] sm:$0xff] }
 0x185   : > { %v3626_v5 = vadd.f32 %v1106_v17, %v850_v35  ;;  %v854_v63 = vadd.f32 %v853_v60, %v3487_v12  ;;  %1783 = vmatprep.subr.mxu0 %v4259_v59  ;;  %v1110_v18 = vpop.f32.mrf.mxu1  ;;  %1695 = vmatmul.mubr.f32.gmra.mxu1 %v3333_v34  ;;  %v4263_v35 = vld [vmem:[#allocation14_spill] sm:$0xff] }
 0x186   : > { %1784 = vmatpush2.msra.mxu0 %v601_v62  ;;  %v855_v51 = vpop.f32.mrf.mxu0  ;;  %2008 = vmatprep.subr.mxu1 %v4259_v59  ;;  %v691_v62 = vld [vmem:[%s2958_s8 + $0x808] sm:$0xff]  ;;  %v3668_v17 = vld [vmem:[#allocation2 + $0x530] sm:$0xff] }
 0x187   : > { %v3635_v9 = vadd.f32 %v1110_v18, %v854_v63  ;;  %v856_v56 = vadd.f32 %v855_v51, %v3492_v37  ;;  %1467 = vmatprep.mubr.f32.mxu0 %v3624_v19  ;;  %v1112_v58 = vpop.f32.mrf.mxu1  ;;  %2009 = vmatpush2.msra.mxu1 %v697_v61  ;;  %v4264_v63 = vld [vmem:[#allocation15_spill] sm:$0xff] }
 0x188   : > { %v859_v6 = vpop.f32.mrf.mxu0  ;;  %1468 = vmatmul.mubr.f32.gmra.mxu0 %v3632_v4  ;;  %1699 = vmatprep.mubr.f32.mxu1 %v4261_v8 }
 0x189   : > { %v3644_v34 = vadd.f32 %v1112_v58, %v856_v56  ;;  %v860_v22 = vadd.f32 %v859_v6, %v3487_v12  ;;  %1785 = vmatprep.subr.mxu0 %v4259_v59  ;;  %v1116_v27 = vpop.f32.mrf.mxu1  ;;  %1700 = vmatmul.mubr.f32.gmra.mxu1 %v4262_v16  ;;  %v592_v56 = vld [vmem:[%s2958_s8 + $0x4f0] sm:$0xff]  ;;  %v3678_v6 = vld [vmem:[#allocation2 + $0x568] sm:$0xff]  ;;  %v3686_v16 = vld [vmem:[#allocation2 + $0x560] sm:$0xff] }
 0x18a   : > { %1786 = vmatpush2.msra.mxu0 %v598_v26  ;;  %v861_v24 = vpop.f32.mrf.mxu0  ;;  %2010 = vmatprep.subr.mxu1 %v4259_v59 }
 0x18b   : > { %v3653_v38 = vadd.f32 %v1116_v27, %v860_v22  ;;  %v862_v45 = vadd.f32 %v861_v24, %v3492_v37  ;;  %1473 = vmatprep.mubr.f32.mxu0 %v3642_v32  ;;  %v1118_v33 = vpop.f32.mrf.mxu1  ;;  %2011 = vmatpush2.msra.mxu1 %v694_v10  ;;  %v4265_v10 = vld [vmem:[#allocation16_spill] sm:$0xff]  ;;  %v688_v27 = vld [vmem:[%s2958_s8 + $0x7f0] sm:$0xff] }
 0x18c   : > { %v865_v2 = vpop.f32.mrf.mxu0  ;;  %1474 = vmatmul.mubr.f32.gmra.mxu0 %v3650_v25  ;;  %1704 = vmatprep.mubr.f32.mxu1 %v4263_v35 }
 0x18d   : > { %v3662_v30 = vadd.f32 %v1118_v33, %v862_v45  ;;  %v866_v52 = vadd.f32 %v865_v2, %v3487_v12  ;;  %1787 = vmatprep.subr.mxu0 %v4259_v59  ;;  %v1122_v60 = vpop.f32.mrf.mxu1  ;;  %1705 = vmatmul.mubr.f32.gmra.mxu1 %v4264_v63  ;;  %v2489_v45 = vld [vmem:[#allocation2 + $0x510] sm:$0xff] }
 0x18e   : > { %1788 = vmatpush2.msra.mxu0 %v595_v21  ;;  %v867_v61 = vpop.f32.mrf.mxu0  ;;  %2012 = vmatprep.subr.mxu1 %v4259_v59 }
 0x18f   : > { %v3671_v18 = vadd.f32 %v1122_v60, %v866_v52  ;;  %v868_v51 = vadd.f32 %v867_v61, %v3492_v37  ;;  %1479 = vmatprep.mubr.f32.mxu0 %v3660_v43  ;;  %v1124_v26 = vpop.f32.mrf.mxu1  ;;  %2013 = vmatpush2.msra.mxu1 %v691_v62  ;;  %v589_v52 = vld [vmem:[%s2958_s8 + $0x4d8] sm:$0xff] }
 0x190   : > { %v871_v58 = vpop.f32.mrf.mxu0  ;;  %1480 = vmatmul.mubr.f32.gmra.mxu0 %v3668_v17  ;;  %1709 = vmatprep.mubr.f32.mxu1 %v4265_v10  ;;  %v3695_v60 = vld [vmem:[#allocation2 + $0x598] sm:$0xff] }
 0x191   : > { %v3680_v22 = vadd.f32 %v1124_v26, %v868_v51  ;;  %v872_v8 = vadd.f32 %v871_v58, %v3487_v12  ;;  %1789 = vmatprep.subr.mxu0 %v4259_v59  ;;  %v1128_v24 = vpop.f32.mrf.mxu1  ;;  %1710 = vmatmul.mubr.f32.gmra.mxu1 %v2489_v45  ;;  %4266 = vst [vmem:[#allocation12_spill] sm:$0xff] %v3695_v60  ;;  %v2490_v51 = vld [vmem:[#allocation2 + $0x548] sm:$0xff]  ;;  %v3702_v26 = vld [vmem:[#allocation2 + $0x590] sm:$0xff]  ;;  %v586_v45 = vld [vmem:[%s2958_s8 + $0x4c0] sm:$0xff] }
 0x192   : > { %1790 = vmatpush2.msra.mxu0 %v592_v56  ;;  %v873_v21 = vpop.f32.mrf.mxu0  ;;  %2014 = vmatprep.subr.mxu1 %v4259_v59  ;;  %v685_v56 = vld [vmem:[%s2958_s8 + $0x7d8] sm:$0xff]  ;;  %4267 = vst [vmem:[#allocation13_spill] sm:$0xff] %v3702_v26 }
 0x193   : > { %v3688_v33 = vadd.f32 %v1128_v24, %v872_v8  ;;  %v874_v2 = vadd.f32 %v873_v21, %v3492_v37  ;;  %1485 = vmatprep.mubr.f32.mxu0 %v3678_v6  ;;  %v1130_v35 = vpop.f32.mrf.mxu1  ;;  %2015 = vmatpush2.msra.mxu1 %v688_v27  ;;  %v2491_v8 = vld [vmem:[#allocation2 + $0x540] sm:$0xff] }
 0x194   : > { %v877_v62 = vpop.f32.mrf.mxu0  ;;  %1486 = vmatmul.mubr.f32.gmra.mxu0 %v3686_v16  ;;  %1714 = vmatprep.mubr.f32.mxu1 %v2490_v51  ;;  %v682_v51 = vld [vmem:[%s2958_s8 + $0x7c0] sm:$0xff] }
 0x195   : > { %v3697_v63 = vadd.f32 %v1130_v35, %v874_v2  ;;  %v878_v61 = vadd.f32 %v877_v62, %v3487_v12  ;;  %1791 = vmatprep.subr.mxu0 %v4259_v59  ;;  %v1134_v58 = vpop.f32.mrf.mxu1  ;;  %1715 = vmatmul.mubr.f32.gmra.mxu1 %v2491_v8  ;;  %v3711_v35 = vld [vmem:[#allocation2 + $0x5c8] sm:$0xff] }
 0x196   : > { %1792 = vmatpush2.msra.mxu0 %v589_v52  ;;  %v879_v10 = vpop.f32.mrf.mxu0  ;;  %2016 = vmatprep.subr.mxu1 %v4259_v59  ;;  %4268 = vst [vmem:[#allocation14_spill] sm:$0xff] %v3711_v35 }
 0x197   : > { %v3704_v27 = vadd.f32 %v1134_v58, %v878_v61  ;;  %v880_v24 = vadd.f32 %v879_v10, %v3492_v37  ;;  %1491 = vmatprep.mubr.f32.mxu0 %v3695_v60  ;;  %v1136_v21 = vpop.f32.mrf.mxu1  ;;  %2017 = vmatpush2.msra.mxu1 %v685_v56  ;;  %v2492_v61 = vld [vmem:[#allocation2 + $0x578] sm:$0xff]  ;;  %v3718_v58 = vld [vmem:[#allocation2 + $0x5c0] sm:$0xff]  ;;  %v2493_v10 = vld [vmem:[#allocation2 + $0x570] sm:$0xff] }
 0x198   : > { %v883_v2 = vpop.f32.mrf.mxu0  ;;  %1492 = vmatmul.mubr.f32.gmra.mxu0 %v3702_v26  ;;  %1719 = vmatprep.mubr.f32.mxu1 %v2492_v61  ;;  %4269 = vst [vmem:[#allocation15_spill] sm:$0xff] %v3718_v58  ;;  %v3727_v26 = vld [vmem:[#allocation2 + $0x5f8] sm:$0xff]  ;;  %v2508_v60 = vld [vmem:[#allocation2 + $0x70] sm:$0xff] }
 0x199   : > { %v3713_v62 = vadd.f32 %v1136_v21, %v880_v24  ;;  %v884_v52 = vadd.f32 %v883_v2, %v3487_v12  ;;  %1793 = vmatprep.subr.mxu0 %v4259_v59  ;;  %v1140_v8 = vpop.f32.mrf.mxu1  ;;  %1720 = vmatmul.mubr.f32.gmra.mxu1 %v2493_v10  ;;  %v583_v21 = vld [vmem:[%s2958_s8 + $0x4a8] sm:$0xff]  ;;  %4271 = vst [vmem:[#allocation18_spill] sm:$0xff] %v3727_v26 }
 0x19a   : > { %1794 = vmatpush2.msra.mxu0 %v586_v45  ;;  %v885_v56 = vpop.f32.mrf.mxu0  ;;  %2018 = vmatprep.subr.mxu1 %v4259_v59 }
 0x19b   : > { %v3720_v54 = vadd.f32 %v1140_v8, %v884_v52  ;;  %v886_v24 = vadd.f32 %v885_v56, %v3492_v37  ;;  %1497 = vmatprep.mubr.f32.mxu0 %v3711_v35  ;;  %v1142_v2 = vpop.f32.mrf.mxu1  ;;  %2019 = vmatpush2.msra.mxu1 %v682_v51  ;;  %v2494_v52 = vld [vmem:[#allocation2 + $0x5a8] sm:$0xff]  ;;  %v3734_v56 = vld [vmem:[#allocation2 + $0x5f0] sm:$0xff] }
 0x19c   : > { %v889_v61 = vpop.f32.mrf.mxu0  ;;  %1498 = vmatmul.mubr.f32.gmra.mxu0 %v3718_v58  ;;  %1724 = vmatprep.mubr.f32.mxu1 %v2494_v52  ;;  %v679_v8 = vld [vmem:[%s2958_s8 + $0x7a8] sm:$0xff]  ;;  %4273 = vst [vmem:[#allocation20_spill] sm:$0xff] %v3734_v56 }
 0x19d   : > { %4270 = vst [vmem:[#allocation16_spill] sm:$0xff] %v3720_v54  ;;  %v3729_v10 = vadd.f32 %v1142_v2, %v886_v24  ;;  %v890_v45 = vadd.f32 %v889_v61, %v3487_v12  ;;  %1795 = vmatprep.subr.mxu0 %v4259_v59  ;;  %v1146_v35 = vpop.f32.mrf.mxu1  ;;  %v2495_v54 = vld [vmem:[#allocation2 + $0x5a0] sm:$0xff]  ;;  %2020 = vmatprep.subr.mxu1 %v4259_v59  ;;  %v580_v2 = vld [vmem:[%s2958_s8 + $0x490] sm:$0xff] }
 0x19e   : > { %1725 = vmatmul.mubr.f32.gmra.mxu1 %v2495_v54  ;;  %1796 = vmatpush2.msra.mxu0 %v583_v21  ;;  %v891_v51 = vpop.f32.mrf.mxu0  ;;  %v2496_v21 = vld [vmem:[#allocation2 + $0x5d8] sm:$0xff] }
 0x19f   : > { %4272 = vst [vmem:[#allocation19_spill] sm:$0xff] %v3729_v10  ;;  %v3736_v58 = vadd.f32 %v1146_v35, %v890_v45  ;;  %v892_v24 = vadd.f32 %v891_v51, %v3492_v37  ;;  %1503 = vmatprep.mubr.f32.mxu0 %v3727_v26  ;;  %v1148_v61 = vpop.f32.mrf.mxu1  ;;  %2021 = vmatpush2.msra.mxu1 %v679_v8  ;;  %v676_v35 = vld [vmem:[%s2958_s8 + $0x790] sm:$0xff] }
 0x1a0   : > { %v895_v52 = vpop.f32.mrf.mxu0  ;;  %1504 = vmatmul.mubr.f32.gmra.mxu0 %v3734_v56  ;;  %1729 = vmatprep.mubr.f32.mxu1 %v2496_v21  ;;  %v2497_v51 = vld [vmem:[#allocation2 + $0x5d0] sm:$0xff] }
 0x1a1   : > { %4274 = vst [vmem:[#allocation21_spill] sm:$0xff] %v3736_v58  ;;  %v3743_v10 = vadd.f32 %v1148_v61, %v892_v24  ;;  %v896_v54 = vadd.f32 %v895_v52, %v3487_v12  ;;  %1797 = vmatprep.subr.mxu0 %v4259_v59  ;;  %v1152_v45 = vpop.f32.mrf.mxu1  ;;  %2022 = vmatprep.subr.mxu1 %v4259_v59  ;;  %v2498_v24 = vld [vmem:[#allocation2 + $0x18] sm:$0xff]  ;;  %v2499_v21 = vld [vmem:[#allocation2 + $0x10] sm:$0xff] }
 0x1a2   : > { %1730 = vmatmul.mubr.f32.gmra.mxu1 %v2497_v51  ;;  %1798 = vmatpush2.msra.mxu0 %v580_v2  ;;  %v897_v26 = vpop.f32.mrf.mxu0  ;;  %v2500_v51 = vld [vmem:[#allocation2 + $0x28] sm:$0xff] }
 0x1a3   : > { %4275 = vst [vmem:[#allocation22_spill] sm:$0xff] %v3743_v10  ;;  %v3748_v58 = vadd.f32 %v1152_v45, %v896_v54  ;;  %v898_v8 = vadd.f32 %v897_v26, %v3492_v37  ;;  %1799 = vmatprep.mubr.f32.mxu0 %v2498_v24  ;;  %v1154_v61 = vpop.f32.mrf.mxu1  ;;  %2023 = vmatpush2.msra.mxu1 %v676_v35  ;;  %v2501_v2 = vld [vmem:[#allocation2 + $0x48] sm:$0xff]  ;;  %v2502_v45 = vld [vmem:[#allocation2 + $0x20] sm:$0xff]  ;;  %v2503_v35 = vld [vmem:[#allocation2 + $0x58] sm:$0xff] }
 0x1a4   : > { %v901_v52 = vpop.f32.mrf.mxu0  ;;  %1800 = vmatmul.mubr.f32.vlgmr.msra.gmra.mxu0 %v2499_v21  ;;  %2024 = vmatprep.mubr.f32.mxu1 %v2500_v51  ;;  %v2505_v51 = vld [vmem:[#allocation2 + $0x78] sm:$0xff] }
 0x1a5   : > { %4276 = vst [vmem:[#allocation23_spill] sm:$0xff] %v3748_v58  ;;  %v3752_v56 = vadd.f32 %v1154_v61, %v898_v8  ;;  %v902_v10 = vadd.f32 %v901_v52, %v3487_v12  ;;  %1804 = vmatprep.mubr.f32.mxu0 %v2501_v2  ;;  %v1158_v54 = vpop.f32.mrf.mxu1  ;;  %v2504_v8 = vld [vmem:[#allocation2 + $0x40] sm:$0xff] }
 0x1a6   : > { %2025 = vmatmul.mubr.f32.vlgmr.msra.gmra.mxu1 %v2502_v45  ;;  %v903_v26 = vpop.f32.mrf.mxu0 }
 0x1a7   : > { %4277 = vst [vmem:[#allocation24_spill] sm:$0xff] %v3752_v56  ;;  %v3755_v59 = vadd.f32 %v1158_v54, %v902_v10  ;;  %v904_v24 = vadd.f32 %v903_v26, %v3492_v37  ;;  %2029 = vmatprep.mubr.f32.mxu1 %v2503_v35  ;;  %v1160_v58 = vpop.f32.mrf.mxu1  ;;  %v2506_v56 = vld [vmem:[#allocation2 + $0x50] sm:$0xff]  ;;  %v2507_v26 = vld [vmem:[#allocation2 + $0x88] sm:$0xff] }
 0x1a8   : > { %v907_v21 = vpop.f32.mrf.mxu0  ;;  %1805 = vmatmul.mubr.f32.gmra.mxu0 %v2504_v8 }
 0x1a9   : > { %4278 = vst [vmem:[#allocation25_spill] sm:$0xff] %v3755_v59  ;;  %v3758_v61 = vadd.f32 %v1160_v58, %v904_v24  ;;  %v908_v52 = vadd.f32 %v907_v21, %v3487_v12  ;;  %1809 = vmatprep.mubr.f32.mxu0 %v2505_v51  ;;  %v1164_v2 = vpop.f32.mrf.mxu1  ;;  %v2509_v21 = vld [vmem:[#allocation2 + $0xa8] sm:$0xff]  ;;  %v2510_v51 = vld [vmem:[#allocation2 + $0x80] sm:$0xff] }
 0x1aa   : > { %2030 = vmatmul.mubr.f32.gmra.mxu1 %v2506_v56  ;;  %v909_v45 = vpop.f32.mrf.mxu0 }
 0x1ab   : > { %4279 = vst [vmem:[#allocation26_spill] sm:$0xff] %v3758_v61  ;;  %v3761_v10 = vadd.f32 %v1164_v2, %v908_v52  ;;  %v910_v54 = vadd.f32 %v909_v45, %v3492_v37  ;;  %2034 = vmatprep.mubr.f32.mxu1 %v2507_v26  ;;  %v1166_v35 = vpop.f32.mrf.mxu1  ;;  %v2511_v45 = vld [vmem:[#allocation2 + $0xb8] sm:$0xff]  ;;  %v2512_v61 = vld [vmem:[#allocation2 + $0xa0] sm:$0xff] }
 0x1ac   : > { %v913_v59 = vpop.f32.mrf.mxu0  ;;  %1810 = vmatmul.mubr.f32.gmra.mxu0 %v2508_v60 }
 0x1ad   : > { %4280 = vst [vmem:[#allocation27_spill] sm:$0xff] %v3761_v10  ;;  %v3764_v58 = vadd.f32 %v1166_v35, %v910_v54  ;;  %v914_v24 = vadd.f32 %v913_v59, %v3487_v12  ;;  %1814 = vmatprep.mubr.f32.mxu0 %v2509_v21  ;;  %v1170_v8 = vpop.f32.mrf.mxu1  ;;  %v2513_v54 = vld [vmem:[#allocation2 + $0xd8] sm:$0xff]  ;;  %v2514_v21 = vld [vmem:[#allocation2 + $0xb0] sm:$0xff] }
 0x1ae   : > { %2035 = vmatmul.mubr.f32.gmra.mxu1 %v2510_v51  ;;  %v915_v56 = vpop.f32.mrf.mxu0 }
 0x1af   : > { %4281 = vst [vmem:[#allocation28_spill] sm:$0xff] %v3764_v58  ;;  %v3767_v52 = vadd.f32 %v1170_v8, %v914_v24  ;;  %v916_v2 = vadd.f32 %v915_v56, %v3492_v37  ;;  %2039 = vmatprep.mubr.f32.mxu1 %v2511_v45  ;;  %v1172_v26 = vpop.f32.mrf.mxu1  ;;  %v2515_v56 = vld [vmem:[#allocation2 + $0xe8] sm:$0xff]  ;;  %v2516_v58 = vld [vmem:[#allocation2 + $0xd0] sm:$0xff] }
 0x1b0   : > { %v919_v10 = vpop.f32.mrf.mxu0  ;;  %1815 = vmatmul.mubr.f32.gmra.mxu0 %v2512_v61 }
 0x1b1   : > { %4282 = vst [vmem:[#allocation29_spill] sm:$0xff] %v3767_v52  ;;  %v3770_v60 = vadd.f32 %v1172_v26, %v916_v2  ;;  %v920_v59 = vadd.f32 %v919_v10, %v3487_v12  ;;  %1819 = vmatprep.mubr.f32.mxu0 %v2513_v54  ;;  %v1176_v35 = vpop.f32.mrf.mxu1  ;;  %v2517_v2 = vld [vmem:[#allocation2 + $0x108] sm:$0xff]  ;;  %v2518_v54 = vld [vmem:[#allocation2 + $0xe0] sm:$0xff] }
 0x1b2   : > { %2040 = vmatmul.mubr.f32.gmra.mxu1 %v2514_v21  ;;  %v921_v51 = vpop.f32.mrf.mxu0 }
 0x1b3   : > { %4283 = vst [vmem:[#allocation30_spill] sm:$0xff] %v3770_v60  ;;  %v3773_v24 = vadd.f32 %v1176_v35, %v920_v59  ;;  %v922_v8 = vadd.f32 %v921_v51, %v3492_v37  ;;  %2044 = vmatprep.mubr.f32.mxu1 %v2515_v56  ;;  %v1178_v45 = vpop.f32.mrf.mxu1  ;;  %v2519_v51 = vld [vmem:[#allocation2 + $0x118] sm:$0xff]  ;;  %v2520_v60 = vld [vmem:[#allocation2 + $0x100] sm:$0xff] }
 0x1b4   : > { %v925_v52 = vpop.f32.mrf.mxu0  ;;  %1820 = vmatmul.mubr.f32.gmra.mxu0 %v2516_v58 }
 0x1b5   : > { %4284 = vst [vmem:[#allocation31_spill] sm:$0xff] %v3773_v24  ;;  %v3776_v61 = vadd.f32 %v1178_v45, %v922_v8  ;;  %v926_v10 = vadd.f32 %v925_v52, %v3487_v12  ;;  %1824 = vmatprep.mubr.f32.mxu0 %v2517_v2  ;;  %v1182_v26 = vpop.f32.mrf.mxu1  ;;  %v2521_v8 = vld [vmem:[#allocation2 + $0x138] sm:$0xff]  ;;  %v2522_v2 = vld [vmem:[#allocation2 + $0x110] sm:$0xff] }
 0x1b6   : > { %2045 = vmatmul.mubr.f32.gmra.mxu1 %v2518_v54  ;;  %v927_v21 = vpop.f32.mrf.mxu0 }
 0x1b7   : > { %4285 = vst [vmem:[#allocation32_spill] sm:$0xff] %v3776_v61  ;;  %v3779_v59 = vadd.f32 %v1182_v26, %v926_v10  ;;  %v928_v35 = vadd.f32 %v927_v21, %v3492_v37  ;;  %2049 = vmatprep.mubr.f32.mxu1 %v2519_v51  ;;  %v1184_v56 = vpop.f32.mrf.mxu1  ;;  %v2523_v21 = vld [vmem:[#allocation2 + $0x148] sm:$0xff]  ;;  %v2524_v61 = vld [vmem:[#allocation2 + $0x130] sm:$0xff] }
 0x1b8   : > { %v931_v24 = vpop.f32.mrf.mxu0  ;;  %1825 = vmatmul.mubr.f32.gmra.mxu0 %v2520_v60 }
 0x1b9   : > { %4286 = vst [vmem:[#allocation33_spill] sm:$0xff] %v3779_v59  ;;  %v3782_v58 = vadd.f32 %v1184_v56, %v928_v35  ;;  %v932_v52 = vadd.f32 %v931_v24, %v3487_v12  ;;  %1829 = vmatprep.mubr.f32.mxu0 %v2521_v8  ;;  %v1188_v45 = vpop.f32.mrf.mxu1  ;;  %v2525_v35 = vld [vmem:[#allocation2 + $0x168] sm:$0xff]  ;;  %v2526_v8 = vld [vmem:[#allocation2 + $0x140] sm:$0xff] }
 0x1ba   : > { %2050 = vmatmul.mubr.f32.gmra.mxu1 %v2522_v2  ;;  %v933_v54 = vpop.f32.mrf.mxu0 }
 0x1bb   : > { %4287 = vst [vmem:[#allocation34_spill] sm:$0xff] %v3782_v58  ;;  %v3785_v10 = vadd.f32 %v1188_v45, %v932_v52  ;;  %v934_v26 = vadd.f32 %v933_v54, %v3492_v37  ;;  %2054 = vmatprep.mubr.f32.mxu1 %v2523_v21  ;;  %v1190_v51 = vpop.f32.mrf.mxu1  ;;  %v2527_v54 = vld [vmem:[#allocation2 + $0x178] sm:$0xff]  ;;  %v2528_v58 = vld [vmem:[#allocation2 + $0x160] sm:$0xff] }
 0x1bc   : > { %v937_v59 = vpop.f32.mrf.mxu0  ;;  %1830 = vmatmul.mubr.f32.gmra.mxu0 %v2524_v61 }
 0x1bd   : > { %4288 = vst [vmem:[#allocation35_spill] sm:$0xff] %v3785_v10  ;;  %v3788_v60 = vadd.f32 %v1190_v51, %v934_v26  ;;  %v938_v24 = vadd.f32 %v937_v59, %v3487_v12  ;;  %1834 = vmatprep.mubr.f32.mxu0 %v2525_v35  ;;  %v1194_v56 = vpop.f32.mrf.mxu1  ;;  %v2529_v26 = vld [vmem:[#allocation2 + $0x198] sm:$0xff]  ;;  %v2530_v35 = vld [vmem:[#allocation2 + $0x170] sm:$0xff] }
 0x1be   : > { %2055 = vmatmul.mubr.f32.gmra.mxu1 %v2526_v8  ;;  %v939_v2 = vpop.f32.mrf.mxu0 }
 0x1bf   : > { %4289 = vst [vmem:[#allocation36_spill] sm:$0xff] %v3788_v60  ;;  %v3791_v52 = vadd.f32 %v1194_v56, %v938_v24  ;;  %v940_v45 = vadd.f32 %v939_v2, %v3492_v37  ;;  %2059 = vmatprep.mubr.f32.mxu1 %v2527_v54  ;;  %v1196_v21 = vpop.f32.mrf.mxu1  ;;  %v2531_v2 = vld [vmem:[#allocation2 + $0x1a8] sm:$0xff]  ;;  %v2532_v60 = vld [vmem:[#allocation2 + $0x190] sm:$0xff] }
 0x1c0   : > { %v943_v10 = vpop.f32.mrf.mxu0  ;;  %1835 = vmatmul.mubr.f32.gmra.mxu0 %v2528_v58 }
 0x1c1   : > { %4290 = vst [vmem:[#allocation37_spill] sm:$0xff] %v3791_v52  ;;  %v3794_v61 = vadd.f32 %v1196_v21, %v940_v45  ;;  %v944_v59 = vadd.f32 %v943_v10, %v3487_v12  ;;  %1839 = vmatprep.mubr.f32.mxu0 %v2529_v26  ;;  %v1200_v51 = vpop.f32.mrf.mxu1  ;;  %v2533_v45 = vld [vmem:[#allocation2 + $0x1c8] sm:$0xff]  ;;  %v2534_v26 = vld [vmem:[#allocation2 + $0x1a0] sm:$0xff] }
 0x1c2   : > { %2060 = vmatmul.mubr.f32.gmra.mxu1 %v2530_v35  ;;  %v945_v8 = vpop.f32.mrf.mxu0 }
 0x1c3   : > { %4291 = vst [vmem:[#allocation38_spill] sm:$0xff] %v3794_v61  ;;  %v3797_v24 = vadd.f32 %v1200_v51, %v944_v59  ;;  %v946_v56 = vadd.f32 %v945_v8, %v3492_v37  ;;  %2064 = vmatprep.mubr.f32.mxu1 %v2531_v2  ;;  %v1202_v54 = vpop.f32.mrf.mxu1  ;;  %v2535_v8 = vld [vmem:[#allocation2 + $0x1d8] sm:$0xff]  ;;  %v2536_v61 = vld [vmem:[#allocation2 + $0x1c0] sm:$0xff] }
 0x1c4   : > { %v949_v52 = vpop.f32.mrf.mxu0  ;;  %1840 = vmatmul.mubr.f32.gmra.mxu0 %v2532_v60 }
 0x1c5   : > { %4292 = vst [vmem:[#allocation39_spill] sm:$0xff] %v3797_v24  ;;  %v3800_v58 = vadd.f32 %v1202_v54, %v946_v56  ;;  %v950_v10 = vadd.f32 %v949_v52, %v3487_v12  ;;  %1844 = vmatprep.mubr.f32.mxu0 %v2533_v45  ;;  %v1206_v21 = vpop.f32.mrf.mxu1  ;;  %v2537_v56 = vld [vmem:[#allocation2 + $0x1f8] sm:$0xff]  ;;  %v2538_v45 = vld [vmem:[#allocation2 + $0x1d0] sm:$0xff] }
 0x1c6   : > { %2065 = vmatmul.mubr.f32.gmra.mxu1 %v2534_v26  ;;  %v951_v35 = vpop.f32.mrf.mxu0 }
 0x1c7   : > { %4293 = vst [vmem:[#allocation40_spill] sm:$0xff] %v3800_v58  ;;  %v3803_v59 = vadd.f32 %v1206_v21, %v950_v10  ;;  %v952_v51 = vadd.f32 %v951_v35, %v3492_v37  ;;  %2069 = vmatprep.mubr.f32.mxu1 %v2535_v8  ;;  %v1208_v2 = vpop.f32.mrf.mxu1  ;;  %v2539_v35 = vld [vmem:[#allocation2 + $0x208] sm:$0xff]  ;;  %v2540_v58 = vld [vmem:[#allocation2 + $0x1f0] sm:$0xff] }
 0x1c8   : > { %v955_v24 = vpop.f32.mrf.mxu0  ;;  %1845 = vmatmul.mubr.f32.gmra.mxu0 %v2536_v61 }
 0x1c9   : > { %4294 = vst [vmem:[#allocation41_spill] sm:$0xff] %v3803_v59  ;;  %v3806_v60 = vadd.f32 %v1208_v2, %v952_v51  ;;  %v956_v52 = vadd.f32 %v955_v24, %v3487_v12  ;;  %1849 = vmatprep.mubr.f32.mxu0 %v2537_v56  ;;  %v1212_v54 = vpop.f32.mrf.mxu1  ;;  %v2541_v51 = vld [vmem:[#allocation2 + $0x228] sm:$0xff]  ;;  %v2542_v56 = vld [vmem:[#allocation2 + $0x200] sm:$0xff] }
 0x1ca   : > { %2070 = vmatmul.mubr.f32.gmra.mxu1 %v2538_v45  ;;  %v957_v26 = vpop.f32.mrf.mxu0 }
 0x1cb   : > { %4295 = vst [vmem:[#allocation42_spill] sm:$0xff] %v3806_v60  ;;  %v3809_v10 = vadd.f32 %v1212_v54, %v956_v52  ;;  %v958_v21 = vadd.f32 %v957_v26, %v3492_v37  ;;  %2074 = vmatprep.mubr.f32.mxu1 %v2539_v35  ;;  %v1214_v8 = vpop.f32.mrf.mxu1  ;;  %v2543_v26 = vld [vmem:[#allocation2 + $0x238] sm:$0xff]  ;;  %v2544_v60 = vld [vmem:[#allocation2 + $0x220] sm:$0xff] }
 0x1cc   : > { %v961_v59 = vpop.f32.mrf.mxu0  ;;  %1850 = vmatmul.mubr.f32.gmra.mxu0 %v2540_v58 }
 0x1cd   : > { %4296 = vst [vmem:[#allocation43_spill] sm:$0xff] %v3809_v10  ;;  %v3812_v61 = vadd.f32 %v1214_v8, %v958_v21  ;;  %v962_v24 = vadd.f32 %v961_v59, %v3487_v12  ;;  %1854 = vmatprep.mubr.f32.mxu0 %v2541_v51  ;;  %v1218_v2 = vpop.f32.mrf.mxu1  ;;  %v2545_v21 = vld [vmem:[#allocation2 + $0x258] sm:$0xff]  ;;  %v2546_v51 = vld [vmem:[#allocation2 + $0x230] sm:$0xff] }
 0x1ce   : > { %2075 = vmatmul.mubr.f32.gmra.mxu1 %v2542_v56  ;;  %v963_v45 = vpop.f32.mrf.mxu0 }
 0x1cf   : > { %4297 = vst [vmem:[#allocation44_spill] sm:$0xff] %v3812_v61  ;;  %v3815_v52 = vadd.f32 %v1218_v2, %v962_v24  ;;  %v964_v54 = vadd.f32 %v963_v45, %v3492_v37  ;;  %2079 = vmatprep.mubr.f32.mxu1 %v2543_v26  ;;  %v1220_v35 = vpop.f32.mrf.mxu1  ;;  %v2547_v45 = vld [vmem:[#allocation2 + $0x268] sm:$0xff]  ;;  %v2548_v61 = vld [vmem:[#allocation2 + $0x250] sm:$0xff] }
 0x1d0   : > { %v967_v10 = vpop.f32.mrf.mxu0  ;;  %1855 = vmatmul.mubr.f32.gmra.mxu0 %v2544_v60 }
 0x1d1   : > { %4298 = vst [vmem:[#allocation45_spill] sm:$0xff] %v3815_v52  ;;  %v3818_v58 = vadd.f32 %v1220_v35, %v964_v54  ;;  %v968_v59 = vadd.f32 %v967_v10, %v3487_v12  ;;  %1859 = vmatprep.mubr.f32.mxu0 %v2545_v21  ;;  %v1224_v8 = vpop.f32.mrf.mxu1  ;;  %v2549_v54 = vld [vmem:[#allocation2 + $0x288] sm:$0xff]  ;;  %v2550_v21 = vld [vmem:[#allocation2 + $0x260] sm:$0xff] }
 0x1d2   : > { %2080 = vmatmul.mubr.f32.gmra.mxu1 %v2546_v51  ;;  %v969_v56 = vpop.f32.mrf.mxu0 }
 0x1d3   : > { %4299 = vst [vmem:[#allocation46_spill] sm:$0xff] %v3818_v58  ;;  %v3821_v24 = vadd.f32 %v1224_v8, %v968_v59  ;;  %v970_v2 = vadd.f32 %v969_v56, %v3492_v37  ;;  %2084 = vmatprep.mubr.f32.mxu1 %v2547_v45  ;;  %v1226_v26 = vpop.f32.mrf.mxu1  ;;  %v2551_v56 = vld [vmem:[#allocation2 + $0x298] sm:$0xff]  ;;  %v2552_v58 = vld [vmem:[#allocation2 + $0x280] sm:$0xff] }
 0x1d4   : > { %v973_v52 = vpop.f32.mrf.mxu0  ;;  %1860 = vmatmul.mubr.f32.gmra.mxu0 %v2548_v61 }
 0x1d5   : > { %4300 = vst [vmem:[#allocation47_spill] sm:$0xff] %v3821_v24  ;;  %v3824_v60 = vadd.f32 %v1226_v26, %v970_v2  ;;  %v974_v10 = vadd.f32 %v973_v52, %v3487_v12  ;;  %1864 = vmatprep.mubr.f32.mxu0 %v2549_v54  ;;  %v1230_v35 = vpop.f32.mrf.mxu1  ;;  %v2553_v2 = vld [vmem:[#allocation2 + $0x2b8] sm:$0xff]  ;;  %v2554_v54 = vld [vmem:[#allocation2 + $0x290] sm:$0xff] }
 0x1d6   : > { %2085 = vmatmul.mubr.f32.gmra.mxu1 %v2550_v21  ;;  %v975_v51 = vpop.f32.mrf.mxu0 }
 0x1d7   : > { %4301 = vst [vmem:[#allocation48_spill] sm:$0xff] %v3824_v60  ;;  %v3827_v59 = vadd.f32 %v1230_v35, %v974_v10  ;;  %v976_v8 = vadd.f32 %v975_v51, %v3492_v37  ;;  %2089 = vmatprep.mubr.f32.mxu1 %v2551_v56  ;;  %v1232_v45 = vpop.f32.mrf.mxu1  ;;  %v2555_v51 = vld [vmem:[#allocation2 + $0x2c8] sm:$0xff]  ;;  %v2556_v60 = vld [vmem:[#allocation2 + $0x2b0] sm:$0xff] }
 0x1d8   : > { %v979_v24 = vpop.f32.mrf.mxu0  ;;  %1865 = vmatmul.mubr.f32.gmra.mxu0 %v2552_v58 }
 0x1d9   : > { %4302 = vst [vmem:[#allocation49_spill] sm:$0xff] %v3827_v59  ;;  %v3830_v61 = vadd.f32 %v1232_v45, %v976_v8  ;;  %v980_v52 = vadd.f32 %v979_v24, %v3487_v12  ;;  %1869 = vmatprep.mubr.f32.mxu0 %v2553_v2  ;;  %v1236_v26 = vpop.f32.mrf.mxu1  ;;  %v2557_v8 = vld [vmem:[#allocation2 + $0x2e8] sm:$0xff]  ;;  %v2558_v2 = vld [vmem:[#allocation2 + $0x2c0] sm:$0xff] }
 0x1da   : > { %2090 = vmatmul.mubr.f32.gmra.mxu1 %v2554_v54  ;;  %v981_v21 = vpop.f32.mrf.mxu0 }
 0x1db   : > { %v3833_v10 = vadd.f32 %v1236_v26, %v980_v52  ;;  %v982_v35 = vadd.f32 %v981_v21, %v3492_v37  ;;  %2094 = vmatprep.mubr.f32.mxu1 %v2555_v51  ;;  %v1238_v56 = vpop.f32.mrf.mxu1  ;;  %v2559_v21 = vld [vmem:[#allocation2 + $0x2f8] sm:$0xff] }
 0x1dc   : > { %v985_v59 = vpop.f32.mrf.mxu0  ;;  %1870 = vmatmul.mubr.f32.gmra.mxu0 %v2556_v60  ;;  %v2560_v60 = vld [vmem:[#allocation2 + $0x2e0] sm:$0xff] }
 0x1dd   : > { %4303 = vst [vmem:[#allocation50_spill] sm:$0xff] %v3833_v10  ;;  %v3836_v58 = vadd.f32 %v1238_v56, %v982_v35  ;;  %v986_v24 = vadd.f32 %v985_v59, %v3487_v12  ;;  %1874 = vmatprep.mubr.f32.mxu0 %v2557_v8  ;;  %v1242_v45 = vpop.f32.mrf.mxu1  ;;  %v2561_v56 = vld [vmem:[#allocation2 + $0x318] sm:$0xff] }
 0x1de   : > { %2095 = vmatmul.mubr.f32.gmra.mxu1 %v2558_v2  ;;  %v987_v52 = vpop.f32.mrf.mxu0  ;;  %v2562_v2 = vld [vmem:[#allocation2 + $0x2f0] sm:$0xff] }
 0x1df   : > { %4304 = vst [vmem:[#allocation51_spill] sm:$0xff] %v3836_v58  ;;  %v3839_v26 = vadd.f32 %v1242_v45, %v986_v24  ;;  %v988_v54 = vadd.f32 %v987_v52, %v3492_v37  ;;  %2099 = vmatprep.mubr.f32.mxu1 %v2559_v21  ;;  %v1244_v51 = vpop.f32.mrf.mxu1  ;;  %v2563_v21 = vld [vmem:[#allocation2 + $0x328] sm:$0xff] }
 0x1e0   : > { %v991_v10 = vpop.f32.mrf.mxu0  ;;  %1875 = vmatmul.mubr.f32.gmra.mxu0 %v2560_v60  ;;  %v2564_v60 = vld [vmem:[#allocation2 + $0x310] sm:$0xff] }
 0x1e1   : > { %4305 = vst [vmem:[#allocation52_spill] sm:$0xff] %v3839_v26  ;;  %v3843_v35 = vadd.f32 %v1244_v51, %v988_v54  ;;  %v992_v59 = vadd.f32 %v991_v10, %v3487_v12  ;;  %1879 = vmatprep.mubr.f32.mxu0 %v2561_v56  ;;  %v1248_v8 = vpop.f32.mrf.mxu1  ;;  %v2565_v10 = vld [vmem:[#allocation2 + $0x348] sm:$0xff]  ;;  %v2566_v56 = vld [vmem:[#allocation2 + $0x320] sm:$0xff] }
 0x1e2   : > { %2100 = vmatmul.mubr.f32.gmra.mxu1 %v2562_v2  ;;  %v993_v24 = vpop.f32.mrf.mxu0 }
 0x1e3   : > { %v3846_v45 = vadd.f32 %v1248_v8, %v992_v59  ;;  %v994_v52 = vadd.f32 %v993_v24, %v3492_v37  ;;  %2104 = vmatprep.mubr.f32.mxu1 %v2563_v21  ;;  %v1250_v26 = vpop.f32.mrf.mxu1  ;;  %v2567_v8 = vld [vmem:[#allocation2 + $0x358] sm:$0xff]  ;;  %v2570_v21 = vld [vmem:[#allocation2 + $0x350] sm:$0xff] }
 0x1e4   : > { %v1319_v58 = vpop.f32.mrf.mxu0  ;;  %1880 = vmatmul.mubr.f32.gmra.mxu0 %v2564_v60  ;;  %v2569_v24 = vld [vmem:[#allocation2 + $0x378] sm:$0xff] }
 0x1e5   : > { %v3849_v54 = vadd.f32 %v1250_v26, %v994_v52  ;;  %v1320_v12 = vadd.f32 %v1319_v58, %v3499_v49  ;;  %1884 = vmatprep.mubr.f32.mxu0 %v2565_v10  ;;  %v3852_v51 = vpop.f32.mrf.mxu1  ;;  %v2568_v49 = vld [vmem:[#allocation2 + $0x340] sm:$0xff] }
 0x1e6   : > { %2105 = vmatmul.mubr.f32.gmra.mxu1 %v2566_v56  ;;  %v1321_v59 = vpop.f32.mrf.mxu0 }
 0x1e7   : > { %2185 = vst [vmem:[%s3854_s17] sm:$0xff] %v1320_v12  ;;  %v1322_v37 = vadd.f32 %v1321_v59, %v3504_v36  ;;  %2109 = vmatprep.mubr.f32.mxu1 %v2567_v8  ;;  %v1578_v26 = vpop.f32.mrf.mxu1  ;;  %v2571_v12 = vld [vmem:[#allocation2 + $0x388] sm:$0xff]  ;;  %v2572_v59 = vld [vmem:[#allocation2 + $0x370] sm:$0xff] }
 0x1e8   : > { %v1325_v2 = vpop.f32.mrf.mxu0  ;;  %1885 = vmatmul.mubr.f32.gmra.mxu0 %v2568_v49  ;;  %v2574_v26 = vld [vmem:[#allocation2 + $0x380] sm:$0xff] }
 0x1e9   : > { %2186 = vst [vmem:[%s3854_s17 + $0x8] sm:$0xff] %v1322_v37  ;;  %v1326_v58 = vadd.f32 %v1325_v2, %v3511_v3  ;;  %1889 = vmatprep.mubr.f32.mxu0 %v2569_v24  ;;  %v3860_v52 = vpop.f32.mrf.mxu1  ;;  %v2573_v37 = vld [vmem:[#allocation2 + $0x3a8] sm:$0xff]  ;;  %v2575_v24 = vld [vmem:[#allocation2 + $0x3a0] sm:$0xff] }
 0x1ea   : > { %2110 = vmatmul.mubr.f32.gmra.mxu1 %v2570_v21  ;;  %v1327_v60 = vpop.f32.mrf.mxu0  ;;  %v2576_v21 = vld [vmem:[#allocation2 + $0x3d8] sm:$0xff] }
 0x1eb   : > { %2188 = vst [vmem:[%s3854_s17 + $0x18] sm:$0xff] %v1326_v58  ;;  %v1328_v36 = vadd.f32 %v1327_v60, %v3518_v14  ;;  %2114 = vmatprep.mubr.f32.mxu1 %v2571_v12  ;;  %v1583_v10 = vpop.f32.mrf.mxu1 }
 0x1ec   : > { %v1331_v56 = vpop.f32.mrf.mxu0  ;;  %1890 = vmatmul.mubr.f32.gmra.mxu0 %v2572_v59  ;;  %v2577_v10 = vld [vmem:[#allocation2 + $0x3d0] sm:$0xff] }
 0x1ed   : > { %2189 = vst [vmem:[%s3854_s17 + $0x20] sm:$0xff] %v1328_v36  ;;  %v1332_v3 = vadd.f32 %v1331_v56, %v3527_v48  ;;  %1894 = vmatprep.mubr.f32.mxu0 %v2573_v37  ;;  %v3866_v8 = vpop.f32.mrf.mxu1  ;;  %v2578_v56 = vld [vmem:[#allocation2 + $0x408] sm:$0xff]  ;;  %v2579_v37 = vld [vmem:[#allocation2 + $0x400] sm:$0xff] }
 0x1ee   : > { %2115 = vmatmul.mubr.f32.gmra.mxu1 %v2574_v26  ;;  %v1333_v2 = vpop.f32.mrf.mxu0  ;;  %v2580_v26 = vld [vmem:[#allocation2 + $0x438] sm:$0xff] }
 0x1ef   : > { %2191 = vst [vmem:[%s3854_s17 + $0x30] sm:$0xff] %v1332_v3  ;;  %v1334_v14 = vadd.f32 %v1333_v2, %v3536_v41  ;;  %2119 = vmatprep.mubr.f32.mxu1 %v3516_v13  ;;  %v1588_v49 = vpop.f32.mrf.mxu1 }
 0x1f0   : > { %v1337_v58 = vpop.f32.mrf.mxu0  ;;  %1895 = vmatmul.mubr.f32.gmra.mxu0 %v2575_v24  ;;  %v2581_v49 = vld [vmem:[#allocation2 + $0x430] sm:$0xff] }
 0x1f1   : > { %2192 = vst [vmem:[%s3854_s17 + $0x38] sm:$0xff] %v1334_v14  ;;  %v1338_v48 = vadd.f32 %v1337_v58, %v3545_v50  ;;  %1899 = vmatprep.mubr.f32.mxu0 %v2576_v21  ;;  %v3873_v60 = vpop.f32.mrf.mxu1  ;;  %v2582_v58 = vld [vmem:[#allocation2 + $0x468] sm:$0xff]  ;;  %v2583_v21 = vld [vmem:[#allocation2 + $0x460] sm:$0xff] }
 0x1f2   : > { %2120 = vmatmul.mubr.f32.gmra.mxu1 %v3524_v46  ;;  %v1339_v36 = vpop.f32.mrf.mxu0 }
 0x1f3   : > { %2194 = vst [vmem:[%s3854_s17 + $0x48] sm:$0xff] %v1338_v48  ;;  %v1340_v41 = vadd.f32 %v1339_v36, %v3554_v55  ;;  %2124 = vmatprep.mubr.f32.mxu1 %v3534_v23  ;;  %v1593_v13 = vpop.f32.mrf.mxu1  ;;  %v2584_v36 = vld [vmem:[#allocation2 + $0x498] sm:$0xff] }
 0x1f4   : > { %v1343_v12 = vpop.f32.mrf.mxu0  ;;  %1900 = vmatmul.mubr.f32.gmra.mxu0 %v2577_v10  ;;  %v2586_v10 = vld [vmem:[#allocation2 + $0x4c8] sm:$0xff] }
 0x1f5   : > { %2195 = vst [vmem:[%s3854_s17 + $0x50] sm:$0xff] %v1340_v41  ;;  %v1344_v50 = vadd.f32 %v1343_v12, %v3563_v44  ;;  %1904 = vmatprep.mubr.f32.mxu0 %v2578_v56  ;;  %v3881_v59 = vpop.f32.mrf.mxu1  ;;  %v2585_v12 = vld [vmem:[#allocation2 + $0x490] sm:$0xff] }
 0x1f6   : > { %2125 = vmatmul.mubr.f32.gmra.mxu1 %v3542_v28  ;;  %v1345_v46 = vpop.f32.mrf.mxu0 }
 0x1f7   : > { %2197 = vst [vmem:[%s3854_s17 + $0x60] sm:$0xff] %v1344_v50  ;;  %v1346_v55 = vadd.f32 %v1345_v46, %v3572_v7  ;;  %2129 = vmatprep.mubr.f32.mxu1 %v3552_v11  ;;  %v1598_v23 = vpop.f32.mrf.mxu1  ;;  %v2587_v46 = vld [vmem:[#allocation2 + $0x4c0] sm:$0xff] }
 0x1f8   : > { %v1349_v3 = vpop.f32.mrf.mxu0  ;;  %1905 = vmatmul.mubr.f32.gmra.mxu0 %v2579_v37  ;;  %v2589_v37 = vld [vmem:[#allocation2 + $0x4f0] sm:$0xff] }
 0x1f9   : > { %2198 = vst [vmem:[%s3854_s17 + $0x68] sm:$0xff] %v1346_v55  ;;  %v1350_v44 = vadd.f32 %v1349_v3, %v3581_v1  ;;  %1909 = vmatprep.mubr.f32.mxu0 %v2580_v26  ;;  %v3889_v2 = vpop.f32.mrf.mxu1  ;;  %v2588_v55 = vld [vmem:[#allocation2 + $0x4f8] sm:$0xff] }
 0x1fa   : > { %2130 = vmatmul.mubr.f32.gmra.mxu1 %v3560_v42  ;;  %v1351_v28 = vpop.f32.mrf.mxu0 }
 0x1fb   : > { %2200 = vst [vmem:[%s3854_s17 + $0x78] sm:$0xff] %v1350_v44  ;;  %v1352_v7 = vadd.f32 %v1351_v28, %v3590_v29  ;;  %2134 = vmatprep.mubr.f32.mxu1 %v3570_v0  ;;  %v1603_v11 = vpop.f32.mrf.mxu1  ;;  %v2590_v44 = vld [vmem:[#allocation2 + $0x528] sm:$0xff] }
 0x1fc   : > { %v1355_v14 = vpop.f32.mrf.mxu0  ;;  %1910 = vmatmul.mubr.f32.gmra.mxu0 %v2581_v49  ;;  %v2592_v11 = vld [vmem:[#allocation2 + $0x558] sm:$0xff] }
 0x1fd   : > { %2201 = vst [vmem:[%s3854_s17 + $0x80] sm:$0xff] %v1352_v7  ;;  %v1356_v1 = vadd.f32 %v1355_v14, %v3599_v31  ;;  %1914 = vmatprep.mubr.f32.mxu0 %v2582_v58  ;;  %v3897_v24 = vpop.f32.mrf.mxu1  ;;  %v2591_v7 = vld [vmem:[#allocation2 + $0x520] sm:$0xff]  ;;  %v2594_v58 = vld [vmem:[#allocation2 + $0x588] sm:$0xff] }
 0x1fe   : > { %2135 = vmatmul.mubr.f32.gmra.mxu1 %v3578_v15  ;;  %v1357_v42 = vpop.f32.mrf.mxu0 }
 0x1ff   : > { %2203 = vst [vmem:[%s3854_s17 + $0x90] sm:$0xff] %v1356_v1  ;;  %v1358_v29 = vadd.f32 %v1357_v42, %v3608_v47  ;;  %2139 = vmatprep.mubr.f32.mxu1 %v3588_v39  ;;  %v1608_v0 = vpop.f32.mrf.mxu1  ;;  %v2593_v1 = vld [vmem:[#allocation2 + $0x550] sm:$0xff] }
 0x200   : > { %v1361_v48 = vpop.f32.mrf.mxu0  ;;  %1915 = vmatmul.mubr.f32.gmra.mxu0 %v2583_v21 }
 0x201   : > { %2204 = vst [vmem:[%s3854_s17 + $0x98] sm:$0xff] %v1358_v29  ;;  %v1362_v31 = vadd.f32 %v1361_v48, %v3617_v53  ;;  %1919 = vmatprep.mubr.f32.mxu0 %v2584_v36  ;;  %v3905_v41 = vpop.f32.mrf.mxu1  ;;  %v2595_v48 = vld [vmem:[#allocation2 + $0x580] sm:$0xff] }
 0x202   : > { %2140 = vmatmul.mubr.f32.gmra.mxu1 %v3596_v20  ;;  %v1363_v15 = vpop.f32.mrf.mxu0 }
 0x203   : > { %2206 = vst [vmem:[%s3854_s17 + $0xa8] sm:$0xff] %v1362_v31  ;;  %v1364_v47 = vadd.f32 %v1363_v15, %v3626_v5  ;;  %2144 = vmatprep.mubr.f32.mxu1 %v3606_v40  ;;  %v1613_v39 = vpop.f32.mrf.mxu1  ;;  %v2596_v31 = vld [vmem:[#allocation2 + $0x5b8] sm:$0xff] }
 0x204   : > { %v1367_v13 = vpop.f32.mrf.mxu0  ;;  %1920 = vmatmul.mubr.f32.gmra.mxu0 %v2585_v12  ;;  %v4310_v39 = vld [vmem:[#allocation14_spill] sm:$0xff] }
 0x205   : > { %2207 = vst [vmem:[%s3854_s17 + $0xb0] sm:$0xff] %v1364_v47  ;;  %v1368_v53 = vadd.f32 %v1367_v13, %v3635_v9  ;;  %1924 = vmatprep.mubr.f32.mxu0 %v2586_v10  ;;  %v3913_v50 = vpop.f32.mrf.mxu1  ;;  %v4311_v10 = vld [vmem:[#allocation21_spill] sm:$0xff] }
 0x206   : > { %2145 = vmatmul.mubr.f32.gmra.mxu1 %v3614_v57  ;;  %v1369_v20 = vpop.f32.mrf.mxu0 }
 0x207   : > { %2209 = vst [vmem:[%s3854_s17 + $0xc0] sm:$0xff] %v1368_v53  ;;  %v1370_v5 = vadd.f32 %v1369_v20, %v3644_v34  ;;  %2149 = vmatprep.mubr.f32.mxu1 %v3624_v19  ;;  %v1618_v40 = vpop.f32.mrf.mxu1  ;;  %v2597_v53 = vld [vmem:[#allocation2 + $0x5b0] sm:$0xff] }
 0x208   : > { %v1373_v56 = vpop.f32.mrf.mxu0  ;;  %1925 = vmatmul.mubr.f32.gmra.mxu0 %v2587_v46 }
 0x209   : > { %2210 = vst [vmem:[%s3854_s17 + $0xc8] sm:$0xff] %v1370_v5  ;;  %v1374_v9 = vadd.f32 %v1373_v56, %v3653_v38  ;;  %1929 = vmatprep.mubr.f32.mxu0 %v2588_v55  ;;  %v3921_v23 = vpop.f32.mrf.mxu1  ;;  %v2598_v5 = vld [vmem:[#allocation2 + $0x5e8] sm:$0xff]  ;;  %v4312_v56 = vld [vmem:[#allocation15_spill] sm:$0xff] }
 0x20a   : > { %2150 = vmatmul.mubr.f32.gmra.mxu1 %v3632_v4  ;;  %v1375_v57 = vpop.f32.mrf.mxu0 }
 0x20b   : > { %2212 = vst [vmem:[%s3854_s17 + $0xd8] sm:$0xff] %v1374_v9  ;;  %v1376_v34 = vadd.f32 %v1375_v57, %v3662_v30  ;;  %2154 = vmatprep.mubr.f32.mxu1 %v3642_v32  ;;  %v1623_v19 = vpop.f32.mrf.mxu1  ;;  %v4313_v9 = vld [vmem:[#allocation22_spill] sm:$0xff] }
 0x20c   : > { %v1379_v3 = vpop.f32.mrf.mxu0  ;;  %1930 = vmatmul.mubr.f32.gmra.mxu0 %v2589_v37  ;;  %v4314_v57 = vld [vmem:[#allocation18_spill] sm:$0xff]  ;;  %v4315_v37 = vld [vmem:[#allocation23_spill] sm:$0xff] }
 0x20d   : > { %2213 = vst [vmem:[%s3854_s17 + $0xe0] sm:$0xff] %v1376_v34  ;;  %v1380_v38 = vadd.f32 %v1379_v3, %v3671_v18  ;;  %1934 = vmatprep.mubr.f32.mxu0 %v2590_v44  ;;  %v3929_v26 = vpop.f32.mrf.mxu1  ;;  %v2599_v3 = vld [vmem:[#allocation2 + $0x5e0] sm:$0xff] }
 0x20e   : > { %2155 = vmatmul.mubr.f32.gmra.mxu1 %v3650_v25  ;;  %v1381_v4 = vpop.f32.mrf.mxu0 }
 0x20f   : > { %2215 = vst [vmem:[%s3854_s17 + $0xf0] sm:$0xff] %v1380_v38  ;;  %v1382_v30 = vadd.f32 %v1381_v4, %v3680_v22  ;;  %2159 = vmatprep.mubr.f32.mxu1 %v3660_v43  ;;  %v1628_v32 = vpop.f32.mrf.mxu1  ;;  %v4316_v4 = vld [vmem:[#allocation20_spill] sm:$0xff] }
 0x210   : > { %v1385_v28 = vpop.f32.mrf.mxu0  ;;  %1935 = vmatmul.mubr.f32.gmra.mxu0 %v2591_v7  ;;  %v4317_v32 = vld [vmem:[#allocation24_spill] sm:$0xff] }
 0x211   : > { %2216 = vst [vmem:[%s3854_s17 + $0xf8] sm:$0xff] %v1382_v30  ;;  %v1386_v18 = vadd.f32 %v1385_v28, %v3688_v33  ;;  %1939 = vmatprep.mubr.f32.mxu0 %v2592_v11  ;;  %v3937_v14 = vpop.f32.mrf.mxu1  ;;  %v4318_v11 = vld [vmem:[#allocation25_spill] sm:$0xff] }
 0x212   : > { %2160 = vmatmul.mubr.f32.gmra.mxu1 %v3668_v17  ;;  %v1387_v25 = vpop.f32.mrf.mxu0 }
 0x213   : > { %2218 = vst [vmem:[%s3854_s17 + $0x108] sm:$0xff] %v1386_v18  ;;  %v1388_v22 = vadd.f32 %v1387_v25, %v3697_v63  ;;  %2164 = vmatprep.mubr.f32.mxu1 %v3678_v6  ;;  %v1633_v43 = vpop.f32.mrf.mxu1  ;;  %v4306_v6 = vld [vmem:[#allocation12_spill] sm:$0xff] }
 0x214   : > { %v1391_v49 = vpop.f32.mrf.mxu0  ;;  %1940 = vmatmul.mubr.f32.gmra.mxu0 %v2593_v1 }
 0x215   : > { %2219 = vst [vmem:[%s3854_s17 + $0x110] sm:$0xff] %v1388_v22  ;;  %v1392_v33 = vadd.f32 %v1391_v49, %v3704_v27  ;;  %1944 = vmatprep.mubr.f32.mxu0 %v2594_v58  ;;  %v3945_v42 = vpop.f32.mrf.mxu1  ;;  %v4307_v27 = vld [vmem:[#allocation16_spill] sm:$0xff]  ;;  %v4319_v49 = vld [vmem:[#allocation26_spill] sm:$0xff] }
 0x216   : > { %2165 = vmatmul.mubr.f32.gmra.mxu1 %v3686_v16  ;;  %v1393_v17 = vpop.f32.mrf.mxu0  ;;  %v4308_v16 = vld [vmem:[#allocation13_spill] sm:$0xff] }
 0x217   : > { %2221 = vst [vmem:[%s3854_s17 + $0x120] sm:$0xff] %v1392_v33  ;;  %v1394_v63 = vadd.f32 %v1393_v17, %v3713_v62  ;;  %2169 = vmatprep.mubr.f32.mxu1 %v4306_v6  ;;  %v1638_v29 = vpop.f32.mrf.mxu1  ;;  %v4309_v62 = vld [vmem:[#allocation19_spill] sm:$0xff] }
 0x218   : > { %v1397_v0 = vpop.f32.mrf.mxu0  ;;  %1945 = vmatmul.mubr.f32.gmra.mxu0 %v2595_v48  ;;  %v4320_v17 = vld [vmem:[#allocation27_spill] sm:$0xff] }
 0x219   : > { %2222 = vst [vmem:[%s3854_s17 + $0x128] sm:$0xff] %v1394_v63  ;;  %v1398_v21 = vadd.f32 %v1397_v0, %v4307_v27  ;;  %1949 = vmatprep.mubr.f32.mxu0 %v2596_v31  ;;  %v3953_v36 = vpop.f32.mrf.mxu1  ;;  %v4321_v0 = vld [vmem:[#allocation28_spill] sm:$0xff]  ;;  %v4322_v31 = vld [vmem:[#allocation29_spill] sm:$0xff] }
 0x21a   : > { %2170 = vmatmul.mubr.f32.gmra.mxu1 %v4308_v16  ;;  %v1399_v15 = vpop.f32.mrf.mxu0 }
 0x21b   : > { %2224 = vst [vmem:[%s3854_s17 + $0x138] sm:$0xff] %v1398_v21  ;;  %v1400_v47 = vadd.f32 %v1399_v15, %v4309_v62  ;;  %2174 = vmatprep.mubr.f32.mxu1 %v4310_v39  ;;  %v1643_v13 = vpop.f32.mrf.mxu1 }
 0x21c   : > { %v1403_v12 = vpop.f32.mrf.mxu0  ;;  %1950 = vmatmul.mubr.f32.gmra.mxu0 %v2597_v53  ;;  %v4324_v53 = vld [vmem:[#allocation31_spill] sm:$0xff] }
 0x21d   : > { %2225 = vst [vmem:[%s3854_s17 + $0x140] sm:$0xff] %v1400_v47  ;;  %v1404_v20 = vadd.f32 %v1403_v12, %v4311_v10  ;;  %1954 = vmatprep.mubr.f32.mxu0 %v2598_v5  ;;  %v3961_v40 = vpop.f32.mrf.mxu1  ;;  %v4323_v47 = vld [vmem:[#allocation30_spill] sm:$0xff] }
 0x21e   : > { %2175 = vmatmul.mubr.f32.gmra.mxu1 %v4312_v56  ;;  %v1405_v46 = vpop.f32.mrf.mxu0  ;;  %v4325_v56 = vld [vmem:[#allocation32_spill] sm:$0xff] }
 0x21f   : > { %2227 = vst [vmem:[%s3854_s17 + $0x150] sm:$0xff] %v1404_v20  ;;  %v1406_v55 = vadd.f32 %v1405_v46, %v4313_v9  ;;  %2179 = vmatprep.mubr.f32.mxu1 %v4314_v57  ;;  %v1648_v34 = vpop.f32.mrf.mxu1  ;;  %v4326_v57 = vld [vmem:[#allocation33_spill] sm:$0xff] }
 0x220   : > { %v1409_v19 = vpop.f32.mrf.mxu0  ;;  %1955 = vmatmul.mubr.f32.gmra.mxu0 %v2599_v3 }
 0x221   : > { %2228 = vst [vmem:[%s3854_s17 + $0x158] sm:$0xff] %v1406_v55  ;;  %v1410_v38 = vadd.f32 %v1409_v19, %v4315_v37  ;;  %v3969_v44 = vpop.f32.mrf.mxu1  ;;  %v4327_v37 = vld [vmem:[#allocation34_spill] sm:$0xff] }
 0x222   : > { %2180 = vmatmul.mubr.f32.gmra.mxu1 %v4316_v4  ;;  %v1411_v30 = vpop.f32.mrf.mxu0 }
 0x223   : > { %2230 = vst [vmem:[%s3854_s17 + $0x168] sm:$0xff] %v1410_v38  ;;  %v1412_v28 = vadd.f32 %v1411_v30, %v4317_v32  ;;  %v1653_v7 = vpop.f32.mrf.mxu1  ;;  %v4328_v32 = vld [vmem:[#allocation35_spill] sm:$0xff] }
 0x224   : > { %v1415_v18 = vpop.f32.mrf.mxu0 }
 0x225   : > { %2231 = vst [vmem:[%s3854_s17 + $0x170] sm:$0xff] %v1412_v28  ;;  %v1416_v25 = vadd.f32 %v1415_v18, %v4318_v11  ;;  %v3976_v22 = vpop.f32.mrf.mxu1  ;;  %v4329_v11 = vld [vmem:[#allocation36_spill] sm:$0xff] }
 0x226   : > { %v1417_v43 = vpop.f32.mrf.mxu0 }
 0x227   : > { %2233 = vst [vmem:[%s3854_s17 + $0x180] sm:$0xff] %v1416_v25  ;;  %v1418_v1 = vadd.f32 %v1417_v43, %v4319_v49  ;;  %v1658_v33 = vpop.f32.mrf.mxu1 }
 0x228   : > { %v1421_v58 = vpop.f32.mrf.mxu0 }
 0x229   : > { %2234 = vst [vmem:[%s3854_s17 + $0x188] sm:$0xff] %v1418_v1  ;;  %v1422_v63 = vadd.f32 %v1421_v58, %v4320_v17  ;;  %v3982_v6 = vpop.f32.mrf.mxu1  ;;  %v4330_v1 = vld [vmem:[#allocation37_spill] sm:$0xff] }
 0x22a   : > { %v1423_v29 = vpop.f32.mrf.mxu0 }
 0x22b   : > { %2236 = vst [vmem:[%s3854_s17 + $0x198] sm:$0xff] %v1422_v63  ;;  %v1424_v48 = vadd.f32 %v1423_v29, %v4321_v0  ;;  %v1663_v27 = vpop.f32.mrf.mxu1  ;;  %v4331_v63 = vld [vmem:[#allocation38_spill] sm:$0xff] }
 0x22c   : > { %v1427_v21 = vpop.f32.mrf.mxu0  ;;  %v4332_v27 = vld [vmem:[#allocation39_spill] sm:$0xff] }
 0x22d   : > { %2237 = vst [vmem:[%s3854_s17 + $0x1a0] sm:$0xff] %v1424_v48  ;;  %v1428_v16 = vadd.f32 %v1427_v21, %v4322_v31  ;;  %v3988_v15 = vpop.f32.mrf.mxu1 }
 0x22e   : > { %v1429_v62 = vpop.f32.mrf.mxu0 }
 0x22f   : > { %2239 = vst [vmem:[%s3854_s17 + $0x1b0] sm:$0xff] %v1428_v16  ;;  %v1430_v39 = vadd.f32 %v1429_v62, %v4323_v47  ;;  %v1668_v13 = vpop.f32.mrf.mxu1  ;;  %v4333_v62 = vld [vmem:[#allocation40_spill] sm:$0xff] }
 0x230   : > { %v1433_v12 = vpop.f32.mrf.mxu0 }
 0x231   : > { %2240 = vst [vmem:[%s3854_s17 + $0x1b8] sm:$0xff] %v1430_v39  ;;  %v1434_v10 = vadd.f32 %v1433_v12, %v4324_v53  ;;  %v3994_v20 = vpop.f32.mrf.mxu1  ;;  %v4334_v12 = vld [vmem:[#allocation41_spill] sm:$0xff] }
 0x232   : > { %v1435_v5 = vpop.f32.mrf.mxu0 }
 0x233   : > { %2242 = vst [vmem:[%s3854_s17 + $0x1c8] sm:$0xff] %v1434_v10  ;;  %v1436_v46 = vadd.f32 %v1435_v5, %v4325_v56  ;;  %v1673_v9 = vpop.f32.mrf.mxu1  ;;  %v4335_v56 = vld [vmem:[#allocation42_spill] sm:$0xff] }
 0x234   : > { %v1439_v55 = vpop.f32.mrf.mxu0 }
 0x235   : > { %2243 = vst [vmem:[%s3854_s17 + $0x1d0] sm:$0xff] %v1436_v46  ;;  %v1440_v34 = vadd.f32 %v1439_v55, %v4326_v57  ;;  %v4000_v19 = vpop.f32.mrf.mxu1  ;;  %v4336_v57 = vld [vmem:[#allocation43_spill] sm:$0xff] }
 0x236   : > { %v1441_v3 = vpop.f32.mrf.mxu0 }
 0x237   : > { %2245 = vst [vmem:[%s3854_s17 + $0x1e0] sm:$0xff] %v1440_v34  ;;  %v1442_v38 = vadd.f32 %v1441_v3, %v4327_v37  ;;  %v1678_v4 = vpop.f32.mrf.mxu1 }
 0x238   : > { %v1445_v30 = vpop.f32.mrf.mxu0 }
 0x239   : > { %2246 = vst [vmem:[%s3854_s17 + $0x1e8] sm:$0xff] %v1442_v38  ;;  %v1446_v28 = vadd.f32 %v1445_v30, %v4328_v32  ;;  %v4006_v7 = vpop.f32.mrf.mxu1  ;;  %v4337_v38 = vld [vmem:[#allocation44_spill] sm:$0xff] }
 0x23a   : > { %v1447_v18 = vpop.f32.mrf.mxu0 }
 0x23b   : > { %2248 = vst [vmem:[%s3854_s17 + $0x1f8] sm:$0xff] %v1446_v28  ;;  %v1448_v25 = vadd.f32 %v1447_v18, %v4329_v11  ;;  %v1683_v43 = vpop.f32.mrf.mxu1  ;;  %v4338_v28 = vld [vmem:[#allocation45_spill] sm:$0xff] }
 0x23c   : > { %v1451_v49 = vpop.f32.mrf.mxu0  ;;  %v4339_v43 = vld [vmem:[#allocation46_spill] sm:$0xff] }
 0x23d   : > { %2249 = vst [vmem:[%s3854_s17 + $0x200] sm:$0xff] %v1448_v25  ;;  %v1452_v33 = vadd.f32 %v1451_v49, %v4330_v1  ;;  %v4012_v58 = vpop.f32.mrf.mxu1 }
 0x23e   : > { %v1453_v17 = vpop.f32.mrf.mxu0 }
 0x23f   : > { %2251 = vst [vmem:[%s3854_s17 + $0x210] sm:$0xff] %v1452_v33  ;;  %v1454_v29 = vadd.f32 %v1453_v17, %v4331_v63  ;;  %v1688_v0 = vpop.f32.mrf.mxu1  ;;  %v4340_v17 = vld [vmem:[#allocation47_spill] sm:$0xff] }
 0x240   : > { %v1457_v48 = vpop.f32.mrf.mxu0 }
 0x241   : > { %2252 = vst [vmem:[%s3854_s17 + $0x218] sm:$0xff] %v1454_v29  ;;  %v1458_v21 = vadd.f32 %v1457_v48, %v4332_v27  ;;  %v4018_v31 = vpop.f32.mrf.mxu1  ;;  %v4341_v48 = vld [vmem:[#allocation48_spill] sm:$0xff] }
 0x242   : > { %v1459_v16 = vpop.f32.mrf.mxu0 }
 0x243   : > { %2254 = vst [vmem:[%s3854_s17 + $0x228] sm:$0xff] %v1458_v21  ;;  %v1460_v47 = vadd.f32 %v1459_v16, %v4333_v62  ;;  %v1693_v39 = vpop.f32.mrf.mxu1  ;;  %v4342_v62 = vld [vmem:[#allocation49_spill] sm:$0xff] }
 0x244   : > { %v1463_v13 = vpop.f32.mrf.mxu0 }
 0x245   : > { %2255 = vst [vmem:[%s3854_s17 + $0x230] sm:$0xff] %v1460_v47  ;;  %v1464_v53 = vadd.f32 %v1463_v13, %v4334_v12  ;;  %v4024_v10 = vpop.f32.mrf.mxu1 }
 0x246   : > { %v1465_v5 = vpop.f32.mrf.mxu0 }
 0x247   : > { %2257 = vst [vmem:[%s3854_s17 + $0x240] sm:$0xff] %v1464_v53  ;;  %v1466_v46 = vadd.f32 %v1465_v5, %v4335_v56  ;;  %v1698_v9 = vpop.f32.mrf.mxu1  ;;  %v4343_v56 = vld [vmem:[#allocation50_spill] sm:$0xff] }
 0x248   : > { %v1469_v55 = vpop.f32.mrf.mxu0 }
 0x249   : > { %2258 = vst [vmem:[%s3854_s17 + $0x248] sm:$0xff] %v1466_v46  ;;  %v1470_v34 = vadd.f32 %v1469_v55, %v4336_v57  ;;  %v4030_v3 = vpop.f32.mrf.mxu1  ;;  %v4344_v57 = vld [vmem:[#allocation17_spill] sm:$0xff] }
 0x24a   : > { %v1471_v37 = vpop.f32.mrf.mxu0 }
 0x24b   : > { %2260 = vst [vmem:[%s3854_s17 + $0x258] sm:$0xff] %v1470_v34  ;;  %v1472_v4 = vadd.f32 %v1471_v37, %v4337_v38  ;;  %v1703_v30 = vpop.f32.mrf.mxu1  ;;  %v734_v34 = vsub.s32 2, %v4344_v57  ;;  %v4345_v37 = vld [vmem:[#allocation51_spill] sm:$0xff] }
 0x24c   : > { %v1475_v32 = vpop.f32.mrf.mxu0 }
 0x24d   : > { %2261 = vst [vmem:[%s3854_s17 + $0x260] sm:$0xff] %v1472_v4  ;;  %v1476_v18 = vadd.f32 %v1475_v32, %v4338_v28  ;;  %v4036_v11 = vpop.f32.mrf.mxu1 }
 0x24e   : > { %v1477_v25 = vpop.f32.mrf.mxu0 }
 0x24f   : > { %2263 = vst [vmem:[%s3854_s17 + $0x270] sm:$0xff] %v1476_v18  ;;  %v1478_v49 = vadd.f32 %v1477_v25, %v4339_v43  ;;  %v1708_v1 = vpop.f32.mrf.mxu1  ;;  %v2600_v25 = vld [vmem:[%s3478_s28] sm:$0x7] }
 0x250   : > { %v1481_v33 = vpop.f32.mrf.mxu0  ;;  %v4064_v43 = vrot.slane %v2600_v25, %v734_v34 }
 0x251   : > { %2264 = vst [vmem:[%s3854_s17 + $0x278] sm:$0xff] %v1478_v49  ;;  %v1482_v63 = vadd.f32 %v1481_v33, %v4340_v17  ;;  %v4042_v29 = vpop.f32.mrf.mxu1 }
 0x252   : > { %v1483_v0 = vpop.f32.mrf.mxu0 }
 0x253   : > { %2266 = vst [vmem:[%s3854_s17 + $0x288] sm:$0xff] %v1482_v63  ;;  %v1484_v27 = vadd.f32 %v1483_v0, %v4341_v48  ;;  %v1713_v21 = vpop.f32.mrf.mxu1  ;;  %v1577_v48 = vadd.f32 %v3852_v51, %v4064_v43 }
 0x254   : > { %v1487_v16 = vpop.f32.mrf.mxu0 }
 0x255   : > { %2267 = vst [vmem:[%s3854_s17 + $0x290] sm:$0xff] %v1484_v27  ;;  %v1488_v47 = vadd.f32 %v1487_v16, %v4342_v62  ;;  %v4048_v39 = vpop.f32.mrf.mxu1 }
 0x256   : > { %v1489_v13 = vpop.f32.mrf.mxu0 }
 0x257   : > { %2269 = vst [vmem:[%s3854_s17 + $0x2a0] sm:$0xff] %v1488_v47  ;;  %v1490_v12 = vadd.f32 %v1489_v13, %v3830_v61  ;;  %v1718_v53 = vpop.f32.mrf.mxu1  ;;  %v4346_v61 = vld [vmem:[#allocation52_spill] sm:$0xff] }
 0x258   : > { %v1493_v5 = vpop.f32.mrf.mxu0 }
 0x259   : > { %2270 = vst [vmem:[%s3854_s17 + $0x2a8] sm:$0xff] %v1490_v12  ;;  %v1494_v46 = vadd.f32 %v1493_v5, %v4343_v56  ;;  %v4054_v9 = vpop.f32.mrf.mxu1 }
 0x25a   : > { %v1495_v55 = vpop.f32.mrf.mxu0 }
 0x25b   : > { %2272 = vst [vmem:[%s3854_s17 + $0x2b8] sm:$0xff] %v1494_v46  ;;  %v1496_v38 = vadd.f32 %v1495_v55, %v4345_v37  ;;  %v1723_v4 = vpop.f32.mrf.mxu1 }
 0x25c   : > { %v1499_v30 = vpop.f32.mrf.mxu0 }
 0x25d   : > { %2273 = vst [vmem:[%s3854_s17 + $0x2c0] sm:$0xff] %v1496_v38  ;;  %v1500_v32 = vadd.f32 %v1499_v30, %v4346_v61 }
 0x25e   : > { %v4061_v28 = vpop.f32.mrf.mxu1  ;;  %v1501_v18 = vpop.f32.mrf.mxu0 }
 0x25f   : > { %2275 = vst [vmem:[%s3854_s17 + $0x2d0] sm:$0xff] %v1500_v32  ;;  %v1502_v49 = vadd.f32 %v1501_v18, %v3843_v35 }
 0x260   : > { %v1728_v1 = vpop.f32.mrf.mxu1  ;;  %v1505_v33 = vpop.f32.mrf.mxu0 }
 0x261   : > { %2276 = vst [vmem:[%s3854_s17 + $0x2d8] sm:$0xff] %v1502_v49  ;;  %v1506_v17 = vadd.f32 %v1505_v33, %v3846_v45  ;;  %v1582_v45 = vadd.f32 %v3860_v52, %v4064_v43  ;;  %v1592_v52 = vadd.f32 %v3873_v60, %v4064_v43  ;;  %v1602_v60 = vadd.f32 %v3889_v2, %v4064_v43 }
 0x262   : > { %v4070_v63 = vpop.f32.mrf.mxu1  ;;  %v1507_v0 = vpop.f32.mrf.mxu0  ;;  %v1612_v2 = vadd.f32 %v3905_v41, %v4064_v43  ;;  %v1622_v41 = vadd.f32 %v3921_v23, %v4064_v43  ;;  %v1632_v23 = vadd.f32 %v3937_v14, %v4064_v43  ;;  %v1642_v14 = vadd.f32 %v3953_v36, %v4064_v43 }
 0x263   : > { %2278 = vst [vmem:[%s3854_s17 + $0x2e8] sm:$0xff] %v1506_v17  ;;  %v1508_v27 = vadd.f32 %v1507_v0, %v3849_v54  ;;  %v1587_v54 = vadd.f32 %v3866_v8, %v4064_v43  ;;  %v1597_v8 = vadd.f32 %v3881_v59, %v4064_v43  ;;  %v1607_v59 = vadd.f32 %v3897_v24, %v4064_v43 }
 0x264   : > { %v1733_v21 = vpop.f32.mrf.mxu1  ;;  %v1801_v16 = vpop.f32.mrf.mxu0  ;;  %v1617_v24 = vadd.f32 %v3913_v50, %v4064_v43  ;;  %v1627_v50 = vadd.f32 %v3929_v26, %v4064_v43  ;;  %v1637_v26 = vadd.f32 %v3945_v42, %v4064_v43  ;;  %v1647_v42 = vadd.f32 %v3961_v40, %v4064_v43 }
 0x265   : > { %2279 = vst [vmem:[%s3854_s17 + $0x2f0] sm:$0xff] %v1508_v27  ;;  %v1802_v35 = vadd.f32 %v1801_v16, %v1577_v48  ;;  %v1652_v36 = vadd.f32 %v3969_v44, %v4064_v43  ;;  %v1657_v40 = vadd.f32 %v3976_v22, %v4064_v43  ;;  %v1662_v44 = vadd.f32 %v3982_v6, %v4064_v43 }
 0x266   : > { %v2026_v62 = vpop.f32.mrf.mxu1  ;;  %v1803_v47 = vpop.f32.mrf.mxu0  ;;  %v1667_v22 = vadd.f32 %v3988_v15, %v4064_v43  ;;  %v1672_v6 = vadd.f32 %v3994_v20, %v4064_v43  ;;  %v1677_v15 = vadd.f32 %v4000_v19, %v4064_v43  ;;  %v1682_v20 = vadd.f32 %v4006_v7, %v4064_v43 }
 0x267   : > { %v2027_v13 = vadd.f32 %v2026_v62, %v1802_v35  ;;  %v1687_v19 = vadd.f32 %v4012_v58, %v4064_v43  ;;  %v1692_v7 = vadd.f32 %v4018_v31, %v4064_v43  ;;  %v1697_v58 = vadd.f32 %v4024_v10, %v4064_v43 }
 0x268   : > { %v2028_v12 = vpop.f32.mrf.mxu1  ;;  %v1806_v53 = vpop.f32.mrf.mxu0  ;;  %v1702_v31 = vadd.f32 %v4030_v3, %v4064_v43  ;;  %v1707_v10 = vadd.f32 %v4036_v11, %v4064_v43  ;;  %v1712_v3 = vadd.f32 %v4042_v29, %v4064_v43  ;;  %v1717_v11 = vadd.f32 %v4048_v39, %v4064_v43 }
 0x269   : > { %2187 = vst [vmem:[%s3854_s17 + $0x10] sm:$0xff] %v2027_v13  ;;  %v1807_v5 = vadd.f32 %v1806_v53, %v1582_v45  ;;  %v1722_v29 = vadd.f32 %v4054_v9, %v4064_v43 }
 0x26a   : > { %v2031_v51 = vpop.f32.mrf.mxu1  ;;  %v1808_v56 = vpop.f32.mrf.mxu0 }
 0x26b   : > { %v2032_v46 = vadd.f32 %v2031_v51, %v1807_v5 }
 0x26c   : > { %v2033_v55 = vpop.f32.mrf.mxu1  ;;  %v1811_v57 = vpop.f32.mrf.mxu0 }
 0x26d   : > { %2190 = vst [vmem:[%s3854_s17 + $0x28] sm:$0xff] %v2032_v46  ;;  %v1812_v34 = vadd.f32 %v1811_v57, %v1587_v54 }
 0x26e   : > { %v2036_v37 = vpop.f32.mrf.mxu1  ;;  %v1813_v38 = vpop.f32.mrf.mxu0 }
 0x26f   : > { %v2037_v4 = vadd.f32 %v2036_v37, %v1812_v34 }
 0x270   : > { %v2038_v30 = vpop.f32.mrf.mxu1  ;;  %v1816_v61 = vpop.f32.mrf.mxu0 }
 0x271   : > { %2193 = vst [vmem:[%s3854_s17 + $0x40] sm:$0xff] %v2037_v4  ;;  %v1817_v32 = vadd.f32 %v1816_v61, %v1592_v52 }
 0x272   : > { %v2041_v18 = vpop.f32.mrf.mxu1  ;;  %v1818_v25 = vpop.f32.mrf.mxu0 }
 0x273   : > { %v2042_v49 = vadd.f32 %v2041_v18, %v1817_v32 }
 0x274   : > { %v2043_v1 = vpop.f32.mrf.mxu1  ;;  %v1821_v33 = vpop.f32.mrf.mxu0 }
 0x275   : > { %2196 = vst [vmem:[%s3854_s17 + $0x58] sm:$0xff] %v2042_v49  ;;  %v1822_v17 = vadd.f32 %v1821_v33, %v1597_v8 }
 0x276   : > { %v2046_v0 = vpop.f32.mrf.mxu1  ;;  %v1823_v48 = vpop.f32.mrf.mxu0 }
 0x277   : > { %v2047_v27 = vadd.f32 %v2046_v0, %v1822_v17 }
 0x278   : > { %v2048_v21 = vpop.f32.mrf.mxu1  ;;  %v1826_v16 = vpop.f32.mrf.mxu0 }
 0x279   : > { %2199 = vst [vmem:[%s3854_s17 + $0x70] sm:$0xff] %v2047_v27  ;;  %v1827_v35 = vadd.f32 %v1826_v16, %v1602_v60 }
 0x27a   : > { %v2051_v62 = vpop.f32.mrf.mxu1  ;;  %v1828_v47 = vpop.f32.mrf.mxu0 }
 0x27b   : > { %v2052_v45 = vadd.f32 %v2051_v62, %v1827_v35 }
 0x27c   : > { %v2053_v13 = vpop.f32.mrf.mxu1  ;;  %v1831_v12 = vpop.f32.mrf.mxu0 }
 0x27d   : > { %2202 = vst [vmem:[%s3854_s17 + $0x88] sm:$0xff] %v2052_v45  ;;  %v1832_v53 = vadd.f32 %v1831_v12, %v1607_v59 }
 0x27e   : > { %v2056_v5 = vpop.f32.mrf.mxu1  ;;  %v1833_v51 = vpop.f32.mrf.mxu0 }
 0x27f   : > { %v2057_v56 = vadd.f32 %v2056_v5, %v1832_v53 }
 0x280   : > { %v2058_v54 = vpop.f32.mrf.mxu1  ;;  %v1836_v46 = vpop.f32.mrf.mxu0 }
 0x281   : > { %2205 = vst [vmem:[%s3854_s17 + $0xa0] sm:$0xff] %v2057_v56  ;;  %v1837_v55 = vadd.f32 %v1836_v46, %v1612_v2 }
 0x282   : > { %v2061_v57 = vpop.f32.mrf.mxu1  ;;  %v1838_v34 = vpop.f32.mrf.mxu0 }
 0x283   : > { %v2062_v37 = vadd.f32 %v2061_v57, %v1837_v55 }
 0x284   : > { %v2063_v38 = vpop.f32.mrf.mxu1  ;;  %v1841_v52 = vpop.f32.mrf.mxu0 }
 0x285   : > { %2208 = vst [vmem:[%s3854_s17 + $0xb8] sm:$0xff] %v2062_v37  ;;  %v1842_v4 = vadd.f32 %v1841_v52, %v1617_v24 }
 0x286   : > { %v2066_v30 = vpop.f32.mrf.mxu1  ;;  %v1843_v61 = vpop.f32.mrf.mxu0 }
 0x287   : > { %v2067_v32 = vadd.f32 %v2066_v30, %v1842_v4 }
 0x288   : > { %v2068_v18 = vpop.f32.mrf.mxu1  ;;  %v1846_v25 = vpop.f32.mrf.mxu0 }
 0x289   : > { %2211 = vst [vmem:[%s3854_s17 + $0xd0] sm:$0xff] %v2067_v32  ;;  %v1847_v8 = vadd.f32 %v1846_v25, %v1622_v41 }
 0x28a   : > { %v2071_v49 = vpop.f32.mrf.mxu1  ;;  %v1848_v1 = vpop.f32.mrf.mxu0 }
 0x28b   : > { %v2072_v33 = vadd.f32 %v2071_v49, %v1847_v8 }
 0x28c   : > { %v2073_v17 = vpop.f32.mrf.mxu1  ;;  %v1851_v0 = vpop.f32.mrf.mxu0 }
 0x28d   : > { %2214 = vst [vmem:[%s3854_s17 + $0xe8] sm:$0xff] %v2072_v33  ;;  %v1852_v48 = vadd.f32 %v1851_v0, %v1627_v50 }
 0x28e   : > { %v2076_v60 = vpop.f32.mrf.mxu1  ;;  %v1853_v27 = vpop.f32.mrf.mxu0 }
 0x28f   : > { %v2077_v21 = vadd.f32 %v2076_v60, %v1852_v48 }
 0x290   : > { %v2078_v16 = vpop.f32.mrf.mxu1  ;;  %v1856_v35 = vpop.f32.mrf.mxu0 }
 0x291   : > { %2217 = vst [vmem:[%s3854_s17 + $0x100] sm:$0xff] %v2077_v21  ;;  %v1857_v62 = vadd.f32 %v1856_v35, %v1632_v23 }
 0x292   : > { %v2081_v47 = vpop.f32.mrf.mxu1  ;;  %v1858_v59 = vpop.f32.mrf.mxu0 }
 0x293   : > { %v2082_v45 = vadd.f32 %v2081_v47, %v1857_v62 }
 0x294   : > { %v2083_v13 = vpop.f32.mrf.mxu1  ;;  %v1861_v12 = vpop.f32.mrf.mxu0 }
 0x295   : > { %2220 = vst [vmem:[%s3854_s17 + $0x118] sm:$0xff] %v2082_v45  ;;  %v1862_v53 = vadd.f32 %v1861_v12, %v1637_v26 }
 0x296   : > { %v2086_v5 = vpop.f32.mrf.mxu1  ;;  %v1863_v51 = vpop.f32.mrf.mxu0 }
 0x297   : > { %v2087_v2 = vadd.f32 %v2086_v5, %v1862_v53 }
 0x298   : > { %v2088_v56 = vpop.f32.mrf.mxu1  ;;  %v1866_v54 = vpop.f32.mrf.mxu0 }
 0x299   : > { %2223 = vst [vmem:[%s3854_s17 + $0x130] sm:$0xff] %v2087_v2  ;;  %v1867_v46 = vadd.f32 %v1866_v54, %v1642_v14 }
 0x29a   : > { %v2091_v55 = vpop.f32.mrf.mxu1  ;;  %v1868_v57 = vpop.f32.mrf.mxu0 }
 0x29b   : > { %v2092_v34 = vadd.f32 %v2091_v55, %v1867_v46 }
 0x29c   : > { %v2093_v24 = vpop.f32.mrf.mxu1  ;;  %v1871_v37 = vpop.f32.mrf.mxu0 }
 0x29d   : > { %2226 = vst [vmem:[%s3854_s17 + $0x148] sm:$0xff] %v2092_v34  ;;  %v1872_v38 = vadd.f32 %v1871_v37, %v1647_v42 }
 0x29e   : > { %v2096_v52 = vpop.f32.mrf.mxu1  ;;  %v1873_v4 = vpop.f32.mrf.mxu0 }
 0x29f   : > { %v2097_v30 = vadd.f32 %v2096_v52, %v1872_v38 }
 0x2a0   : > { %v2098_v61 = vpop.f32.mrf.mxu1  ;;  %v1876_v41 = vpop.f32.mrf.mxu0 }
 0x2a1   : > { %2229 = vst [vmem:[%s3854_s17 + $0x160] sm:$0xff] %v2097_v30  ;;  %v1877_v32 = vadd.f32 %v1876_v41, %v1652_v36 }
 0x2a2   : > { %v2101_v18 = vpop.f32.mrf.mxu1  ;;  %v1878_v25 = vpop.f32.mrf.mxu0 }
 0x2a3   : > { %v2102_v8 = vadd.f32 %v2101_v18, %v1877_v32 }
 0x2a4   : > { %v2103_v49 = vpop.f32.mrf.mxu1  ;;  %v1881_v1 = vpop.f32.mrf.mxu0 }
 0x2a5   : > { %2232 = vst [vmem:[%s3854_s17 + $0x178] sm:$0xff] %v2102_v8  ;;  %v1882_v50 = vadd.f32 %v1881_v1, %v1657_v40 }
 0x2a6   : > { %v2106_v33 = vpop.f32.mrf.mxu1  ;;  %v1883_v17 = vpop.f32.mrf.mxu0 }
 0x2a7   : > { %v2107_v0 = vadd.f32 %v2106_v33, %v1882_v50 }
 0x2a8   : > { %v2108_v48 = vpop.f32.mrf.mxu1  ;;  %v1886_v60 = vpop.f32.mrf.mxu0 }
 0x2a9   : > { %2235 = vst [vmem:[%s3854_s17 + $0x190] sm:$0xff] %v2107_v0  ;;  %v1887_v27 = vadd.f32 %v1886_v60, %v1662_v44 }
 0x2aa   : > { %v2111_v23 = vpop.f32.mrf.mxu1  ;;  %v1888_v21 = vpop.f32.mrf.mxu0 }
 0x2ab   : > { %v2112_v16 = vadd.f32 %v2111_v23, %v1887_v27 }
 0x2ac   : > { %v2113_v35 = vpop.f32.mrf.mxu1  ;;  %v1891_v62 = vpop.f32.mrf.mxu0 }
 0x2ad   : > { %2238 = vst [vmem:[%s3854_s17 + $0x1a8] sm:$0xff] %v2112_v16  ;;  %v1892_v47 = vadd.f32 %v1891_v62, %v1667_v22 }
 0x2ae   : > { %v2116_v59 = vpop.f32.mrf.mxu1  ;;  %v1893_v26 = vpop.f32.mrf.mxu0 }
 0x2af   : > { %v2117_v45 = vadd.f32 %v2116_v59, %v1892_v47 }
 0x2b0   : > { %v2118_v13 = vpop.f32.mrf.mxu1  ;;  %v1896_v12 = vpop.f32.mrf.mxu0 }
 0x2b1   : > { %2241 = vst [vmem:[%s3854_s17 + $0x1c0] sm:$0xff] %v2117_v45  ;;  %v1897_v53 = vadd.f32 %v1896_v12, %v1672_v6 }
 0x2b2   : > { %v2121_v5 = vpop.f32.mrf.mxu1  ;;  %v1898_v51 = vpop.f32.mrf.mxu0 }
 0x2b3   : > { %v2122_v14 = vadd.f32 %v2121_v5, %v1897_v53 }
 0x2b4   : > { %v2123_v2 = vpop.f32.mrf.mxu1  ;;  %v1901_v56 = vpop.f32.mrf.mxu0 }
 0x2b5   : > { %2244 = vst [vmem:[%s3854_s17 + $0x1d8] sm:$0xff] %v2122_v14  ;;  %v1902_v54 = vadd.f32 %v1901_v56, %v1677_v15 }
 0x2b6   : > { %v2126_v46 = vpop.f32.mrf.mxu1  ;;  %v1903_v55 = vpop.f32.mrf.mxu0 }
 0x2b7   : > { %v2127_v57 = vadd.f32 %v2126_v46, %v1902_v54 }
 0x2b8   : > { %v2128_v42 = vpop.f32.mrf.mxu1  ;;  %v1906_v34 = vpop.f32.mrf.mxu0 }
 0x2b9   : > { %2247 = vst [vmem:[%s3854_s17 + $0x1f0] sm:$0xff] %v2127_v57  ;;  %v1907_v24 = vadd.f32 %v1906_v34, %v1682_v20  ;;  %v1727_v34 = vadd.f32 %v4061_v28, %v4064_v43 }
 0x2ba   : > { %v2131_v37 = vpop.f32.mrf.mxu1  ;;  %v1908_v38 = vpop.f32.mrf.mxu0 }
 0x2bb   : > { %v2132_v52 = vadd.f32 %v2131_v37, %v1907_v24 }
 0x2bc   : > { %v2133_v4 = vpop.f32.mrf.mxu1  ;;  %v1911_v36 = vpop.f32.mrf.mxu0 }
 0x2bd   : > { %2250 = vst [vmem:[%s3854_s17 + $0x208] sm:$0xff] %v2132_v52  ;;  %v1912_v30 = vadd.f32 %v1911_v36, %v1687_v19  ;;  %v1732_v4 = vadd.f32 %v4070_v63, %v4064_v43 }
 0x2be   : > { %v2136_v61 = vpop.f32.mrf.mxu1  ;;  %v1913_v41 = vpop.f32.mrf.mxu0 }
 0x2bf   : > { %v2137_v32 = vadd.f32 %v2136_v61, %v1912_v30 }
 0x2c0   : > { %v2138_v18 = vpop.f32.mrf.mxu1  ;;  %v1916_v25 = vpop.f32.mrf.mxu0 }
 0x2c1   : > { %2253 = vst [vmem:[%s3854_s17 + $0x220] sm:$0xff] %v2137_v32  ;;  %v1917_v40 = vadd.f32 %v1916_v25, %v1692_v7 }
 0x2c2   : > { %v2141_v8 = vpop.f32.mrf.mxu1  ;;  %v1918_v49 = vpop.f32.mrf.mxu0 }
 0x2c3   : > { %v2142_v1 = vadd.f32 %v2141_v8, %v1917_v40 }
 0x2c4   : > { %v2143_v50 = vpop.f32.mrf.mxu1  ;;  %v1921_v33 = vpop.f32.mrf.mxu0 }
 0x2c5   : > { %2256 = vst [vmem:[%s3854_s17 + $0x238] sm:$0xff] %v2142_v1  ;;  %v1922_v17 = vadd.f32 %v1921_v33, %v1697_v58 }
 0x2c6   : > { %v2146_v44 = vpop.f32.mrf.mxu1  ;;  %v1923_v0 = vpop.f32.mrf.mxu0 }
 0x2c7   : > { %v2147_v48 = vadd.f32 %v2146_v44, %v1922_v17 }
 0x2c8   : > { %v2148_v60 = vpop.f32.mrf.mxu1  ;;  %v1926_v27 = vpop.f32.mrf.mxu0 }
 0x2c9   : > { %2259 = vst [vmem:[%s3854_s17 + $0x250] sm:$0xff] %v2147_v48  ;;  %v1927_v23 = vadd.f32 %v1926_v27, %v1702_v31 }
 0x2ca   : > { %v2151_v21 = vpop.f32.mrf.mxu1  ;;  %v1928_v22 = vpop.f32.mrf.mxu0 }
 0x2cb   : > { %v2152_v16 = vadd.f32 %v2151_v21, %v1927_v23 }
 0x2cc   : > { %v2153_v35 = vpop.f32.mrf.mxu1  ;;  %v1931_v62 = vpop.f32.mrf.mxu0 }
 0x2cd   : > { %2262 = vst [vmem:[%s3854_s17 + $0x268] sm:$0xff] %v2152_v16  ;;  %v1932_v47 = vadd.f32 %v1931_v62, %v1707_v10 }
 0x2ce   : > { %v2156_v59 = vpop.f32.mrf.mxu1  ;;  %v1933_v26 = vpop.f32.mrf.mxu0 }
 0x2cf   : > { %v2157_v6 = vadd.f32 %v2156_v59, %v1932_v47 }
 0x2d0   : > { %v2158_v45 = vpop.f32.mrf.mxu1  ;;  %v1936_v13 = vpop.f32.mrf.mxu0 }
 0x2d1   : > { %2265 = vst [vmem:[%s3854_s17 + $0x280] sm:$0xff] %v2157_v6  ;;  %v1937_v12 = vadd.f32 %v1936_v13, %v1712_v3 }
 0x2d2   : > { %v2161_v53 = vpop.f32.mrf.mxu1  ;;  %v1938_v5 = vpop.f32.mrf.mxu0 }
 0x2d3   : > { %v2162_v51 = vadd.f32 %v2161_v53, %v1937_v12 }
 0x2d4   : > { %v2163_v15 = vpop.f32.mrf.mxu1  ;;  %v1941_v14 = vpop.f32.mrf.mxu0 }
 0x2d5   : > { %2268 = vst [vmem:[%s3854_s17 + $0x298] sm:$0xff] %v2162_v51  ;;  %v1942_v2 = vadd.f32 %v1941_v14, %v1717_v11 }
 0x2d6   : > { %v2166_v56 = vpop.f32.mrf.mxu1  ;;  %v1943_v54 = vpop.f32.mrf.mxu0 }
 0x2d7   : > { %v2167_v46 = vadd.f32 %v2166_v56, %v1942_v2 }
 0x2d8   : > { %v2168_v55 = vpop.f32.mrf.mxu1  ;;  %v1946_v20 = vpop.f32.mrf.mxu0 }
 0x2d9   : > { %2271 = vst [vmem:[%s3854_s17 + $0x2b0] sm:$0xff] %v2167_v46  ;;  %v1947_v57 = vadd.f32 %v1946_v20, %v1722_v29 }
 0x2da   : > { %v2171_v42 = vpop.f32.mrf.mxu1  ;;  %v1948_v39 = vpop.f32.mrf.mxu0 }
 0x2db   : > { %v2172_v24 = vadd.f32 %v2171_v42, %v1947_v57 }
 0x2dc   : > { %v2173_v37 = vpop.f32.mrf.mxu1  ;;  %v1951_v38 = vpop.f32.mrf.mxu0 }
 0x2dd   : > { %2274 = vst [vmem:[%s3854_s17 + $0x2c8] sm:$0xff] %v2172_v24  ;;  %v1952_v19 = vadd.f32 %v1951_v38, %v1727_v34 }
 0x2de   : > { %v2176_v52 = vpop.f32.mrf.mxu1  ;;  %v1953_v9 = vpop.f32.mrf.mxu0 }
 0x2df   : > { %v2177_v36 = vadd.f32 %v2176_v52, %v1952_v19 }
 0x2e0   : > { %v2178_v30 = vpop.f32.mrf.mxu1  ;;  %v1956_v61 = vpop.f32.mrf.mxu0 }
 0x2e1   : > { %2277 = vst [vmem:[%s3854_s17 + $0x2e0] sm:$0xff] %v2177_v36  ;;  %v1957_v28 = vadd.f32 %v1956_v61, %v1732_v4 }
 0x2e2   : > { %v2181_v41 = vpop.f32.mrf.mxu1  ;;  %v1958_v7 = vpop.f32.mrf.mxu0 }
 0x2e3   : > { %v2182_v43 = vadd.f32 %v2181_v41, %v1957_v28 }
 0x2e4   : > { %v2183_v63 = vpop.f32.mrf.mxu1 }
 0x2e5   : > { %2280 = vst [vmem:[%s3854_s17 + $0x2f8] sm:$0xff] %v2182_v43 }
 0x2e6   : > { %2696 = shalt.err (!%p2693_p3)
}
 0x2e7   : > { %s2697_s26 = scalar_lea.hbm %s4175_s18, 12288  ;;  %s2701_s8 = scalar_lea.hbm %s4224_s3, 24576 }
 0x2e8   : > { %p2698_p12 = scmp.ne.s32.totalorder %s4175_s18, %s2697_s26  ;;  %p2702_p10 = scmp.lt.s32.totalorder %s4175_s18, %s4224_s3 }
 0x2e9   : > { %p2703_p1 = scmp.lt.s32.totalorder %s2701_s8, %s2697_s26 }
 0x2ea   : > { %p2699_p13 = pnand %p2698_p12, %p4347_p4 }
 0x2eb   : > { %p2704_p6 = por %p2703_p1, %p2702_p10 }
 0x2ec   : > { %p2700_p8 = pneg %p2699_p13 }
 0x2ee   : > { %p2705_p2 = pnand %p2704_p6, %p2700_p8 }
 0x2f0   : > { %2708 = shalt.err (!%p2705_p2)
}
 0x2f1   : > { %s2762_s4 = smov 384   ;;  %s2763_s17 = smov 768  }
 0x2f2   : > { %s2764_s22 = smov 24  }
 0x2f3   : > { %2427 = dma.vmem_to_hbm [thread:$0]  (%p4347_p4), %s4177_s10, 12288, %s4175_s18, %s2282_s25, %s2762_s4, %s2763_s17, %s2764_s22  }
 0x2f4 PF: > { %s2310_s9 = sand.u32 1, %s2739_s12   ;;  %p4348_p5 = scmp.ne.s32.totalorder %s4246_s29, 0 }
 0x2f5   : > { %p4349_p9 = scmp.ge.s32.totalorder %s2751_s15, 2  ;;  %s2311_s11 = scalar_lea.sflag [#allocation4], %s2310_s9 }
 0x2f7   : > { %p2441_p7 = pnand %p4349_p9, %p4348_p5 }
 0x2f9   : > { %p2442_p11 = pneg %p2441_p7 }
 0x2fb   : > { %2734 = dma.done.wait (%p2442_p11), %s2311_s11, 12288  }
 0x2fc   : > { %2736 = vsyncadd (%p2442_p11), %s2311_s11, 4294955008  ;;  %p17_p0 = scmp.ge.s32.totalorder %s2806_s16, 4   ;;  %s4350_s12 = smov %s2743_s13 }
 0x2fd   : > { %s4351_s13 = smov %s2747_s14  ;;  %s4352_s14 = smov %s2816_s19 }
 0x2fe   : > { %s4353_s15 = smov %s2806_s16  ;;  %19 = sbr.rel (!%p17_p0) target bundleno = 6 (0x6), region = 93 }
 0x303   :  { %2316 = vsyncpa [#allocation3], 1 }
 0x304   :  { %2318 = vsyncpa [#allocation3 + $0x1], 1 }
 0x305   :  { %2319 = vsyncpa [#allocation6], 1 }
 0x306   :  { %2321 = vsyncpa [#allocation6 + $0x1], 1 }
 0x307   :  { %2322 = vsyncpa [#allocation4], 1 }
 0x308   :  { %2324 = vsyncpa [#allocation4 + $0x1], 1 }

</bundles_post_ra>
